<compile_context>
chip_gen: v6e
topology: v6e:2x2x1
jax: 0.10.0
libtpu: 0.0.40
codegen_flags: <defaults>
</compile_context>

<pallas_src>
import functools

import jax
import jax.numpy as jnp
from jax.experimental import pallas as pl
from jax.experimental.pallas import tpu as pltpu

EPS = 1e-5


# ---------------------------------------------------------------------------
# Kernel helpers
# ---------------------------------------------------------------------------
def _conv3x3_strip(pad_ref, col_ref, w_ref, b_ref, h_t, w_sz, c):
    """3x3 VALID conv of the padded strip, K-chunked over ky (3 matmuls, K=3C)."""
    m = h_t * w_sz
    acc = jnp.zeros((m, c), jnp.float32)
    for ky in range(3):
        # (M, 3C) col block for this ky: cols [kx*C:(kx+1)*C] = shifted patch.
        # TODO(synk): the kx = +-1 shifts are sublane-offset copies; a
        # pltpu.roll-based flat layout would move them onto the XLU slot.
        for kx in range(3):
            col_ref[:, kx * c:(kx + 1) * c] = (
                pad_ref[ky:ky + h_t, kx:kx + w_sz, :].reshape(m, c))
        acc = acc + jnp.dot(col_ref[...], w_ref[ky],
                            preferred_element_type=jnp.float32)
    return acc + b_ref[...]


def _strip_partial_stats(acc):
    """Per-channel (sum, sum of squared deviations from the STRIP mean)."""
    m = acc.shape[0]
    ssum = jnp.sum(acc, axis=0, keepdims=True)             # (1, C)
    d = acc - ssum * (1.0 / m)
    ssd = jnp.sum(d * d, axis=0, keepdims=True)            # (1, C)
    return jnp.concatenate([ssum, ssd], axis=0)            # (2, C)


def _conv_strip_kernel(*refs, h_t, w_sz, c, with_pre_norm_relu):
    """One H-strip of: [IN(mean,inv_std)+ReLU]? -> reflect-pad -> conv3x3+bias.

    Writes the pre-norm conv output strip plus per-strip InstanceNorm partial
    statistics; normalization happens one pass later once all strips' partials
    have been combined.
    """
    if with_pre_norm_relu:
        (src_ref, top_ref, bot_ref, stats_ref, w_ref, b_ref,
         a_ref, st_ref, pad_ref, col_ref) = refs
    else:
        (src_ref, top_ref, bot_ref, w_ref, b_ref,
         a_ref, st_ref, pad_ref, col_ref) = refs

    def pre(v):
        if with_pre_norm_relu:
            mean = stats_ref[0, 0:1, :]                    # (1, C)
            inv_std = stats_ref[0, 1:2, :]                 # (1, C)
            v = jnp.maximum((v - mean) * inv_std, 0.0)
        return v.astype(pad_ref.dtype)

    # Padded strip (H_t+2, W+2, C): interior rows, H-halo rows, reflect W cols.
    pad_ref[1:h_t + 1, 1:w_sz + 1, :] = pre(src_ref[0])
    pad_ref[0:1, 1:w_sz + 1, :] = pre(top_ref[0])
    pad_ref[h_t + 1:h_t + 2, 1:w_sz + 1, :] = pre(bot_ref[0])
    pad_ref[:, 0:1, :] = pad_ref[:, 2:3, :]                # reflect col -1 -> 1
    pad_ref[:, w_sz + 1:w_sz + 2, :] = pad_ref[:, w_sz - 1:w_sz, :]

    acc = _conv3x3_strip(pad_ref, col_ref, w_ref, b_ref, h_t, w_sz, c)

    st_ref[0, 0] = _strip_partial_stats(acc).astype(st_ref.dtype)
    a_ref[0] = acc.reshape(h_t, w_sz, c).astype(a_ref.dtype)


def _norm_residual_kernel(x_ref, a2_ref, stats_ref, o_ref):
    """out = x + (a2 - mean2) * inv_std2  (InstanceNorm of conv2 + residual)."""
    mean = stats_ref[0, 0:1, :]
    inv_std = stats_ref[0, 1:2, :]
    o_ref[0] = (x_ref[0] + (a2_ref[0] - mean) * inv_std).astype(o_ref.dtype)


# ---------------------------------------------------------------------------
# Host-side helpers (tiny (B, C)-sized math + tile sizing)
# ---------------------------------------------------------------------------
def _combine_strip_stats(partials, m_strip, eps):
    """Chan/Welford merge of per-strip (sum, ssd) -> (mean, 1/sqrt(var+eps))."""
    n_s = partials.shape[1]
    n_tot = n_s * m_strip
    ssum = partials[:, :, 0, :]                            # (B, n_s, C)
    ssd = partials[:, :, 1, :]
    mean = jnp.sum(ssum, axis=1) / n_tot                   # (B, C)
    strip_mean = ssum / m_strip
    between = m_strip * jnp.sum((strip_mean - mean[:, None, :]) ** 2, axis=1)
    var = (jnp.sum(ssd, axis=1) + between) / n_tot         # biased, as in IN
    return jnp.stack([mean, jax.lax.rsqrt(var + eps)], axis=1)   # (B, 2, C)


def _vmem_capacity_bytes():
    try:
        cap = getattr(pltpu.get_tpu_info(), "vmem_capacity_bytes", None)
        if cap:
            return int(cap)
    except Exception:
        pass
    return 64 * 1024 * 1024            # conservative: v7x per-TensorCore VMEM


def _strip_vmem_bytes(h_t, w_sz, c):
    m = h_t * w_sz
    act = m * c * 4                                    # one f32 strip block
    halo = w_sz * c * 4
    wts = 9 * c * c * 2                                # one conv's bf16 weights
    pad = (h_t + 2) * (w_sz + 2) * c * 2               # bf16 pad scratch
    col = m * 3 * c * 2                                # bf16 col scratch
    acc = m * c * 4                                    # f32 accumulator value
    # double-buffered pipelined blocks (in strip + 2 halos + out strip) + rest
    return 2 * (2 * act + 2 * halo) + 2 * wts + pad + col + 2 * acc


def _pick_h_tile(batch, height, w_sz, c, budget_bytes):
    divisors = sorted((d for d in range(1, height + 1) if height % d == 0),
                      reverse=True)
    h_t = 1
    for d in divisors:
        if _strip_vmem_bytes(d, w_sz, c) <= budget_bytes:
            h_t = d
            break
    # v7x has 2 TensorCores per chip: keep at least 2 parallel grid steps.
    while batch * (height // h_t) < 2 and h_t > 1:
        h_t = max(d for d in divisors if d < h_t)
    return h_t


# ---------------------------------------------------------------------------
# Wrapper
# ---------------------------------------------------------------------------
def resnet_block(x, w1, b1, w2, b2, eps=EPS, h_tile=None):
    """x: (B, H, W, C) NHWC f32; w*: (3, 3, C, C) HWIO; b*: (C,)."""
    B, H, W, C = x.shape

    vmem_limit = min(int(_vmem_capacity_bytes() * 0.85), 112 * 1024 * 1024)
    if h_tile is None:
        h_tile = _pick_h_tile(B, H, W, C, int(vmem_limit * 0.75))
    assert 1 <= h_tile <= H and H % h_tile == 0, "h_tile must divide H"
    n_s = H // h_tile
    m_strip = h_tile * W

    # Per-ky weight matrices (3, 3C, C): row index (kx, c_in) matches the col
    # block layout; bf16 MXU operands, f32 accumulation.
    w1k = w1.reshape(3, 3 * C, C).astype(jnp.bfloat16)
    w2k = w2.reshape(3, 3 * C, C).astype(jnp.bfloat16)
    b1r = b1.reshape(1, C).astype(jnp.float32)
    b2r = b2.reshape(1, C).astype(jnp.float32)

    strip = pl.BlockSpec((1, h_tile, W, C), lambda b, s: (b, s, 0, 0))
    # 1-row halo views of the SAME array; reflection at the image edges is
    # folded into the index arithmetic (|.| reflects row -1 -> 1, etc.).
    halo_top = pl.BlockSpec(
        (1, 1, W, C), lambda b, s: (b, jnp.abs(s * h_tile - 1), 0, 0))
    halo_bot = pl.BlockSpec(
        (1, 1, W, C),
        lambda b, s: (b, (H - 1) - jnp.abs((H - 1) - (s + 1) * h_tile), 0, 0))
    wspec = pl.BlockSpec((3, 3 * C, C), lambda b, s: (0, 0, 0))
    bspec = pl.BlockSpec((1, C), lambda b, s: (0, 0))
    sspec = pl.BlockSpec((1, 2, C), lambda b, s: (b, 0, 0))        # mean/inv_std
    pspec = pl.BlockSpec((1, 1, 2, C), lambda b, s: (b, s, 0, 0))  # partials

    grid = (B, n_s)
    cparams = pltpu.CompilerParams(
        dimension_semantics=("parallel", "parallel"),
        vmem_limit_bytes=vmem_limit)
    scratch = [pltpu.VMEM((h_tile + 2, W + 2, C), jnp.bfloat16),   # padded strip
               pltpu.VMEM((m_strip, 3 * C), jnp.bfloat16)]         # ky col block

    act_shape = jax.ShapeDtypeStruct((B, H, W, C), jnp.float32)
    part_shape = jax.ShapeDtypeStruct((B, n_s, 2, C), jnp.float32)

    conv1 = pl.pallas_call(
        functools.partial(_conv_strip_kernel, h_t=h_tile, w_sz=W, c=C,
                          with_pre_norm_relu=False),
        grid=grid,
        in_specs=[strip, halo_top, halo_bot, wspec, bspec],
        out_specs=(strip, pspec),
        out_shape=(act_shape, part_shape),
        scratch_shapes=scratch,
        compiler_params=cparams)

    conv2 = pl.pallas_call(
        functools.partial(_conv_strip_kernel, h_t=h_tile, w_sz=W, c=C,
                          with_pre_norm_relu=True),
        grid=grid,
        in_specs=[strip, halo_top, halo_bot, sspec, wspec, bspec],
        out_specs=(strip, pspec),
        out_shape=(act_shape, part_shape),
        scratch_shapes=scratch,
        compiler_params=cparams)

    finalize = pl.pallas_call(
        _norm_residual_kernel,
        grid=grid,
        in_specs=[strip, strip, sspec],
        out_specs=strip,
        out_shape=jax.ShapeDtypeStruct((B, H, W, C), x.dtype),
        compiler_params=cparams)

    # Pass 1: conv1 strips + per-strip InstanceNorm partial stats.
    a1, p1 = conv1(x, x, x, w1k, b1r)
    stats1 = _combine_strip_stats(p1, m_strip, eps)
    # Pass 2: IN(a1)+ReLU -> conv2 strips + per-strip partial stats.
    a2, p2 = conv2(a1, a1, a1, stats1, w2k, b2r)
    stats2 = _combine_strip_stats(p2, m_strip, eps)
    # Pass 3: IN(a2) + residual add.
    return finalize(x, a2, stats2)


# ---------------------------------------------------------------------------
# Pure-JAX reference (for correctness check only).
# ---------------------------------------------------------------------------
def _ref_conv_in(x, w, b, eps, relu):
    xpad = jnp.pad(x, ((0, 0), (1, 1), (1, 1), (0, 0)), mode="reflect")
    y = jax.lax.conv_general_dilated(
        xpad, w, window_strides=(1, 1), padding="VALID",
        dimension_numbers=("NHWC", "HWIO", "NHWC")) + b
    mean = jnp.mean(y, axis=(1, 2), keepdims=True)
    var = jnp.mean((y - mean) ** 2, axis=(1, 2), keepdims=True)
    y = (y - mean) * jax.lax.rsqrt(var + eps)
    return jnp.maximum(y, 0.0) if relu else y


def resnet_block_ref(x, w1, b1, w2, b2, eps=EPS):
    h = _ref_conv_in(x, w1, b1, eps, relu=True)
    return x + _ref_conv_in(h, w2, b2, eps, relu=False)


if __name__ == "__main__":
    # Small shapes consistent with the module: dim=4 channels, 16x16 spatial.
    B, C, H, W = 2, 4, 16, 16
    key = jax.random.PRNGKey(0)
    kx, kw1, kb1, kw2, kb2 = jax.random.split(key, 5)

    x = jax.random.normal(kx, (B, H, W, C), jnp.float32)
    # Deterministic synthetic params (HWIO). PyTorch would be (C_out, C_in, 3, 3).
    w1 = jax.random.normal(kw1, (3, 3, C, C), jnp.float32) * 0.1
    b1 = jax.random.normal(kb1, (C,), jnp.float32) * 0.1
    w2 = jax.random.normal(kw2, (3, 3, C, C), jnp.float32) * 0.1
    b2 = jax.random.normal(kb2, (C,), jnp.float32) * 0.1

    # h_tile=8 -> 2 strips per image: exercises the halo index maps and the
    # cross-strip InstanceNorm stats merge (the production code path).
    out = jax.block_until_ready(resnet_block(x, w1, b1, w2, b2, h_tile=8))
    ref = jax.block_until_ready(resnet_block_ref(x, w1, b1, w2, b2))

    assert out.shape == (B, H, W, C)
    # bf16 matmul operands (f32 accumulation) -> slightly looser tolerance than
    # the all-f32 reference.
    assert jnp.allclose(out, ref, rtol=5e-2, atol=5e-2), "mismatch vs reference"
    print("KERNEL_OK")
</pallas_src>

<mosaic_0001>
module attributes {stable_mosaic.version = 11 : i64} {
  func.func @_conv_strip_kernel(%arg0: i32, %arg1: i32, %arg2: memref<1x8x16x4xf32, #tpu.memory_space<vmem>>, %arg3: memref<1x1x16x4xf32, #tpu.memory_space<vmem>>, %arg4: memref<1x1x16x4xf32, #tpu.memory_space<vmem>>, %arg5: memref<3x12x4xbf16, #tpu.memory_space<vmem>>, %arg6: memref<1x4xf32, #tpu.memory_space<vmem>>, %arg7: memref<1x8x16x4xf32, #tpu.memory_space<vmem>>, %arg8: memref<1x1x2x4xf32, #tpu.memory_space<vmem>>, %arg9: memref<10x18x4xbf16, #tpu.memory_space<vmem>>, %arg10: memref<128x12xbf16, #tpu.memory_space<vmem>>) attributes {dimension_semantics = [#tpu.dimension_semantics<parallel>, #tpu.dimension_semantics<parallel>], iteration_bounds = array<i64: 2, 2>, scalar_prefetch = 0 : i64, scratch_operands = 2 : i64, tpu.core_type = #tpu.core_type<tc>, window_params = [{transform_indices = @transform_0, window_bounds = array<i64: 1, 8, 16, 4>}, {transform_indices = @transform_1, window_bounds = array<i64: 1, 1, 16, 4>}, {transform_indices = @transform_2, window_bounds = array<i64: 1, 1, 16, 4>}, {pipeline_mode = #tpu.pipeline_mode<synchronous>, transform_indices = @transform_3, window_bounds = array<i64: 3, 12, 4>}, {pipeline_mode = #tpu.pipeline_mode<synchronous>, transform_indices = @transform_4, window_bounds = array<i64: 1, 4>}, {transform_indices = @transform_5, window_bounds = array<i64: 1, 8, 16, 4>}, {transform_indices = @transform_6, window_bounds = array<i64: 1, 1, 2, 4>}]} {
    %c0 = arith.constant 0 : index
    %c0_0 = arith.constant 0 : index
    %c0_1 = arith.constant 0 : index
    %c0_2 = arith.constant 0 : index
    %0 = vector.load %arg2[%c0, %c0_0, %c0_1, %c0_2] : memref<1x8x16x4xf32, #tpu.memory_space<vmem>>, vector<1x8x16x4xf32>
    %1 = vector.shape_cast %0 : vector<1x8x16x4xf32> to vector<8x16x4xf32>
    %2 = arith.truncf %1 : vector<8x16x4xf32> to vector<8x16x4xbf16>
    %c1 = arith.constant 1 : index
    %c1_3 = arith.constant 1 : index
    %c0_4 = arith.constant 0 : index
    %3 = vector.load %arg9[%c1, %c1_3, %c0_4] : memref<10x18x4xbf16, #tpu.memory_space<vmem>>, vector<8x16x4xbf16>
    tpu.vector_store %arg9[%c1, %c1_3, %c0_4], %2 {strides = array<i32>} : memref<10x18x4xbf16, #tpu.memory_space<vmem>>, vector<8x16x4xbf16>,
    %c0_5 = arith.constant 0 : index
    %c0_6 = arith.constant 0 : index
    %c0_7 = arith.constant 0 : index
    %c0_8 = arith.constant 0 : index
    %4 = vector.load %arg3[%c0_5, %c0_6, %c0_7, %c0_8] : memref<1x1x16x4xf32, #tpu.memory_space<vmem>>, vector<1x1x16x4xf32>
    %5 = vector.shape_cast %4 : vector<1x1x16x4xf32> to vector<1x16x4xf32>
    %6 = arith.truncf %5 : vector<1x16x4xf32> to vector<1x16x4xbf16>
    %c0_9 = arith.constant 0 : index
    %c1_10 = arith.constant 1 : index
    %c0_11 = arith.constant 0 : index
    %7 = vector.load %arg9[%c0_9, %c1_10, %c0_11] : memref<10x18x4xbf16, #tpu.memory_space<vmem>>, vector<1x16x4xbf16>
    tpu.vector_store %arg9[%c0_9, %c1_10, %c0_11], %6 {strides = array<i32>} : memref<10x18x4xbf16, #tpu.memory_space<vmem>>, vector<1x16x4xbf16>,
    %c0_12 = arith.constant 0 : index
    %c0_13 = arith.constant 0 : index
    %c0_14 = arith.constant 0 : index
    %c0_15 = arith.constant 0 : index
    %8 = vector.load %arg4[%c0_12, %c0_13, %c0_14, %c0_15] : memref<1x1x16x4xf32, #tpu.memory_space<vmem>>, vector<1x1x16x4xf32>
    %9 = vector.shape_cast %8 : vector<1x1x16x4xf32> to vector<1x16x4xf32>
    %10 = arith.truncf %9 : vector<1x16x4xf32> to vector<1x16x4xbf16>
    %c9 = arith.constant 9 : index
    %c1_16 = arith.constant 1 : index
    %c0_17 = arith.constant 0 : index
    %11 = vector.load %arg9[%c9, %c1_16, %c0_17] : memref<10x18x4xbf16, #tpu.memory_space<vmem>>, vector<1x16x4xbf16>
    tpu.vector_store %arg9[%c9, %c1_16, %c0_17], %10 {strides = array<i32>} : memref<10x18x4xbf16, #tpu.memory_space<vmem>>, vector<1x16x4xbf16>,
    %c0_18 = arith.constant 0 : index
    %c2 = arith.constant 2 : index
    %c0_19 = arith.constant 0 : index
    %12 = vector.load %arg9[%c0_18, %c2, %c0_19] : memref<10x18x4xbf16, #tpu.memory_space<vmem>>, vector<10x1x4xbf16>
    %c0_20 = arith.constant 0 : index
    %c0_21 = arith.constant 0 : index
    %c0_22 = arith.constant 0 : index
    %13 = vector.load %arg9[%c0_20, %c0_21, %c0_22] : memref<10x18x4xbf16, #tpu.memory_space<vmem>>, vector<10x1x4xbf16>
    tpu.vector_store %arg9[%c0_20, %c0_21, %c0_22], %12 {strides = array<i32>} : memref<10x18x4xbf16, #tpu.memory_space<vmem>>, vector<10x1x4xbf16>,
    %c0_23 = arith.constant 0 : index
    %c15 = arith.constant 15 : index
    %c0_24 = arith.constant 0 : index
    %14 = vector.load %arg9[%c0_23, %c15, %c0_24] : memref<10x18x4xbf16, #tpu.memory_space<vmem>>, vector<10x1x4xbf16>
    %c0_25 = arith.constant 0 : index
    %c17 = arith.constant 17 : index
    %c0_26 = arith.constant 0 : index
    %15 = vector.load %arg9[%c0_25, %c17, %c0_26] : memref<10x18x4xbf16, #tpu.memory_space<vmem>>, vector<10x1x4xbf16>
    tpu.vector_store %arg9[%c0_25, %c17, %c0_26], %14 {strides = array<i32>} : memref<10x18x4xbf16, #tpu.memory_space<vmem>>, vector<10x1x4xbf16>,
    %cst = arith.constant 0.000000e+00 : f32
    %16 = vector.broadcast %cst : f32 to vector<128x4xf32>
    %c0_27 = arith.constant 0 : index
    %c0_28 = arith.constant 0 : index
    %c0_29 = arith.constant 0 : index
    %17 = vector.load %arg9[%c0_27, %c0_28, %c0_29] : memref<10x18x4xbf16, #tpu.memory_space<vmem>>, vector<8x16x4xbf16>
    %18 = vector.shape_cast %17 : vector<8x16x4xbf16> to vector<128x4xbf16>
    %c0_30 = arith.constant 0 : index
    %c0_31 = arith.constant 0 : index
    %19 = vector.load %arg10[%c0_30, %c0_31] : memref<128x12xbf16, #tpu.memory_space<vmem>>, vector<128x4xbf16>
    tpu.vector_store %arg10[%c0_30, %c0_31], %18 {strides = array<i32>} : memref<128x12xbf16, #tpu.memory_space<vmem>>, vector<128x4xbf16>,
    %c0_32 = arith.constant 0 : index
    %c1_33 = arith.constant 1 : index
    %c0_34 = arith.constant 0 : index
    %20 = vector.load %arg9[%c0_32, %c1_33, %c0_34] : memref<10x18x4xbf16, #tpu.memory_space<vmem>>, vector<8x16x4xbf16>
    %21 = vector.shape_cast %20 : vector<8x16x4xbf16> to vector<128x4xbf16>
    %c0_35 = arith.constant 0 : index
    %c4 = arith.constant 4 : index
    %22 = vector.load %arg10[%c0_35, %c4] : memref<128x12xbf16, #tpu.memory_space<vmem>>, vector<128x4xbf16>
    tpu.vector_store %arg10[%c0_35, %c4], %21 {strides = array<i32>} : memref<128x12xbf16, #tpu.memory_space<vmem>>, vector<128x4xbf16>,
    %c0_36 = arith.constant 0 : index
    %c2_37 = arith.constant 2 : index
    %c0_38 = arith.constant 0 : index
    %23 = vector.load %arg9[%c0_36, %c2_37, %c0_38] : memref<10x18x4xbf16, #tpu.memory_space<vmem>>, vector<8x16x4xbf16>
    %24 = vector.shape_cast %23 : vector<8x16x4xbf16> to vector<128x4xbf16>
    %c0_39 = arith.constant 0 : index
    %c8 = arith.constant 8 : index
    %25 = vector.load %arg10[%c0_39, %c8] : memref<128x12xbf16, #tpu.memory_space<vmem>>, vector<128x4xbf16>
    tpu.vector_store %arg10[%c0_39, %c8], %24 {strides = array<i32>} : memref<128x12xbf16, #tpu.memory_space<vmem>>, vector<128x4xbf16>,
    %c0_40 = arith.constant 0 : index
    %c0_41 = arith.constant 0 : index
    %26 = vector.load %arg10[%c0_40, %c0_41] : memref<128x12xbf16, #tpu.memory_space<vmem>>, vector<128x12xbf16>
    %c0_42 = arith.constant 0 : index
    %c0_43 = arith.constant 0 : index
    %c0_44 = arith.constant 0 : index
    %27 = vector.load %arg5[%c0_42, %c0_43, %c0_44] : memref<3x12x4xbf16, #tpu.memory_space<vmem>>, vector<1x12x4xbf16>
    %28 = vector.shape_cast %27 : vector<1x12x4xbf16> to vector<12x4xbf16>
    %cst_45 = arith.constant dense<0.000000e+00> : vector<128x4xf32>
    %29 = tpu.matmul %26, %28, %cst_45 {dimension_numbers = #tpu.dot_dimension_numbers<[1], [0], [0], [1], [0, 0, 1, 1], [], []>} : vector<128x12xbf16>, vector<12x4xbf16>, vector<128x4xf32> -> vector<128x4xf32>
    %30 = arith.addf %16, %29 : vector<128x4xf32>
    %c1_46 = arith.constant 1 : index
    %c0_47 = arith.constant 0 : index
    %c0_48 = arith.constant 0 : index
    %31 = vector.load %arg9[%c1_46, %c0_47, %c0_48] : memref<10x18x4xbf16, #tpu.memory_space<vmem>>, vector<8x16x4xbf16>
    %32 = vector.shape_cast %31 : vector<8x16x4xbf16> to vector<128x4xbf16>
    %c0_49 = arith.constant 0 : index
    %c0_50 = arith.constant 0 : index
    %33 = vector.load %arg10[%c0_49, %c0_50] : memref<128x12xbf16, #tpu.memory_space<vmem>>, vector<128x4xbf16>
    tpu.vector_store %arg10[%c0_49, %c0_50], %32 {strides = array<i32>} : memref<128x12xbf16, #tpu.memory_space<vmem>>, vector<128x4xbf16>,
    %c1_51 = arith.constant 1 : index
    %c1_52 = arith.constant 1 : index
    %c0_53 = arith.constant 0 : index
    %34 = vector.load %arg9[%c1_51, %c1_52, %c0_53] : memref<10x18x4xbf16, #tpu.memory_space<vmem>>, vector<8x16x4xbf16>
    %35 = vector.shape_cast %34 : vector<8x16x4xbf16> to vector<128x4xbf16>
    %c0_54 = arith.constant 0 : index
    %c4_55 = arith.constant 4 : index
    %36 = vector.load %arg10[%c0_54, %c4_55] : memref<128x12xbf16, #tpu.memory_space<vmem>>, vector<128x4xbf16>
    tpu.vector_store %arg10[%c0_54, %c4_55], %35 {strides = array<i32>} : memref<128x12xbf16, #tpu.memory_space<vmem>>, vector<128x4xbf16>,
    %c1_56 = arith.constant 1 : index
    %c2_57 = arith.constant 2 : index
    %c0_58 = arith.constant 0 : index
    %37 = vector.load %arg9[%c1_56, %c2_57, %c0_58] : memref<10x18x4xbf16, #tpu.memory_space<vmem>>, vector<8x16x4xbf16>
    %38 = vector.shape_cast %37 : vector<8x16x4xbf16> to vector<128x4xbf16>
    %c0_59 = arith.constant 0 : index
    %c8_60 = arith.constant 8 : index
    %39 = vector.load %arg10[%c0_59, %c8_60] : memref<128x12xbf16, #tpu.memory_space<vmem>>, vector<128x4xbf16>
    tpu.vector_store %arg10[%c0_59, %c8_60], %38 {strides = array<i32>} : memref<128x12xbf16, #tpu.memory_space<vmem>>, vector<128x4xbf16>,
    %c0_61 = arith.constant 0 : index
    %c0_62 = arith.constant 0 : index
    %40 = vector.load %arg10[%c0_61, %c0_62] : memref<128x12xbf16, #tpu.memory_space<vmem>>, vector<128x12xbf16>
    %c1_63 = arith.constant 1 : index
    %c0_64 = arith.constant 0 : index
    %c0_65 = arith.constant 0 : index
    %41 = vector.load %arg5[%c1_63, %c0_64, %c0_65] : memref<3x12x4xbf16, #tpu.memory_space<vmem>>, vector<1x12x4xbf16>
    %42 = vector.shape_cast %41 : vector<1x12x4xbf16> to vector<12x4xbf16>
    %cst_66 = arith.constant dense<0.000000e+00> : vector<128x4xf32>
    %43 = tpu.matmul %40, %42, %cst_66 {dimension_numbers = #tpu.dot_dimension_numbers<[1], [0], [0], [1], [0, 0, 1, 1], [], []>} : vector<128x12xbf16>, vector<12x4xbf16>, vector<128x4xf32> -> vector<128x4xf32>
    %44 = arith.addf %30, %43 : vector<128x4xf32>
    %c2_67 = arith.constant 2 : index
    %c0_68 = arith.constant 0 : index
    %c0_69 = arith.constant 0 : index
    %45 = vector.load %arg9[%c2_67, %c0_68, %c0_69] : memref<10x18x4xbf16, #tpu.memory_space<vmem>>, vector<8x16x4xbf16>
    %46 = vector.shape_cast %45 : vector<8x16x4xbf16> to vector<128x4xbf16>
    %c0_70 = arith.constant 0 : index
    %c0_71 = arith.constant 0 : index
    %47 = vector.load %arg10[%c0_70, %c0_71] : memref<128x12xbf16, #tpu.memory_space<vmem>>, vector<128x4xbf16>
    tpu.vector_store %arg10[%c0_70, %c0_71], %46 {strides = array<i32>} : memref<128x12xbf16, #tpu.memory_space<vmem>>, vector<128x4xbf16>,
    %c2_72 = arith.constant 2 : index
    %c1_73 = arith.constant 1 : index
    %c0_74 = arith.constant 0 : index
    %48 = vector.load %arg9[%c2_72, %c1_73, %c0_74] : memref<10x18x4xbf16, #tpu.memory_space<vmem>>, vector<8x16x4xbf16>
    %49 = vector.shape_cast %48 : vector<8x16x4xbf16> to vector<128x4xbf16>
    %c0_75 = arith.constant 0 : index
    %c4_76 = arith.constant 4 : index
    %50 = vector.load %arg10[%c0_75, %c4_76] : memref<128x12xbf16, #tpu.memory_space<vmem>>, vector<128x4xbf16>
    tpu.vector_store %arg10[%c0_75, %c4_76], %49 {strides = array<i32>} : memref<128x12xbf16, #tpu.memory_space<vmem>>, vector<128x4xbf16>,
    %c2_77 = arith.constant 2 : index
    %c2_78 = arith.constant 2 : index
    %c0_79 = arith.constant 0 : index
    %51 = vector.load %arg9[%c2_77, %c2_78, %c0_79] : memref<10x18x4xbf16, #tpu.memory_space<vmem>>, vector<8x16x4xbf16>
    %52 = vector.shape_cast %51 : vector<8x16x4xbf16> to vector<128x4xbf16>
    %c0_80 = arith.constant 0 : index
    %c8_81 = arith.constant 8 : index
    %53 = vector.load %arg10[%c0_80, %c8_81] : memref<128x12xbf16, #tpu.memory_space<vmem>>, vector<128x4xbf16>
    tpu.vector_store %arg10[%c0_80, %c8_81], %52 {strides = array<i32>} : memref<128x12xbf16, #tpu.memory_space<vmem>>, vector<128x4xbf16>,
    %c0_82 = arith.constant 0 : index
    %c0_83 = arith.constant 0 : index
    %54 = vector.load %arg10[%c0_82, %c0_83] : memref<128x12xbf16, #tpu.memory_space<vmem>>, vector<128x12xbf16>
    %c2_84 = arith.constant 2 : index
    %c0_85 = arith.constant 0 : index
    %c0_86 = arith.constant 0 : index
    %55 = vector.load %arg5[%c2_84, %c0_85, %c0_86] : memref<3x12x4xbf16, #tpu.memory_space<vmem>>, vector<1x12x4xbf16>
    %56 = vector.shape_cast %55 : vector<1x12x4xbf16> to vector<12x4xbf16>
    %cst_87 = arith.constant dense<0.000000e+00> : vector<128x4xf32>
    %57 = tpu.matmul %54, %56, %cst_87 {dimension_numbers = #tpu.dot_dimension_numbers<[1], [0], [0], [1], [0, 0, 1, 1], [], []>} : vector<128x12xbf16>, vector<12x4xbf16>, vector<128x4xf32> -> vector<128x4xf32>
    %58 = arith.addf %44, %57 : vector<128x4xf32>
    %c0_88 = arith.constant 0 : index
    %c0_89 = arith.constant 0 : index
    %59 = vector.load %arg6[%c0_88, %c0_89] : memref<1x4xf32, #tpu.memory_space<vmem>>, vector<1x4xf32>
    %60 = vector.broadcast %59 : vector<1x4xf32> to vector<128x4xf32>
    %61 = arith.addf %58, %60 : vector<128x4xf32>
    %cst_90 = arith.constant dense<0.000000e+00> : vector<4xf32>
    %62 = vector.multi_reduction <add>, %61, %cst_90 [0] : vector<128x4xf32> to vector<4xf32>
    %63 = vector.shape_cast %62 : vector<4xf32> to vector<1x4xf32>
    %cst_91 = arith.constant 7.812500e-03 : f32
    %64 = vector.broadcast %cst_91 : f32 to vector<1x4xf32>
    %65 = arith.mulf %63, %64 : vector<1x4xf32>
    %66 = vector.broadcast %65 : vector<1x4xf32> to vector<128x4xf32>
    %67 = arith.subf %61, %66 : vector<128x4xf32>
    %68 = arith.mulf %67, %67 : vector<128x4xf32>
    %cst_92 = arith.constant dense<0.000000e+00> : vector<4xf32>
    %69 = vector.multi_reduction <add>, %68, %cst_92 [0] : vector<128x4xf32> to vector<4xf32>
    %70 = vector.shape_cast %69 : vector<4xf32> to vector<1x4xf32>
    %71 = tpu.concatenate %63, %70 in 0 : vector<1x4xf32>, vector<1x4xf32> -> vector<2x4xf32>
    %c0_93 = arith.constant 0 : index
    %c0_94 = arith.constant 0 : index
    %c0_95 = arith.constant 0 : index
    %c0_96 = arith.constant 0 : index
    %72 = vector.load %arg8[%c0_93, %c0_94, %c0_95, %c0_96] : memref<1x1x2x4xf32, #tpu.memory_space<vmem>>, vector<1x1x2x4xf32>
    %73 = vector.shape_cast %72 : vector<1x1x2x4xf32> to vector<2x4xf32>
    %74 = vector.shape_cast %71 : vector<2x4xf32> to vector<1x1x2x4xf32>
    tpu.vector_store %arg8[%c0_93, %c0_94, %c0_95, %c0_96], %74 {strides = array<i32>} : memref<1x1x2x4xf32, #tpu.memory_space<vmem>>, vector<1x1x2x4xf32>,
    %75 = vector.shape_cast %61 : vector<128x4xf32> to vector<8x16x4xf32>
    %c0_97 = arith.constant 0 : index
    %c0_98 = arith.constant 0 : index
    %c0_99 = arith.constant 0 : index
    %c0_100 = arith.constant 0 : index
    %76 = vector.load %arg7[%c0_97, %c0_98, %c0_99, %c0_100] : memref<1x8x16x4xf32, #tpu.memory_space<vmem>>, vector<1x8x16x4xf32>
    %77 = vector.shape_cast %76 : vector<1x8x16x4xf32> to vector<8x16x4xf32>
    %78 = vector.shape_cast %75 : vector<8x16x4xf32> to vector<1x8x16x4xf32>
    tpu.vector_store %arg7[%c0_97, %c0_98, %c0_99, %c0_100], %78 {strides = array<i32>} : memref<1x8x16x4xf32, #tpu.memory_space<vmem>>, vector<1x8x16x4xf32>,
    return
  }
  func.func @transform_0(%arg0: i32, %arg1: i32) -> (i32, i32, i32, i32) {
    %c0_i32 = arith.constant 0 : i32
    %c0_i32_0 = arith.constant 0 : i32
    %c0_i32_1 = arith.constant 0 : i32
    return %arg0, %arg1, %c0_i32, %c0_i32_0 : i32, i32, i32, i32
  }
  func.func @transform_1(%arg0: i32, %arg1: i32) -> (i32, i32, i32, i32) {
    %c8_i32 = arith.constant 8 : i32
    %0 = arith.muli %arg1, %c8_i32 : i32
    %c1_i32 = arith.constant 1 : i32
    %1 = arith.subi %0, %c1_i32 : i32
    %2 = math.absi %1 : i32
    %c0_i32 = arith.constant 0 : i32
    %c0_i32_0 = arith.constant 0 : i32
    %c0_i32_1 = arith.constant 0 : i32
    return %arg0, %2, %c0_i32, %c0_i32_0 : i32, i32, i32, i32
  }
  func.func @transform_2(%arg0: i32, %arg1: i32) -> (i32, i32, i32, i32) {
    %c1_i32 = arith.constant 1 : i32
    %0 = arith.addi %arg1, %c1_i32 : i32
    %c8_i32 = arith.constant 8 : i32
    %1 = arith.muli %0, %c8_i32 : i32
    %c15_i32 = arith.constant 15 : i32
    %2 = arith.subi %c15_i32, %1 : i32
    %3 = math.absi %2 : i32
    %c15_i32_0 = arith.constant 15 : i32
    %4 = arith.subi %c15_i32_0, %3 : i32
    %c0_i32 = arith.constant 0 : i32
    %c0_i32_1 = arith.constant 0 : i32
    %c0_i32_2 = arith.constant 0 : i32
    return %arg0, %4, %c0_i32, %c0_i32_1 : i32, i32, i32, i32
  }
  func.func @transform_3(%arg0: i32, %arg1: i32) -> (i32, i32, i32) {
    %c0_i32 = arith.constant 0 : i32
    %c0_i32_0 = arith.constant 0 : i32
    %c0_i32_1 = arith.constant 0 : i32
    %c0_i32_2 = arith.constant 0 : i32
    return %c0_i32, %c0_i32_0, %c0_i32_1 : i32, i32, i32
  }
  func.func @transform_4(%arg0: i32, %arg1: i32) -> (i32, i32) {
    %c0_i32 = arith.constant 0 : i32
    %c0_i32_0 = arith.constant 0 : i32
    %c0_i32_1 = arith.constant 0 : i32
    return %c0_i32, %c0_i32_0 : i32, i32
  }
  func.func @transform_5(%arg0: i32, %arg1: i32) -> (i32, i32, i32, i32) {
    %c0_i32 = arith.constant 0 : i32
    %c0_i32_0 = arith.constant 0 : i32
    %c0_i32_1 = arith.constant 0 : i32
    return %arg0, %arg1, %c0_i32, %c0_i32_0 : i32, i32, i32, i32
  }
  func.func @transform_6(%arg0: i32, %arg1: i32) -> (i32, i32, i32, i32) {
    %c0_i32 = arith.constant 0 : i32
    %c0_i32_0 = arith.constant 0 : i32
    %c0_i32_1 = arith.constant 0 : i32
    return %arg0, %arg1, %c0_i32, %c0_i32_0 : i32, i32, i32, i32
  }
}

</mosaic_0001>

<bundles_post_ra>
// kernel: tpu_custom_call.1
= control target key start
LH: loop header
LB: loop body
LE: loop exit
PB: predicated region body
PF: predicated region fallthrough
CT: control target
= control target key end

     0   :  { %12 = vsyncpa [#allocation5], 0  ;;  %s5188_s0 = inlined_call_operand.vmem [shape: f32[2,16,16,4], index: 0, kind: input, shape index: {}]   ;;  %s5189_s1 = inlined_call_operand.vmem [shape: f32[2,16,16,4], index: 1, kind: input, shape index: {}]   ;;  %s5190_s2 = inlined_call_operand.vmem [shape: f32[2,16,16,4], index: 2, kind: input, shape index: {}]   ;;  %s5191_s3 = inlined_call_operand.vmem [shape: bf16[3,12,4], index: 3, kind: input, shape index: {}]   ;;  %s5192_s4 = inlined_call_operand.vmem [shape: f32[1,4], index: 4, kind: input, shape index: {}]   ;;  %s5193_s5 = inlined_call_operand.vmem [shape: f32[2,16,16,4], index: 5, kind: output, shape index: {0}]   ;;  %s5194_s6 = inlined_call_operand.hbm [shape: f32[2,2,2,4], index: 6, kind: output, shape index: {1}]  }
   0x1   :  { %14 = vsyncpa [#allocation5 + $0x1], 0  ;;  %s3850_s21 = smov 0   ;;  %s3852_s22 = smov 0  }
   0x2   :  { %s3854_s23 = smov 0   ;;  %s3856_s24 = smov 0  }
   0x3   :  { %s3858_s25 = smov 0   ;;  %s3860_s26 = smov 0  }
   0x4   :  { %s3862_s27 = smov 0   ;;  %s3864_s28 = smov 0  }
   0x5 LB: > { %s3360_s29 = sadd.s32 4294967295, %s3810_s28   ;;  %s3361_s30 = sadd.s32 4294967294, %s3810_s28   ;;  %s3810_s28 = sphi %s3864_s28, %s20_s28   ;;  %s3806_s27 = sphi %s3862_s27, %s5222_s27   ;;  %s3802_s26 = sphi %s3860_s26, %s5221_s26   ;;  %s3798_s25 = sphi %s3858_s25, %s5220_s25   ;;  %s3794_s24 = sphi %s3856_s24, %s5219_s24   ;;  %s3790_s23 = sphi %s3854_s23, %s5218_s23   ;;  %s3786_s22 = sphi %s3852_s22, %s5217_s22   ;;  %s3782_s21 = sphi %s3850_s21, %s5216_s21  }
   0x6   : > { %s29_s7 = sadd.s32 1, %s3802_s26  ;;  %s32_s8 = sadd.s32 1, %s3806_s27 }
   0x7   : > { %p30_p0 = scmp.ge.s32.totalorder %s29_s7, 2  ;;  %p229_p1 = scmp.ne.s32.totalorder %s3790_s23, %s3786_s22 }
   0x8   : > { %p230_p2 = scmp.eq.s32.totalorder %s3360_s29, 3  ;;  %p235_p5 = scmp.ne.s32.totalorder %s3786_s22, %s3782_s21 }
   0x9   : > { %s5224_s7 = smov (%p30_p0, %s29_s7), 0  ;;  %s5226_s8 = smov (!%p30_p0, %s32_s8), %s3806_s27 }
   0xa   : > { %5197 = sst [smem:[#allocation7_spill]] %s5224_s7  ;;  %s215_s9 = ssub.s32 %s3802_s26, %s5224_s7 }
   0xb   : > { %p3901_p3 = por %p230_p2, %p229_p1  ;;  %p34_p4 = scmp.ge.s32.totalorder %s5226_s8, 2 }
   0xc   : > { %p236_p6 = scmp.eq.s32.totalorder %s3361_s30, 3  ;;  %p3370_p7 = scmp.ge.s32.totalorder %s3810_s28, 1 }
   0xd   : > { %s5228_s8 = smov (%p34_p4, %s5226_s8), 0  ;;  %p322_p9 = scmp.lt.s32.totalorder %s3810_s28, 5 }
   0xe   : > { %5199 = sst [smem:[#allocation8_spill]] %s5228_s8  ;;  %p3910_p8 = por %p236_p6, %p235_p5 }
   0xf   : > { %s214_s12 = ssub.s32 %s3806_s27, %s5228_s8  ;;  %s219_s13 = sadd.s32 1, %s3790_s23 }
  0x10   : > { %s216_s14 = sor.u32 %s215_s9, %s214_s12  ;;  %p323_p10 = pnand %p3370_p7, %p322_p9 }
  0x11   : > { %p217_p11 = scmp.eq.s32.totalorder %s216_s14, 0  ;;  %s3922_s16 = sshll.u32 (!%p323_p10), %s3794_s24, 3 }
  0x12   : > { %326 = sbr.rel (%p323_p10) target bundleno = 681 (0x2a9), region = 40  ;;  %p398_p12 = scmp.lt.s32.totalorder (!%p323_p10), %s3798_s25, 1 }
  0x13   : > { %s3919_s15 = scalar_select %p217_p11, %s3790_s23, %s219_s13  }
  0x14   : > { %p400_p13 = scmp.lt.s32.totalorder (!%p323_p10), %s3922_s16, 15  ;;  %s3377_s29 = sadd.s32 (!%p323_p10), 4294967295, %s3922_s16 }
  0x15   : > { %s410_s9 = sshra.s32 (!%p323_p10), %s3377_s29, 31  ;;  %s3812_s14 = smov (!%p323_p10), 8  }
  0x16   : > { %s411_s13 = sadd.s32 (!%p323_p10), %s3377_s29, %s410_s9 }
  0x17   : > { %s399_s17 = scalar_select %p398_p12, %s3798_s25, 1  ;;  %vm526_vm0 = vsmask.f32 256  ;;  %vm527_vm1 = vsmask.f32 4368  ;;  %vm690_vm2 = vcmask 27648  }
  0x18   : > { %s401_s18 = scalar_select %p400_p13, %s3922_s16, 15  ;;  %vm691_vm3 = vsmask.f32 7938  ;;  %vm698_vm4 = vcmask 24576   ;;  %vm3950_vm5 = vmor %vm526_vm0, %vm527_vm1  ;;  %vm1348_vm6 = vcmask 1042432   ;;  %vm1349_vm7 = vcmask 1046532  }
  0x19   : > { %s3928_s19 = sshll.u32 %s399_s17, 5  ;;  %s412_s17 = sxor.u32 %s411_s13, %s410_s9  ;;  %vm3956_vm8 = vmand %vm690_vm2, %vm691_vm3  ;;  %v717_v26 = vld [vmem:[#allocation2 + $0x30] sm:$0xf]  ;;  %v724_v35 = vld [vmem:[#allocation2 + $0x3c] sm:$0xf]  ;;  %vm1283_vm15 = vcmask 60448  }
  0x1a   : > { %s3373_s20 = sshll.u32 %s401_s18, 1  ;;  %p415_p0 = scmp.lt.s32.totalorder %s412_s17, 15  ;;  %vm3965_vm9 = vmand %vm698_vm4, %vm526_vm0  ;;  %v693_v41 = vld [vmem:[#allocation2 + $0xc] sm:$0xf]  ;;  %v721_v48 = vld [vmem:[#allocation2 + $0x38] sm:$0x1] }
  0x1b   : > { %s3932_s30 = sadd.s32 %s3928_s19, %s3373_s20  ;;  %v728_v55 = vld [vmem:[#allocation2 + $0x44] sm:$0x1]  ;;  %vm4000_vm10 = vmor %vm1348_vm6, %vm1349_vm7  ;;  %vm1040_vm12 = vsmask.f32 3328  ;;  %vm1041_vm13 = vsmask.f32 7440 }
  0x1c   : > { %s3375_s12 = sshll.u32 %s3932_s30, 3  ;;  %s5230_s17 = smov (!%p415_p0, %s412_s17), 15  ;;  %vm4011_vm11 = vmand %vm698_vm4, %vm691_vm3  ;;  %vm1455_vm0 = vcmask 93248   ;;  %vm2059_vm1 = vcmask 1045504   ;;  %vm2034_vm3 = vcmask 97280   ;;  %vm3145_vm4 = vcmask 1040384  }
  0x1d   : > { %s3940_s7 = scalar_lea.vmem %s5188_s0, %s3375_s12  ;;  %s3378_s8 = sshll.u32 %s5230_s17, 1  ;;  %vm4133_vm14 = vmor %vm1040_vm12, %vm1041_vm13 }
  0x1e   : > { %v468_v0 = vld [vmem:[%s3940_s7 + $0x30] sm:$0xff]  ;;  %v469_v1 = vld [vmem:[%s3940_s7 + $0x38] sm:$0xff]  ;;  %v470_v2 = vld [vmem:[%s3940_s7 + $0x40] sm:$0xff]  ;;  %s3961_s18 = sadd.s32 %s3378_s8, %s3928_s19  ;;  %s3813_s17 = smov 4  }
  0x1f   : > { %v3526_v3 = vpack.c.bf16 %v468_v0, %v468_v0  ;;  %v3527_v4 = vpack.c.bf16 %v469_v1, %v469_v1  ;;  %v471_v5 = vld [vmem:[%s3940_s7 + $0x48] sm:$0xff]  ;;  %v3528_v6 = vpack.c.bf16 %v470_v2, %v470_v2  ;;  %v462_v7 = vld [vmem:[%s3940_s7] sm:$0xff]  ;;  %v472_v42 = vld [vmem:[%s3940_s7 + $0x50] sm:$0xff]  ;;  %s3380_s20 = sshll.u32 %s3961_s18, 3  ;;  %s394_s30 = sand.u32 1, %s3786_s22  }
  0x20   : > { %v463_v8 = vld [vmem:[%s3940_s7 + $0x8] sm:$0xff]  ;;  %v3529_v9 = vpack.c.bf16 %v471_v5, %v471_v5  ;;  %v3520_v10 = vpack.c.bf16 %v462_v7, %v462_v7  ;;  %v473_v43 = vld [vmem:[%s3940_s7 + $0x58] sm:$0xff]  ;;  %v474_v49 = vld [vmem:[%s3940_s7 + $0x60] sm:$0xff]  ;;  %v3530_v57 = vpack.c.bf16 %v472_v42, %v472_v42  ;;  %s421_s13 = scalar_lea.vmem %s5189_s1, %s3380_s20 }
  0x21   : > { %v3521_v11 = vpack.c.bf16 %v463_v8, %v463_v8  ;;  %v581_v12 = vshrl.u32 %v3526_v3, 16  ;;  %v584_v13 = vshll.u32 %v3526_v3, 16  ;;  %v589_v14 = vshrl.u32 %v3527_v4, 16  ;;  %v475_v50 = vld [vmem:[%s3940_s7 + $0x68] sm:$0xff]  ;;  %v700_v8 = vld [vmem:[#allocation2 + $0x14] sm:$0x1] }
  0x22   : > { %v592_v15 = vshll.u32 %v3527_v4, 16  ;;  %v598_v16 = vshrl.u32 %v3528_v6, 16  ;;  %v601_v17 = vshll.u32 %v3528_v6, 16  ;;  %v606_v18 = vshrl.u32 %v3529_v9, 16 }
  0x23   : > { %v609_v19 = vshll.u32 %v3529_v9, 16  ;;  %v583_v21 = vrot.slane %v581_v12, 7  ;;  %v591_v22 = vrot.slane %v589_v14, 7  ;;  %v530_v23 = vshrl.u32 %v3520_v10, 16  ;;  %v752_v12 = vld [vmem:[%s421_s13] sm:$0xff] }
  0x24   : > { %v533_v24 = vshll.u32 %v3520_v10, 16  ;;  %v600_v27 = vrot.slane %v598_v16, 7  ;;  %v608_v28 = vrot.slane %v606_v18, 7  ;;  %v538_v29 = vshrl.u32 %v3521_v11, 16  ;;  %v731_v14 = vld [vmem:[#allocation2 + $0x48] sm:$0xf] }
  0x25   : > { %v541_v30 = vshll.u32 %v3521_v11, 16  ;;  %v586_v31 = vor.u32 %v584_v13, %v583_v21  ;;  %v587_v32 = vrot.slane %v583_v21, 4  ;;  %v594_v33 = vor.u32 %v592_v15, %v591_v22  ;;  %v753_v18 = vld [vmem:[%s421_s13 + $0x8] sm:$0xff] }
  0x26   : > { %v532_v36 = vrot.slane %v530_v23, 7  ;;  %v603_v37 = vor.u32 %v601_v17, %v600_v27  ;;  %v604_v38 = vrot.slane %v600_v27, 4  ;;  %v611_v39 = vor.u32 %v609_v19, %v608_v28 }
  0x27   : > { %v540_v40 = vrot.slane %v538_v29, 7  ;;  %v595_v44 = vsel %vm3950_vm5, %v587_v32, %v594_v33  ;;  %v718_v45 = vsel %vm3956_vm8, %v586_v31, %v717_v26  ;;  %v596_v54 = vrot.slane %v591_v22, 4  ;;  %v738_v33 = vld [vmem:[#allocation2 + $0x54] sm:$0xf] }
  0x28   : > { %v535_v46 = vor.u32 %v533_v24, %v532_v36  ;;  %v536_v47 = vrot.slane %v532_v36, 4  ;;  %719 = vst [vmem:[#allocation2 + $0x30] sm:$0xf] %v718_v45  ;;  %720 = vst.msk [vmem:[#allocation2 + $0x34] sm:$0xf] %vm690_vm2, %v595_v44  ;;  %v612_v51 = vsel %vm3950_vm5, %v604_v38, %v611_v39  ;;  %v725_v52 = vsel %vm3956_vm8, %v603_v37, %v724_v35 }
  0x29   : > { %v543_v53 = vor.u32 %v541_v30, %v540_v40  ;;  %726 = vst [vmem:[#allocation2 + $0x3c] sm:$0xf] %v725_v52  ;;  %727 = vst.msk [vmem:[#allocation2 + $0x40] sm:$0xf] %vm690_vm2, %v612_v51  ;;  %v3531_v58 = vpack.c.bf16 %v473_v43, %v473_v43  ;;  %v613_v59 = vrot.slane %v608_v28, 4  ;;  %v722_v61 = vsel %vm3965_vm9, %v596_v54, %v721_v48 }
  0x2a   : > { %v694_v56 = vsel %vm3956_vm8, %v535_v46, %v693_v41  ;;  %v3532_v62 = vpack.c.bf16 %v474_v49, %v474_v49  ;;  %v3533_v63 = vpack.c.bf16 %v475_v50, %v475_v50  ;;  %723 = vst [vmem:[#allocation2 + $0x38] sm:$0x1] %v722_v61  ;;  %v615_v0 = vshrl.u32 %v3530_v57, 16 }
  0x2b   : > { %v544_v60 = vsel %vm3950_vm5, %v536_v47, %v543_v53  ;;  %695 = vst [vmem:[#allocation2 + $0xc] sm:$0xf] %v694_v56  ;;  %v618_v1 = vshll.u32 %v3530_v57, 16  ;;  %v623_v2 = vshrl.u32 %v3531_v58, 16  ;;  %v626_v3 = vshll.u32 %v3531_v58, 16 }
  0x2c   : > { %697 = vst.msk [vmem:[#allocation2 + $0x10] sm:$0xf] %vm690_vm2, %v544_v60  ;;  %v729_v4 = vsel %vm3965_vm9, %v613_v59, %v728_v55  ;;  %v632_v5 = vshrl.u32 %v3532_v62, 16  ;;  %v635_v6 = vshll.u32 %v3532_v62, 16  ;;  %v640_v7 = vshrl.u32 %v3533_v63, 16 }
  0x2d   : > { %v617_v9 = vrot.slane %v615_v0, 7  ;;  %v3996_v10 = vrot.slane %v623_v2, 7  ;;  %730 = vst [vmem:[#allocation2 + $0x44] sm:$0x1] %v729_v4  ;;  %v545_v11 = vrot.slane %v540_v40, 4  ;;  %v643_v17 = vshll.u32 %v3533_v63, 16 }
  0x2e   : > { %v634_v15 = vrot.slane %v632_v5, 7  ;;  %v4004_v16 = vrot.slane %v640_v7, 7  ;;  %v3536_v35 = vpack.c.bf16 %v752_v12, %v752_v12  ;;  %v3537_v52 = vpack.c.bf16 %v753_v18, %v753_v18  ;;  %v735_v4 = vld [vmem:[#allocation2 + $0x50] sm:$0x1]  ;;  %v780_v18 = vld [vmem:[#allocation2] sm:$0xf] }
  0x2f   : > { %v1312_v19 = vld [vmem:[#allocation2 + $0x30] sm:$0xe]  ;;  %v1313_v21 = vld [vmem:[#allocation2 + $0x34] sm:$0xf]  ;;  %v620_v23 = vor.u32 %v618_v1, %v617_v9  ;;  %v628_v24 = vor.u32 %v626_v3, %v3996_v10  ;;  %v701_v26 = vsel %vm3965_vm9, %v545_v11, %v700_v8  ;;  %v621_v40 = vrot.slane %v617_v9, 4 }
  0x30   : > { %v907_v22 = vld [vmem:[#allocation2 + $0x34] sm:$0x8]  ;;  %v3433_v28 = vrot.slane %v1312_v19, 9  ;;  %v1381_v29 = vrot.slane %v1313_v21, 5  ;;  %v1315_v30 = vld [vmem:[#allocation2 + $0x3c] sm:$0xe]  ;;  %v637_v32 = vor.u32 %v635_v6, %v634_v15  ;;  %v645_v46 = vor.u32 %v643_v17, %v4004_v16 }
  0x31   : > { %v4015_v31 = vld [vmem:[#allocation2 + $0x40] sm:$0xf]  ;;  %702 = vst [vmem:[#allocation2 + $0x14] sm:$0x1] %v701_v26  ;;  %v3434_v36 = vrot.slane %v1315_v30, 9  ;;  %v3423_v39 = vrot.slane %v907_v22, 11  ;;  %v732_v45 = vsel %vm3956_vm8, %v620_v23, %v731_v14  ;;  %v629_v49 = vsel %vm3950_vm5, %v621_v40, %v628_v24 }
  0x32   : > { %v1388_v37 = vrot.slane %v4015_v31, 5  ;;  %v1303_v38 = vld [vmem:[#allocation2 + $0xc] sm:$0xe]  ;;  %v1382_v41 = vsel %vm4000_vm10, %v3433_v28, %v1381_v29  ;;  %v966_v44 = vld [vmem:[#allocation2 + $0x38] sm:$0x1]  ;;  %v4035_v54 = vrot.slane %v1381_v29, 4  ;;  %v739_v60 = vsel %vm3956_vm8, %v637_v32, %v738_v33 }
  0x33   : > { %v4020_v42 = vld [vmem:[#allocation2 + $0x10] sm:$0xf]  ;;  %v3430_v43 = vrot.slane %v1303_v38, 9  ;;  %1423 = vrot.lane.b32.xlu0 %v1382_v41, %s3812_s14  ;;  %v967_v48 = vsel %vm4011_vm11, %v3423_v39, %v966_v44  ;;  %733 = vst [vmem:[#allocation2 + $0x48] sm:$0xf] %v732_v45  ;;  %v638_v57 = vrot.slane %v634_v15, 4 }
  0x34   : > { %v1360_v47 = vrot.slane %v4020_v42, 5  ;;  %v908_v50 = vld [vmem:[#allocation2 + $0x40] sm:$0x8]  ;;  %v904_v51 = vld [vmem:[#allocation2 + $0x10] sm:$0x8]  ;;  %v1389_v53 = vsel %vm4000_vm10, %v3434_v36, %v1388_v37  ;;  %v647_v59 = vrot.slane %v4004_v16, 4 }
  0x35   : > { %968 = vst [vmem:[#allocation2 + $0x38] sm:$0x1] %v967_v48  ;;  %734 = vst.msk [vmem:[#allocation2 + $0x4c] sm:$0xf] %vm690_vm2, %v629_v49  ;;  %v3424_v55 = vrot.slane %v908_v50, 11  ;;  %v3420_v61 = vrot.slane %v904_v51, 11  ;;  %v646_v1 = vsel %vm3950_vm5, %v638_v57, %v645_v46 }
  0x36   : > { %v969_v56 = vld [vmem:[#allocation2 + $0x44] sm:$0x1]  ;;  %v1361_v58 = vsel %vm4000_vm10, %v3430_v43, %v1360_v47  ;;  %v1029_v62 = vld [vmem:[#allocation2 + $0x34] sm:$0xf]  ;;  %v1032_v63 = vld [vmem:[#allocation2 + $0x40] sm:$0xf] }
  0x37   : > { %v970_v0 = vsel %vm4011_vm11, %v3424_v55, %v969_v56  ;;  %740 = vst [vmem:[#allocation2 + $0x54] sm:$0xf] %v739_v60  ;;  %v761_v2 = vshrl.u32 %v3536_v35, 16  ;;  %v764_v3 = vshll.u32 %v3536_v35, 16  ;;  %1427 = vrot.lane.b32.xlu0 %v1389_v53, %s3812_s14  ;;  %741 = vst.msk [vmem:[#allocation2 + $0x58] sm:$0xf] %vm690_vm2, %v646_v1 }
  0x38   : > { %971 = vst [vmem:[#allocation2 + $0x44] sm:$0x1] %v970_v0  ;;  %v957_v5 = vld [vmem:[#allocation2 + $0x14] sm:$0x1]  ;;  %v769_v6 = vshrl.u32 %v3537_v52, 16  ;;  %v772_v7 = vshll.u32 %v3537_v52, 16 }
  0x39   : > { %v630_v8 = vrot.slane %v3996_v10, 4  ;;  %v1149_v9 = vshll.u32 %v1029_v62, 16  ;;  %v958_v11 = vsel %vm4011_vm11, %v3420_v61, %v957_v5  ;;  %v763_v12 = vrot.slane %v761_v2, 7  ;;  %v742_v16 = vld [vmem:[#allocation2 + $0x5c] sm:$0x1]  ;;  %v464_v55 = vld [vmem:[%s3940_s7 + $0x10] sm:$0xff] }
  0x3a   : > { %v1153_v14 = vshrl.u32 %v1029_v62, 16  ;;  %v1173_v15 = vshll.u32 %v1032_v63, 16  ;;  %959 = vst [vmem:[#allocation2 + $0x14] sm:$0x1] %v958_v11  ;;  %v4054_v17 = vrot.slane %v769_v6, 7  ;;  %v1177_v22 = vshrl.u32 %v1032_v63, 16 }
  0x3b   : > { %v736_v19 = vsel %vm3965_vm9, %v630_v8, %v735_v4  ;;  %v4058_v21 = vrot.slane %v1149_v9, 5  ;;  %v1318_v23 = vld [vmem:[#allocation2 + $0x48] sm:$0xe]  ;;  %v766_v10 = vor.u32 %v764_v3, %v763_v12  ;;  %v767_v24 = vrot.slane %v763_v12, 4  ;;  %1411 = vrot.lane.b32.xlu0 %v1361_v58, %s3812_s14  ;;  %v827_v36 = vld [vmem:[#allocation2 + $0x30] sm:$0x2] }
  0x3c   : > { %737 = vst [vmem:[#allocation2 + $0x50] sm:$0x1] %v736_v19  ;;  %v1155_v26 = vrot.slane %v1153_v14, 4  ;;  %v4060_v28 = vrot.slane %v1173_v15, 5  ;;  %v1314_v29 = vld [vmem:[#allocation2 + $0x38] sm:$0x1]  ;;  %v774_v33 = vor.u32 %v772_v7, %v4054_v17  ;;  %v743_v38 = vsel %vm3965_vm9, %v647_v59, %v742_v16 }
  0x3d   : > { %v4063_v30 = vld [vmem:[#allocation2 + $0x4c] sm:$0xf]  ;;  %v3435_v32 = vrot.slane %v1318_v23, 9  ;;  %v1179_v35 = vrot.slane %v1177_v22, 4  ;;  %v1384_v39 = vrot.slane %v1314_v29, 5  ;;  %v781_v41 = vsel %vm3956_vm8, %v766_v10, %v780_v18 }
  0x3e   : > { %v1395_v40 = vrot.slane %v4063_v30, 5  ;;  %v909_v43 = vld [vmem:[#allocation2 + $0x4c] sm:$0x8]  ;;  %v1030_v44 = vld [vmem:[#allocation2 + $0x38] sm:$0x1]  ;;  %v1156_v45 = vor.u32 %v1155_v26, %v4058_v21  ;;  %v1390_v46 = vrot.slane %v1388_v37, 4  ;;  %v775_v49 = vsel %vm3950_vm5, %v767_v24, %v774_v33 }
  0x3f   : > { %744 = vst [vmem:[#allocation2 + $0x5c] sm:$0x1] %v743_v38  ;;  %v1321_v48 = vld [vmem:[#allocation2 + $0x54] sm:$0xe]  ;;  %782 = vst [vmem:[#allocation2] sm:$0xf] %v781_v41  ;;  %v1180_v51 = vor.u32 %v1179_v35, %v4060_v28  ;;  %v1385_v56 = vsel %vm4000_vm10, %v4035_v54, %v1384_v39  ;;  %v4109_v18 = vpack.c.bf16 %v464_v55, %v464_v55 }
  0x40   : > { %v1159_v50 = vshll.u32 %v1030_v44, 16  ;;  %v885_v52 = vld [vmem:[#allocation2 + $0x30] sm:$0x1]  ;;  %v1396_v31 = vsel %vm4000_vm10, %v3435_v32, %v1395_v40  ;;  %v1317_v37 = vld [vmem:[#allocation2 + $0x44] sm:$0x1]  ;;  %v3436_v58 = vrot.slane %v1321_v48, 9  ;;  %1425 = vrot.lane.b32.xlu1 %v1385_v56, %s3812_s14 }
  0x41   : > { %v1020_v53 = vld [vmem:[#allocation2 + $0x10] sm:$0xf]  ;;  %v4085_v57 = vld [vmem:[#allocation2 + $0x58] sm:$0xf]  ;;  %783 = vst.msk [vmem:[#allocation2 + $0x4] sm:$0xf] %vm690_vm2, %v775_v49  ;;  %1431 = vrot.lane.b32.xlu0 %v1396_v31, %s3812_s14 }
  0x42   : > { %v3425_v59 = vrot.slane %v909_v43, 11  ;;  %v824_v60 = vld [vmem:[#allocation2 + $0xc] sm:$0x2]  ;;  %v1391_v61 = vrot.slane %v1317_v37, 5  ;;  %v1402_v54 = vrot.slane %v4085_v57, 5  ;;  %v1362_v62 = vrot.slane %v1360_v47, 4 }
  0x43   : > { %v4093_v63 = vrot.slane %v1156_v45, 4  ;;  %v1033_v0 = vld [vmem:[#allocation2 + $0x44] sm:$0x1]  ;;  %v1305_v1 = vld [vmem:[#allocation2 + $0x14] sm:$0x1]  ;;  %v4095_v2 = vrot.slane %v1159_v50, 5 }
  0x44   : > { %v1183_v3 = vshll.u32 %v1033_v0, 16  ;;  %v3413_v4 = vrot.slane %v827_v36, 9  ;;  %v1077_v5 = vshll.u32 %v1020_v53, 16  ;;  %v1392_v6 = vsel %vm4000_vm10, %v1390_v46, %v1391_v61  ;;  %v972_v42 = vld [vmem:[#allocation2 + $0x50] sm:$0x1] }
  0x45   : > { %v1403_v7 = vsel %vm4000_vm10, %v3436_v58, %v1402_v54  ;;  %v1363_v8 = vrot.slane %v1305_v1, 5  ;;  %v4103_v47 = vrot.slane %v1180_v51, 4  ;;  %v876_v9 = vld [vmem:[#allocation2 + $0xc] sm:$0x1]  ;;  %v973_v11 = vsel %vm4011_vm11, %v3425_v59, %v972_v42  ;;  %v1021_v14 = vld [vmem:[#allocation2 + $0x14] sm:$0x1]  ;;  %1429 = vrot.lane.b32.xlu1 %v1392_v6, %s3812_s14 }
  0x46   : > { %v886_v12 = vsel %vm3965_vm9, %v3413_v4, %v885_v52  ;;  %v1035_v15 = vld [vmem:[#allocation2 + $0x4c] sm:$0xf]  ;;  %v829_v16 = vld [vmem:[#allocation2 + $0x48] sm:$0x2]  ;;  %1435 = vrot.lane.b32.xlu0 %v1403_v7, %s3812_s14  ;;  %974 = vst [vmem:[#allocation2 + $0x50] sm:$0x1] %v973_v11  ;;  %v1162_v4 = vsel %vm4133_vm14, %v4093_v63, %v4095_v2 }
  0x47   : > { %v4113_v19 = vrot.slane %v1183_v3, 5  ;;  %887 = vst [vmem:[#allocation2 + $0x30] sm:$0x1] %v886_v12  ;;  %v4115_v22 = vrot.slane %v1077_v5, 5  ;;  %v1081_v23 = vshrl.u32 %v1020_v53, 16  ;;  %v3410_v10 = vrot.slane %v824_v60, 9 }
  0x48   : > { %v891_v24 = vld [vmem:[#allocation2 + $0x48] sm:$0x1]  ;;  %v1364_v26 = vsel %vm4000_vm10, %v1362_v62, %v1363_v8  ;;  %v1300_v29 = vld [vmem:[#allocation2] sm:$0xe]  ;;  %v1197_v32 = vshll.u32 %v1035_v15, 16  ;;  %v1201_v33 = vshrl.u32 %v1035_v15, 16 }
  0x49   : > { %v3415_v35 = vrot.slane %v829_v16, 9  ;;  %v4119_v36 = vld [vmem:[#allocation2 + $0x4] sm:$0xf]  ;;  %v3429_v38 = vrot.slane %v1300_v29, 9  ;;  %v1083_v39 = vrot.slane %v1081_v23, 4  ;;  %v1087_v41 = vshll.u32 %v1021_v14, 16  ;;  %1413 = vrot.lane.b32.xlu1 %v1364_v26, %s3812_s14 }
  0x4a   : > { %v877_v43 = vsel %vm3965_vm9, %v3410_v10, %v876_v9  ;;  %v1353_v44 = vrot.slane %v4119_v36, 5  ;;  %v4124_v45 = vrot.slane %v1197_v32, 5  ;;  %v1203_v46 = vrot.slane %v1201_v33, 4  ;;  %v910_v49 = vld [vmem:[#allocation2 + $0x58] sm:$0x8] }
  0x4b   : > { %878 = vst [vmem:[#allocation2 + $0xc] sm:$0x1] %v877_v43  ;;  %v892_v48 = vsel %vm3965_vm9, %v3415_v35, %v891_v24  ;;  %v1397_v50 = vrot.slane %v1395_v40, 4  ;;  %v1084_v52 = vor.u32 %v1083_v39, %v4115_v22  ;;  %v3426_v53 = vrot.slane %v910_v49, 11  ;;  %v975_v55 = vld [vmem:[#allocation2 + $0x5c] sm:$0x1] }
  0x4c   : > { %893 = vst [vmem:[#allocation2 + $0x48] sm:$0x1] %v892_v48  ;;  %v1038_v56 = vld [vmem:[#allocation2 + $0x58] sm:$0xf]  ;;  %v1354_v31 = vsel %vm4000_vm10, %v3429_v38, %v1353_v44  ;;  %v830_v40 = vld [vmem:[#allocation2 + $0x54] sm:$0x2]  ;;  %v1186_v5 = vsel %vm4133_vm14, %v4103_v47, %v4113_v19  ;;  %v1204_v8 = vor.u32 %v1203_v46, %v4124_v45 }
  0x4d   : > { %v1221_v37 = vshll.u32 %v1038_v56, 16  ;;  %v1225_v30 = vshrl.u32 %v1038_v56, 16  ;;  %v465_v58 = vld [vmem:[%s3940_s7 + $0x18] sm:$0xff]  ;;  %v547_v59 = vshrl.u32 %v4109_v18, 16  ;;  %1407 = vrot.lane.b32.xlu0 %v1354_v31, %s3812_s14  ;;  %v4145_v60 = vrot.slane %v1084_v52, 4 }
  0x4e   : > { %v4147_v61 = vrot.slane %v1087_v41, 5  ;;  %v976_v62 = vsel %vm4011_vm11, %v3426_v53, %v975_v55  ;;  %v3416_v0 = vrot.slane %v830_v40, 9  ;;  %v894_v1 = vld [vmem:[#allocation2 + $0x54] sm:$0x1]  ;;  %v1320_v3 = vld [vmem:[#allocation2 + $0x50] sm:$0x1]  ;;  %v3523_v12 = vpack.c.bf16 %v465_v58, %v465_v58 }
  0x4f   : > { %v1028_v6 = vld [vmem:[#allocation2 + $0x30] sm:$0xf]  ;;  %977 = vst [vmem:[#allocation2 + $0x5c] sm:$0x1] %v976_v62  ;;  %v1398_v42 = vrot.slane %v1320_v3, 5  ;;  %v4160_v15 = vrot.slane %v1221_v37, 5 }
  0x50   : > { %v1036_v7 = vld [vmem:[#allocation2 + $0x50] sm:$0x1]  ;;  %v1140_v9 = vshrl.u32 %v1028_v6, 16  ;;  %v1143_v11 = vshll.u32 %v1028_v6, 16  ;;  %v1227_v16 = vrot.slane %v1225_v30, 4  ;;  %v549_v23 = vrot.slane %v547_v59, 7 }
  0x51   : > { %v1207_v14 = vshll.u32 %v1036_v7, 16  ;;  %v1399_v63 = vsel %vm4000_vm10, %v1397_v50, %v1398_v42  ;;  %1253 = vrot.lane.b32.xlu0 %v1162_v4, %s3813_s17  ;;  %v895_v10 = vsel %vm3965_vm9, %v3416_v0, %v894_v1  ;;  %v1090_v24 = vsel %vm4133_vm14, %v4145_v60, %v4147_v61  ;;  %v784_v58 = vld [vmem:[#allocation2 + $0x8] sm:$0x1]  ;;  %v707_v3 = vld [vmem:[#allocation2 + $0x20] sm:$0x1] }
  0x52   : > { %v1142_v2 = vrot.slane %v1140_v9, 4  ;;  %v1145_v47 = vrot.slane %v1143_v11, 5  ;;  %v1019_v19 = vld [vmem:[#allocation2 + $0xc] sm:$0xf]  ;;  %1433 = vrot.lane.b32.xlu1 %v1399_v63, %s3812_s14  ;;  %v4172_v32 = vrot.slane %v1204_v8, 4  ;;  %v1228_v48 = vor.u32 %v1227_v16, %v4160_v15  ;;  %v466_v16 = vld [vmem:[%s3940_s7 + $0x20] sm:$0xff] }
  0x53   : > { %v1068_v26 = vshrl.u32 %v1019_v19, 16  ;;  %v1071_v29 = vshll.u32 %v1019_v19, 16  ;;  %v1034_v33 = vld [vmem:[#allocation2 + $0x48] sm:$0xf]  ;;  %896 = vst [vmem:[#allocation2 + $0x54] sm:$0x1] %v895_v10 }
  0x54   : > { %v1146_v35 = vor.u32 %v1145_v47, %v1142_v2  ;;  %v1209_v38 = vrot.slane %v1207_v14, 5  ;;  %v1188_v39 = vshrl.u32 %v1034_v33, 16  ;;  %v1191_v41 = vshll.u32 %v1034_v33, 16  ;;  %v828_v14 = vld [vmem:[#allocation2 + $0x3c] sm:$0x2] }
  0x55   : > { %v1070_v43 = vrot.slane %v1068_v26, 4  ;;  %v1073_v46 = vrot.slane %v1071_v29, 5  ;;  %v553_v49 = vrot.slane %v549_v23, 4  ;;  %v555_v56 = vshrl.u32 %v3523_v12, 16  ;;  %v903_v19 = vld [vmem:[#allocation2 + $0x4] sm:$0x8] }
  0x56   : > { %v1147_v50 = vrot.slane %v1146_v35, 4  ;;  %v1190_v52 = vrot.slane %v1188_v39, 4  ;;  %v1193_v53 = vrot.slane %v1191_v41, 5  ;;  %v1039_v55 = vld [vmem:[#allocation2 + $0x5c] sm:$0x1]  ;;  %1257 = vrot.lane.b32.xlu1 %v1186_v5, %s3813_s17  ;;  %v558_v30 = vshll.u32 %v3523_v12, 16 }
  0x57   : > { %v1074_v31 = vor.u32 %v1073_v46, %v1070_v43  ;;  %v1231_v37 = vshll.u32 %v1039_v55, 16  ;;  %v550_v40 = vshll.u32 %v4109_v18, 16  ;;  %v557_v61 = vrot.slane %v555_v56, 7  ;;  %v703_v18 = vld [vmem:[#allocation2 + $0x18] sm:$0xf] }
  0x58   : > { %v1152_v59 = vsel %vm4133_vm14, %v1147_v50, %v4058_v21  ;;  %v1194_v60 = vor.u32 %v1193_v53, %v1190_v52  ;;  %v776_v62 = vrot.slane %v4054_v17, 4  ;;  %v1210_v1 = vsel %vm4133_vm14, %v4172_v32, %v1209_v38  ;;  %v823_v17 = vld [vmem:[#allocation2] sm:$0x2]  ;;  %v873_v10 = vld [vmem:[#allocation2] sm:$0x1] }
  0x59   : > { %1251 = vrot.lane.b32.xlu0 %v1152_v59, %s3813_s17  ;;  %v1075_v0 = vrot.slane %v1074_v31, 4  ;;  %v552_v4 = vor.u32 %v550_v40, %v549_v23  ;;  %v560_v7 = vor.u32 %v558_v30, %v557_v61  ;;  %v562_v8 = vrot.slane %v557_v61, 4  ;;  %v888_v32 = vld [vmem:[#allocation2 + $0x3c] sm:$0x1]  ;;  %v1496_v13 = vld [vmem:[#allocation2 + $0x30] sm:$0xf] }
  0x5a   : > { %v1195_v5 = vrot.slane %v1194_v60, 4  ;;  %v1037_v6 = vld [vmem:[#allocation2 + $0x54] sm:$0xf]  ;;  %v785_v21 = vsel %vm3965_vm9, %v776_v62, %v784_v58  ;;  %1241 = vrot.lane.b32.xlu1 %v1090_v24, %s3813_s17  ;;  %v1229_v9 = vrot.slane %v1228_v48, 4  ;;  %v1233_v23 = vrot.slane %v1231_v37, 5  ;;  %v467_v24 = vld [vmem:[%s3940_s7 + $0x28] sm:$0xff] }
  0x5b   : > { %v1080_v42 = vsel %vm4133_vm14, %v1075_v0, %v4115_v22  ;;  %v1212_v11 = vshrl.u32 %v1037_v6, 16  ;;  %v1215_v12 = vshll.u32 %v1037_v6, 16  ;;  %786 = vst [vmem:[#allocation2 + $0x8] sm:$0x1] %v785_v21  ;;  %v561_v63 = vsel %vm3950_vm5, %v553_v49, %v560_v7  ;;  %v2377_v34 = vld [vmem:[#allocation2 + $0x54] sm:$0xf] }
  0x5c   : > { %v708_v2 = vsel %vm3965_vm9, %v562_v8, %v707_v3  ;;  %v704_v47 = vsel %vm3956_vm8, %v552_v4, %v703_v18  ;;  %706 = vst.msk [vmem:[#allocation2 + $0x1c] sm:$0xf] %vm690_vm2, %v561_v63  ;;  %v3409_v29 = vrot.slane %v823_v17, 9  ;;  %v1200_v33 = vsel %vm4133_vm14, %v1195_v5, %v4124_v45  ;;  %v1017_v8 = vld [vmem:[#allocation2 + $0x4] sm:$0xf] }
  0x5d   : > { %1239 = vrot.lane.b32.xlu0 %v1080_v42, %s3813_s17  ;;  %v1214_v22 = vrot.slane %v1212_v11, 4  ;;  %v1217_v26 = vrot.slane %v1215_v12, 5  ;;  %709 = vst [vmem:[#allocation2 + $0x20] sm:$0x1] %v708_v2  ;;  %705 = vst [vmem:[#allocation2 + $0x18] sm:$0xf] %v704_v47  ;;  %v3524_v38 = vpack.c.bf16 %v466_v16, %v466_v16  ;;  %v3525_v46 = vpack.c.bf16 %v467_v24, %v467_v24 }
  0x5e   : > { %v3414_v35 = vrot.slane %v828_v14, 9  ;;  %1261 = vrot.lane.b32.xlu1 %v1210_v1, %s3813_s17  ;;  %v3419_v41 = vrot.slane %v903_v19, 11  ;;  %v874_v43 = vsel %vm3965_vm9, %v3409_v29, %v873_v10  ;;  %v1234_v48 = vsel %vm4133_vm14, %v1229_v9, %v1233_v23  ;;  %v714_v14 = vld [vmem:[#allocation2 + $0x2c] sm:$0x1]  ;;  %v710_v47 = vld [vmem:[#allocation2 + $0x24] sm:$0xf] }
  0x5f   : > { %v1218_v39 = vor.u32 %v1217_v26, %v1214_v22  ;;  %875 = vst [vmem:[#allocation2] sm:$0x1] %v874_v43  ;;  %v564_v55 = vshrl.u32 %v3524_v38, 16  ;;  %v572_v56 = vshrl.u32 %v3525_v46, 16  ;;  %v575_v3 = vshll.u32 %v3525_v46, 16 }
  0x60   : > { %v889_v49 = vsel %vm3965_vm9, %v3414_v35, %v888_v32  ;;  %v567_v17 = vshll.u32 %v3524_v38, 16  ;;  %v1053_v23 = vshll.u32 %v1017_v8, 16  ;;  %v1057_v10 = vshrl.u32 %v1017_v8, 16 }
  0x61   : > { %1259 = vrot.lane.b32.xlu0 %v1200_v33, %s3813_s17  ;;  %v1219_v45 = vrot.slane %v1218_v39, 4  ;;  %890 = vst [vmem:[#allocation2 + $0x3c] sm:$0x1] %v889_v49  ;;  %v566_v1 = vrot.slane %v564_v55, 7  ;;  %v574_v7 = vrot.slane %v572_v56, 7 }
  0x62   : > { %v954_v50 = vld [vmem:[#allocation2 + $0x8] sm:$0x1]  ;;  %1265 = vrot.lane.b32.xlu1 %v1234_v48, %s3813_s17  ;;  %v1055_v55 = vrot.slane %v1053_v23, 5  ;;  %v1059_v56 = vrot.slane %v1057_v10, 4 }
  0x63   : > { %v1224_v52 = vsel %vm4133_vm14, %v1219_v45, %v4160_v15  ;;  %v955_v53 = vsel %vm4011_vm11, %v3419_v41, %v954_v50  ;;  %v905_v31 = vld [vmem:[#allocation2 + $0x1c] sm:$0x8]  ;;  %v570_v12 = vrot.slane %v566_v1, 4  ;;  %v577_v2 = vor.u32 %v575_v3, %v574_v7 }
  0x64   : > { %v960_v37 = vld [vmem:[#allocation2 + $0x20] sm:$0x1]  ;;  %v1023_v30 = vld [vmem:[#allocation2 + $0x1c] sm:$0xf]  ;;  %956 = vst [vmem:[#allocation2 + $0x8] sm:$0x1] %v955_v53  ;;  %v569_v22 = vor.u32 %v567_v17, %v566_v1  ;;  %v1060_v3 = vor.u32 %v1059_v56, %v1055_v55 }
  0x65   : > { %1263 = vrot.lane.b32.xlu0 %v1224_v52, %s3813_s17  ;;  %v3421_v40 = vrot.slane %v905_v31, 11  ;;  %v1101_v58 = vshll.u32 %v1023_v30, 16  ;;  %v1105_v59 = vshrl.u32 %v1023_v30, 16  ;;  %v825_v60 = vld [vmem:[#allocation2 + $0x18] sm:$0x2]  ;;  %v579_v24 = vrot.slane %v574_v7, 4 }
  0x66   : > { %v3411_v61 = vrot.slane %v825_v60, 9  ;;  %v879_v62 = vld [vmem:[#allocation2 + $0x18] sm:$0x1]  ;;  %v1016_v0 = vld [vmem:[#allocation2] sm:$0xf]  ;;  %v578_v33 = vsel %vm3950_vm5, %v570_v12, %v577_v2  ;;  %v711_v46 = vsel %vm3956_vm8, %v569_v22, %v710_v47  ;;  %v1355_v50 = vrot.slane %v1353_v44, 4 }
  0x67   : > { %v961_v15 = vsel %vm4011_vm11, %v3421_v40, %v960_v37  ;;  %v4221_v4 = vrot.slane %v1101_v58, 5  ;;  %v1107_v18 = vrot.slane %v1105_v59, 4  ;;  %v1044_v21 = vshrl.u32 %v1016_v0, 16  ;;  %713 = vst.msk [vmem:[#allocation2 + $0x28] sm:$0xf] %vm690_vm2, %v578_v33 }
  0x68   : > { %962 = vst [vmem:[#allocation2 + $0x20] sm:$0x1] %v961_v15  ;;  %v880_v5 = vsel %vm3965_vm9, %v3411_v61, %v879_v62  ;;  %v1031_v6 = vld [vmem:[#allocation2 + $0x3c] sm:$0xf]  ;;  %v1047_v42 = vshll.u32 %v1016_v0, 16  ;;  %v715_v43 = vsel %vm3965_vm9, %v579_v24, %v714_v14 }
  0x69   : > { %881 = vst [vmem:[#allocation2 + $0x18] sm:$0x1] %v880_v5  ;;  %v1164_v9 = vshrl.u32 %v1031_v6, 16  ;;  %v1167_v11 = vshll.u32 %v1031_v6, 16  ;;  %v1108_v16 = vor.u32 %v1107_v18, %v4221_v4  ;;  %v1534_v63 = vld [vmem:[#allocation2 + $0x3c] sm:$0xf] }
  0x6a   : > { %v1046_v19 = vrot.slane %v1044_v21, 4  ;;  %v1049_v26 = vrot.slane %v1047_v42, 5  ;;  %v1643_v39 = vshrl.u32 %v1534_v63, 16  ;;  %v1646_v41 = vshll.u32 %v1534_v63, 16  ;;  %716 = vst [vmem:[#allocation2 + $0x2c] sm:$0x1] %v715_v43 }
  0x6b   : > { %v1166_v29 = vrot.slane %v1164_v9, 4  ;;  %v1169_v32 = vrot.slane %v1167_v11, 5  ;;  %v1302_v38 = vld [vmem:[#allocation2 + $0x8] sm:$0x1]  ;;  %v1109_v48 = vrot.slane %v1108_v16, 4  ;;  %v1061_v63 = vrot.slane %v1060_v3, 4 }
  0x6c   : > { %712 = vst [vmem:[#allocation2 + $0x24] sm:$0xf] %v711_v46  ;;  %v1535_v31 = vld [vmem:[#allocation2 + $0x40] sm:$0xf]  ;;  %v1356_v30 = vrot.slane %v1302_v38, 5  ;;  %v1050_v40 = vor.u32 %v1049_v26, %v1046_v19  ;;  %v1645_v62 = vrot.slane %v1643_v39, 4 }
  0x6d   : > { %v1170_v58 = vor.u32 %v1169_v32, %v1166_v29  ;;  %v1018_v59 = vld [vmem:[#allocation2 + $0x8] sm:$0x1]  ;;  %v1648_v15 = vrot.slane %v1646_v41, 5  ;;  %v1652_v44 = vshll.u32 %v1535_v31, 16  ;;  %v1656_v0 = vshrl.u32 %v1535_v31, 16 }
  0x6e   : > { %v1063_v18 = vshll.u32 %v1018_v59, 16  ;;  %v1357_v5 = vsel %vm4000_vm10, %v1355_v50, %v1356_v30  ;;  %v1051_v6 = vrot.slane %v1050_v40, 4  ;;  %v906_v8 = vld [vmem:[#allocation2 + $0x28] sm:$0x8]  ;;  %v1323_v47 = vld [vmem:[#allocation2 + $0x5c] sm:$0x1] }
  0x6f   : > { %v1024_v35 = vld [vmem:[#allocation2 + $0x20] sm:$0x1]  ;;  %v1171_v7 = vrot.slane %v1170_v58, 4  ;;  %v1649_v17 = vor.u32 %v1648_v15, %v1645_v62  ;;  %v3422_v42 = vrot.slane %v906_v8, 11  ;;  %v1026_v11 = vld [vmem:[#allocation2 + $0x28] sm:$0xf] }
  0x70   : > { %v1111_v49 = vshll.u32 %v1024_v35, 16  ;;  %v1022_v45 = vld [vmem:[#allocation2 + $0x18] sm:$0xf]  ;;  %v1654_v12 = vrot.slane %v1652_v44, 5  ;;  %v1658_v14 = vrot.slane %v1656_v0, 4  ;;  %v1065_v2 = vrot.slane %v1063_v18, 5 }
  0x71   : > { %v1092_v52 = vshrl.u32 %v1022_v45, 16  ;;  %v1095_v53 = vshll.u32 %v1022_v45, 16  ;;  %v963_v9 = vld [vmem:[#allocation2 + $0x2c] sm:$0x1]  ;;  %v1176_v24 = vsel %vm4133_vm14, %v1171_v7, %v4060_v28  ;;  %v1536_v22 = vld [vmem:[#allocation2 + $0x44] sm:$0x1]  ;;  %v1056_v32 = vsel %vm4133_vm14, %v1051_v6, %v1055_v55 }
  0x72   : > { %v1113_v37 = vrot.slane %v1111_v49, 5  ;;  %v964_v19 = vsel %vm4011_vm11, %v3422_v42, %v963_v9  ;;  %v1125_v26 = vshll.u32 %v1026_v11, 16  ;;  %v1129_v29 = vshrl.u32 %v1026_v11, 16  ;;  %v1538_v35 = vld [vmem:[#allocation2 + $0x4c] sm:$0xf] }
  0x73   : > { %v1094_v60 = vrot.slane %v1092_v52, 4  ;;  %v1097_v61 = vrot.slane %v1095_v53, 5  ;;  %v826_v16 = vld [vmem:[#allocation2 + $0x24] sm:$0x2]  ;;  %v882_v10 = vld [vmem:[#allocation2 + $0x24] sm:$0x1]  ;;  %v1066_v28 = vsel %vm4133_vm14, %v1061_v63, %v1065_v2  ;;  %v1659_v43 = vor.u32 %v1658_v14, %v1654_v12 }
  0x74   : > { %v1114_v36 = vsel %vm4133_vm14, %v1109_v48, %v1113_v37  ;;  %965 = vst [vmem:[#allocation2 + $0x2c] sm:$0x1] %v964_v19  ;;  %v1650_v33 = vrot.slane %v1649_v17, 4  ;;  %v1404_v38 = vrot.slane %v1402_v54, 4  ;;  %v1405_v41 = vrot.slane %v1323_v47, 5  ;;  %v476_v47 = vld [vmem:[%s3940_s7 + $0x70] sm:$0xff] }
  0x75   : > { %1245 = vrot.lane.b32.xlu1 %v1114_v36, %s3813_s17  ;;  %v1098_v1 = vor.u32 %v1097_v61, %v1094_v60  ;;  %v1662_v46 = vshll.u32 %v1536_v22, 16  ;;  %v4260_v48 = vrot.slane %v1125_v26, 5  ;;  %v1131_v49 = vrot.slane %v1129_v29, 4  ;;  %v1537_v50 = vld [vmem:[#allocation2 + $0x48] sm:$0xf] }
  0x76   : > { %v1676_v45 = vshll.u32 %v1538_v35, 16  ;;  %v1680_v57 = vshrl.u32 %v1538_v35, 16  ;;  %v1655_v54 = vsel %vm4133_vm14, %v1650_v33, %v1654_v12  ;;  %v1406_v52 = vsel %vm4000_vm10, %v1404_v38, %v1405_v41  ;;  %v4269_v30 = vld [vmem:[#allocation2 + $0x1c] sm:$0xf]  ;;  %v1539_v59 = vld [vmem:[#allocation2 + $0x50] sm:$0x1] }
  0x77   : > { %v1099_v21 = vrot.slane %v1098_v1, 4  ;;  %v1660_v53 = vrot.slane %v1659_v43, 4  ;;  %v1664_v55 = vrot.slane %v1662_v46, 5  ;;  %v1132_v31 = vor.u32 %v1131_v49, %v4260_v48  ;;  %v1306_v1 = vld [vmem:[#allocation2 + $0x18] sm:$0xe] }
  0x78   : > { %v4271_v40 = vrot.slane %v1676_v45, 5  ;;  %v1682_v58 = vrot.slane %v1680_v57, 4  ;;  %v1667_v60 = vshrl.u32 %v1537_v50, 16  ;;  %v1670_v61 = vshll.u32 %v1537_v50, 16  ;;  %v993_v3 = vld [vmem:[#allocation2 + $0x34] sm:$0xf] }
  0x79   : > { %v1104_v23 = vsel %vm4133_vm14, %v1099_v21, %v4221_v4  ;;  %1409 = vrot.lane.b32.xlu1 %v1357_v5, %s3812_s14  ;;  %v3412_v4 = vrot.slane %v826_v16, 9  ;;  %v1665_v15 = vsel %vm4133_vm14, %v1660_v53, %v1664_v55  ;;  %v1367_v0 = vrot.slane %v4269_v30, 5  ;;  %v1308_v6 = vld [vmem:[#allocation2 + $0x20] sm:$0x1]  ;;  %1009 = vst.msk [vmem:[#allocation3 + $0x24] sm:$0xf] %vm690_vm2, %v993_v3 }
  0x7a   : > { %1243 = vrot.lane.b32.xlu0 %v1104_v23, %s3813_s17  ;;  %v1133_v18 = vrot.slane %v1132_v31, 4  ;;  %v1683_v7 = vor.u32 %v1682_v58, %v4271_v40  ;;  %v1686_v8 = vshll.u32 %v1539_v59, 16  ;;  %v1669_v42 = vrot.slane %v1667_v60, 4  ;;  %v995_v11 = vld [vmem:[#allocation2 + $0x40] sm:$0xf] }
  0x7b   : > { %v883_v39 = vsel %vm3965_vm9, %v3412_v4, %v882_v10  ;;  %v1027_v56 = vld [vmem:[#allocation2 + $0x2c] sm:$0x1]  ;;  %v1672_v9 = vrot.slane %v1670_v61, 5  ;;  %v1815_v12 = vld [vmem:[#allocation2 + $0x40] sm:$0xf]  ;;  %v1369_v23 = vrot.slane %v1367_v0, 4  ;;  %v3534_v57 = vpack.c.bf16 %v476_v47, %v476_v47 }
  0x7c   : > { %884 = vst [vmem:[#allocation2 + $0x24] sm:$0x1] %v883_v39  ;;  %v1135_v37 = vshll.u32 %v1027_v56, 16  ;;  %1011 = vst.msk [vmem:[#allocation3 + $0x2c] sm:$0xf] %vm690_vm2, %v995_v11  ;;  %v1370_v10 = vrot.slane %v1308_v6, 5 }
  0x7d   : > { %1255 = vrot.lane.b32.xlu1 %v1176_v24, %s3813_s17  ;;  %v992_v14 = vld [vmem:[#allocation2 + $0x30] sm:$0xf]  ;;  %v1814_v63 = vld [vmem:[#allocation2 + $0x3c] sm:$0xe]  ;;  %v3431_v24 = vrot.slane %v1306_v1, 9  ;;  %v1688_v22 = vrot.slane %v1686_v8, 5  ;;  %v1673_v35 = vor.u32 %v1672_v9, %v1669_v42 }
  0x7e   : > { %1235 = vrot.lane.b32.xlu0 %v1056_v32, %s3813_s17  ;;  %v1137_v5 = vrot.slane %v1135_v37, 5  ;;  %v1523_v2 = vld [vmem:[#allocation2 + $0x10] sm:$0xf]  ;;  %1008 = vst.msk [vmem:[#allocation3 + $0x20] sm:$0xf] %vm690_vm2, %v992_v14  ;;  %v477_v4 = vld [vmem:[%s3940_s7 + $0x78] sm:$0xff]  ;;  %v1371_v50 = vsel %vm4000_vm10, %v1369_v23, %v1370_v10 }
  0x7f   : > { %v1816_v26 = vld [vmem:[#allocation2 + $0x44] sm:$0x1]  ;;  %v1522_v29 = vld [vmem:[#allocation2 + $0xc] sm:$0xf]  ;;  %v1684_v33 = vrot.slane %v1683_v7, 4  ;;  %v1880_v38 = vrot.slane %v1815_v12, 5  ;;  %v1368_v56 = vsel %vm4000_vm10, %v3431_v24, %v1367_v0 }
  0x80   : > { %v1138_v19 = vsel %vm4133_vm14, %v1133_v18, %v1137_v5  ;;  %v4286_v39 = vld [vmem:[#allocation2 + $0x28] sm:$0xf]  ;;  %v1560_v41 = vshrl.u32 %v1523_v2, 16  ;;  %v987_v43 = vld [vmem:[#allocation2 + $0x10] sm:$0xf]  ;;  %v3441_v45 = vrot.slane %v1814_v63, 9 }
  0x81   : > { %1237 = vrot.lane.b32.xlu1 %v1066_v28, %s3813_s17  ;;  %v1556_v28 = vshll.u32 %v1523_v2, 16  ;;  %v986_v46 = vld [vmem:[#allocation2 + $0xc] sm:$0xf]  ;;  %1003 = vst.msk [vmem:[#allocation3 + $0xc] sm:$0xf] %vm690_vm2, %v987_v43  ;;  %v1547_v53 = vshrl.u32 %v1522_v29, 16  ;;  %v1689_v59 = vsel %vm4133_vm14, %v1684_v33, %v1688_v22 }
  0x82   : > { %1754 = vrot.lane.b32.xlu0 %v1655_v54, %s3813_s17  ;;  %v3535_v54 = vpack.c.bf16 %v477_v4, %v477_v4  ;;  %1002 = vst.msk [vmem:[#allocation3 + $0x8] sm:$0xf] %vm690_vm2, %v986_v46  ;;  %v1550_v55 = vshll.u32 %v1522_v29, 16  ;;  %v1883_v31 = vrot.slane %v1816_v26, 5  ;;  %v4300_v37 = vld [vmem:[#allocation2 + $0x24] sm:$0xe] }
  0x83   : > { %v1025_v62 = vld [vmem:[#allocation2 + $0x24] sm:$0xf]  ;;  %v1524_v30 = vld [vmem:[#allocation2 + $0x14] sm:$0x1]  ;;  %v997_v58 = vld [vmem:[#allocation2 + $0x4c] sm:$0xf] }
  0x84   : > { %v1116_v36 = vshrl.u32 %v1025_v62, 16  ;;  %v1119_v44 = vshll.u32 %v1025_v62, 16  ;;  %v1882_v60 = vrot.slane %v1880_v38, 4  ;;  %v4304_v61 = vrot.slane %v1556_v28, 5  ;;  %1013 = vst.msk [vmem:[#allocation3 + $0x34] sm:$0xf] %vm690_vm2, %v997_v58 }
  0x85   : > { %1437 = vrot.lane.b32.xlu1 %v1406_v52, %s3812_s14  ;;  %v1374_v52 = vrot.slane %v4286_v39, 5  ;;  %v1562_v62 = vrot.slane %v1560_v41, 4  ;;  %v649_v0 = vshrl.u32 %v3534_v57, 16  ;;  %v657_v1 = vshrl.u32 %v3535_v54, 16  ;;  %v1526_v7 = vld [vmem:[#allocation2 + $0x1c] sm:$0xf] }
  0x86   : > { %v1118_v21 = vrot.slane %v1116_v36, 4  ;;  %v1121_v17 = vrot.slane %v1119_v44, 5  ;;  %v1881_v36 = vsel %vm4000_vm10, %v3441_v45, %v1880_v38  ;;  %v1311_v44 = vld [vmem:[#allocation2 + $0x2c] sm:$0x1]  ;;  %v660_v3 = vshll.u32 %v3535_v54, 16  ;;  %s3519_s7 = sadd.s32 8, %s3922_s16 }
  0x87   : > { %v1376_v18 = vrot.slane %v1374_v52, 4  ;;  %v1549_v5 = vrot.slane %v1547_v53, 4  ;;  %v1552_v6 = vrot.slane %v1550_v55, 5  ;;  %v749_v8 = vld [vmem:[#allocation2 + $0x68] sm:$0x1]  ;;  %v3432_v42 = vrot.slane %v4300_v37, 9 }
  0x88   : > { %v1122_v16 = vor.u32 %v1121_v17, %v1118_v21  ;;  %v652_v21 = vshll.u32 %v3534_v57, 16  ;;  %v1525_v9 = vld [vmem:[#allocation2 + $0x18] sm:$0xf]  ;;  %v651_v11 = vrot.slane %v649_v0, 7  ;;  %v659_v12 = vrot.slane %v657_v1, 7  ;;  %s4371_s16 = ssub.s32 15, %s3519_s7 }
  0x89   : > { %1756 = vrot.lane.b32.xlu1 %v1665_v15, %s3813_s17  ;;  %v996_v15 = vld [vmem:[#allocation2 + $0x48] sm:$0xf]  ;;  %v1884_v14 = vsel %vm4000_vm10, %v1882_v60, %v1883_v31  ;;  %v1563_v23 = vor.u32 %v1562_v62, %v4304_v61  ;;  %v1566_v63 = vshll.u32 %v1524_v30, 16  ;;  %v745_v2 = vld [vmem:[#allocation2 + $0x60] sm:$0xf]  ;;  %v1553_v29 = vor.u32 %v1552_v6, %v1549_v5  ;;  %s430_s8 = sshra.s32 %s4371_s16, 31 }
  0x8a   : > { %v1123_v32 = vrot.slane %v1122_v16, 4  ;;  %1012 = vst.msk [vmem:[#allocation3 + $0x30] sm:$0xf] %vm690_vm2, %v996_v15  ;;  %v1377_v16 = vrot.slane %v1311_v44, 5  ;;  %v999_v47 = vld [vmem:[#allocation2 + $0x58] sm:$0xf]  ;;  %v654_v22 = vor.u32 %v652_v21, %v651_v11  ;;  %v1375_v31 = vsel %vm4000_vm10, %v3432_v42, %v1374_v52  ;;  %s431_s18 = sadd.s32 %s430_s8, %s4371_s16 }
  0x8b   : > { %v655_v10 = vrot.slane %v651_v11, 4  ;;  %v664_v24 = vrot.slane %v659_v12, 4  ;;  %1015 = vst.msk [vmem:[#allocation3 + $0x3c] sm:$0xf] %vm690_vm2, %v999_v47  ;;  %v998_v26 = vld [vmem:[#allocation2 + $0x54] sm:$0xf]  ;;  %s4403_s20 = sxor.u32 %s431_s18, %s430_s8 }
  0x8c   : > { %v1128_v49 = vsel %vm4133_vm14, %v1123_v32, %v4260_v48  ;;  %v1674_v48 = vrot.slane %v1673_v35, 4  ;;  %v1580_v4 = vshll.u32 %v1526_v7, 16  ;;  %v1584_v32 = vshrl.u32 %v1526_v7, 16  ;;  %1014 = vst.msk [vmem:[#allocation3 + $0x38] sm:$0xf] %vm690_vm2, %v998_v26  ;;  %s433_s29 = ssub.s32 15, %s4403_s20 }
  0x8d   : > { %1249 = vrot.lane.b32.xlu1 %v1138_v19, %s3813_s17  ;;  %1247 = vrot.lane.b32.xlu0 %v1128_v49, %s3813_s17  ;;  %v4322_v19 = vld [vmem:[#allocation2 + $0x4c] sm:$0xf]  ;;  %v1571_v33 = vshrl.u32 %v1525_v9, 16  ;;  %v1574_v35 = vshll.u32 %v1525_v9, 16  ;;  %v750_v28 = vsel %vm3965_vm9, %v664_v24, %v749_v8  ;;  %v746_v41 = vsel %vm3956_vm8, %v654_v22, %v745_v2  ;;  %v989_v43 = vld [vmem:[#allocation2 + $0x1c] sm:$0xf] }
  0x8e   : > { %v1679_v17 = vsel %vm4133_vm14, %v1674_v48, %v4271_v40  ;;  %v662_v40 = vor.u32 %v660_v3, %v659_v12  ;;  %v988_v46 = vld [vmem:[#allocation2 + $0x18] sm:$0xf]  ;;  %v1887_v49 = vrot.slane %v4322_v19, 5  ;;  %751 = vst [vmem:[#allocation2 + $0x68] sm:$0x1] %v750_v28  ;;  %v1568_v45 = vrot.slane %v1566_v63, 5 }
  0x8f   : > { %747 = vst [vmem:[#allocation2 + $0x60] sm:$0xf] %v746_v41  ;;  %1005 = vst.msk [vmem:[#allocation3 + $0x14] sm:$0xf] %vm690_vm2, %v989_v43  ;;  %v1819_v57 = vld [vmem:[#allocation2 + $0x50] sm:$0x1] }
  0x90   : > { %v663_v38 = vsel %vm3950_vm5, %v655_v10, %v662_v40  ;;  %1004 = vst.msk [vmem:[#allocation3 + $0x10] sm:$0xf] %vm690_vm2, %v988_v46  ;;  %v1817_v54 = vld [vmem:[#allocation2 + $0x48] sm:$0xe]  ;;  %v1564_v53 = vrot.slane %v1563_v23, 4  ;;  %v1586_v48 = vrot.slane %v1584_v32, 4 }
  0x91   : > { %1417 = vrot.lane.b32.xlu1 %v1371_v50, %s3812_s14  ;;  %1415 = vrot.lane.b32.xlu0 %v1368_v56, %s3812_s14  ;;  %748 = vst.msk [vmem:[#allocation2 + $0x64] sm:$0xf] %vm690_vm2, %v663_v38  ;;  %v1378_v50 = vsel %vm4000_vm10, %v1376_v18, %v1377_v16  ;;  %v1527_v55 = vld [vmem:[#allocation2 + $0x20] sm:$0x1]  ;;  %v4341_v56 = vrot.slane %v1580_v4, 5  ;;  %v1554_v37 = vrot.slane %v1553_v29, 4 }
  0x92   : > { %v1573_v30 = vrot.slane %v1571_v33, 4  ;;  %v1576_v58 = vrot.slane %v1574_v35, 5  ;;  %v1889_v60 = vrot.slane %v1887_v49, 4  ;;  %v1890_v62 = vrot.slane %v1819_v57, 5  ;;  %v1541_v0 = vld [vmem:[#allocation2 + $0x58] sm:$0xf] }
  0x93   : > { %v3442_v15 = vrot.slane %v1817_v54, 9  ;;  %v1569_v39 = vsel %vm4133_vm14, %v1564_v53, %v1568_v45  ;;  %v1587_v52 = vor.u32 %v1586_v48, %v4341_v56  ;;  %v1590_v44 = vshll.u32 %v1527_v55, 16  ;;  %v994_v1 = vld [vmem:[#allocation2 + $0x3c] sm:$0xf]  ;;  %v1540_v21 = vld [vmem:[#allocation2 + $0x54] sm:$0xf] }
  0x94   : > { %v1559_v3 = vsel %vm4133_vm14, %v1554_v37, %v4304_v61  ;;  %v1577_v18 = vor.u32 %v1576_v58, %v1573_v30  ;;  %v4359_v5 = vld [vmem:[#allocation2 + $0x1c] sm:$0xf]  ;;  %1010 = vst.msk [vmem:[#allocation3 + $0x28] sm:$0xf] %vm690_vm2, %v994_v1  ;;  %v1891_v8 = vsel %vm4000_vm10, %v1889_v60, %v1890_v62  ;;  %v1700_v11 = vshll.u32 %v1541_v0, 16  ;;  %p4424_p1 = scmp.lt.s32.totalorder %s433_s29, 15 }
  0x95   : > { %1760 = vrot.lane.b32.xlu1 %v1689_v59, %s3813_s17  ;;  %1758 = vrot.lane.b32.xlu0 %v1679_v17, %s3813_s17  ;;  %v984_v59 = vld [vmem:[#allocation2] sm:$0xf]  ;;  %v978_v7 = vld [vmem:[#allocation2 + $0x68] sm:$0x1]  ;;  %v1888_v9 = vsel %vm4000_vm10, %v3442_v15, %v1887_v49  ;;  %v1704_v61 = vshrl.u32 %v1541_v0, 16  ;;  %v1588_v16 = vrot.slane %v1587_v52, 4 }
  0x96   : > { %1000 = vst.msk [vmem:[#allocation3] sm:$0xf] %vm690_vm2, %v984_v59  ;;  %v831_v42 = vld [vmem:[#allocation2 + $0x60] sm:$0x2]  ;;  %v1592_v23 = vrot.slane %v1590_v44, 5  ;;  %v1578_v19 = vrot.slane %v1577_v18, 4 }
  0x97   : > { %v3417_v12 = vrot.slane %v831_v42, 9  ;;  %v1804_v63 = vld [vmem:[#allocation2 + $0x14] sm:$0x1]  ;;  %v1691_v10 = vshrl.u32 %v1540_v21, 16  ;;  %v1694_v40 = vshll.u32 %v1540_v21, 16  ;;  %v1859_v4 = vrot.slane %v4359_v5, 5 }
  0x98   : > { %v911_v6 = vld [vmem:[#allocation2 + $0x64] sm:$0x8]  ;;  %v1802_v26 = vld [vmem:[#allocation2 + $0xc] sm:$0xe]  ;;  %v1807_v29 = vld [vmem:[#allocation2 + $0x20] sm:$0x1]  ;;  %v1593_v28 = vsel %vm4133_vm14, %v1588_v16, %v1592_v23  ;;  %v1583_v45 = vsel %vm4133_vm14, %v1578_v19, %v4341_v56 }
  0x99   : > { %1924 = vrot.lane.b32.xlu1 %v1884_v14, %s3812_s14  ;;  %1922 = vrot.lane.b32.xlu0 %v1881_v36, %s3812_s14  ;;  %v4349_v36 = vld [vmem:[#allocation2 + $0x10] sm:$0xf]  ;;  %v3427_v17 = vrot.slane %v911_v6, 11  ;;  %v897_v14 = vld [vmem:[#allocation2 + $0x60] sm:$0x1]  ;;  %v1855_v32 = vrot.slane %v1804_v63, 5 }
  0x9a   : > { %v1852_v2 = vrot.slane %v4349_v36, 5  ;;  %v1544_v24 = vld [vmem:[#allocation2 + $0x64] sm:$0xf]  ;;  %v898_v22 = vsel %vm3965_vm9, %v3417_v12, %v897_v14  ;;  %v4377_v33 = vrot.slane %v1700_v11, 5  ;;  %v1706_v35 = vrot.slane %v1704_v61, 4  ;;  %s5232_s29 = smov (!%p4424_p1, %s433_s29), 15 }
  0x9b   : > { %v979_v47 = vsel %vm4011_vm11, %v3427_v17, %v978_v7  ;;  %899 = vst [vmem:[#allocation2 + $0x60] sm:$0x1] %v898_v22  ;;  %v985_v38 = vld [vmem:[#allocation2 + $0x4] sm:$0xf]  ;;  %v1542_v43 = vld [vmem:[#allocation2 + $0x5c] sm:$0x1] }
  0x9c   : > { %980 = vst [vmem:[#allocation2 + $0x68] sm:$0x1] %v979_v47  ;;  %v1854_v41 = vrot.slane %v1852_v2, 4  ;;  %v1724_v46 = vshll.u32 %v1544_v24, 16  ;;  %v1728_v49 = vshrl.u32 %v1544_v24, 16  ;;  %v3437_v57 = vrot.slane %v1802_v26, 9 }
  0x9d   : > { %1421 = vrot.lane.b32.xlu1 %v1378_v50, %s3812_s14  ;;  %1419 = vrot.lane.b32.xlu0 %v1375_v31, %s3812_s14  ;;  %1001 = vst.msk [vmem:[#allocation3 + $0x4] sm:$0xf] %vm690_vm2, %v985_v38  ;;  %v1693_v54 = vrot.slane %v1691_v10, 4  ;;  %v1696_v50 = vrot.slane %v1694_v40, 5  ;;  %v1861_v53 = vrot.slane %v1859_v4, 4  ;;  %v1862_v55 = vrot.slane %v1807_v29, 5 }
  0x9e   : > { %v1805_v48 = vld [vmem:[#allocation2 + $0x18] sm:$0xe]  ;;  %v1707_v31 = vor.u32 %v1706_v35, %v4377_v33  ;;  %v1710_v37 = vshll.u32 %v1542_v43, 16  ;;  %v1856_v30 = vsel %vm4000_vm10, %v1854_v41, %v1855_v32  ;;  %v4395_v56 = vrot.slane %v1724_v46, 5  ;;  %v1529_v60 = vld [vmem:[#allocation2 + $0x28] sm:$0xf] }
  0x9f   : > { %v1730_v58 = vrot.slane %v1728_v49, 4  ;;  %v1853_v62 = vsel %vm4000_vm10, %v3437_v57, %v1852_v2  ;;  %v3438_v15 = vrot.slane %v1805_v48, 9  ;;  %v1697_v36 = vor.u32 %v1696_v50, %v1693_v54  ;;  %v1822_v63 = vld [vmem:[#allocation2 + $0x5c] sm:$0x1]  ;;  %v991_v2 = vld [vmem:[#allocation2 + $0x28] sm:$0xf] }
  0xa0   : > { %v1863_v44 = vsel %vm4000_vm10, %v1861_v53, %v1862_v55  ;;  %v1708_v18 = vrot.slane %v1707_v31, 4  ;;  %v1712_v5 = vrot.slane %v1710_v37, 5  ;;  %v1604_v6 = vshll.u32 %v1529_v60, 16  ;;  %v1820_v10 = vld [vmem:[#allocation2 + $0x54] sm:$0xe]  ;;  %s3382_s13 = sshll.u32 %s5232_s29, 1 }
  0xa1   : > { %1740 = vrot.lane.b32.xlu1 %v1569_v39, %s3813_s17  ;;  %1738 = vrot.lane.b32.xlu0 %v1559_v3, %s3813_s17  ;;  %v1528_v3 = vld [vmem:[#allocation2 + $0x24] sm:$0xf]  ;;  %v1608_v7 = vshrl.u32 %v1529_v60, 16  ;;  %v1860_v61 = vsel %vm4000_vm10, %v3438_v15, %v1859_v4  ;;  %v1698_v12 = vrot.slane %v1697_v36, 4  ;;  %1007 = vst.msk [vmem:[#allocation3 + $0x1c] sm:$0xf] %vm690_vm2, %v991_v2  ;;  %s4467_s7 = sadd.s32 %s3382_s13, %s3928_s19 }
  0xa2   : > { %v1543_v52 = vld [vmem:[#allocation2 + $0x60] sm:$0xf]  ;;  %v1595_v14 = vshrl.u32 %v1528_v3, 16  ;;  %v1598_v16 = vshll.u32 %v1528_v3, 16  ;;  %v1713_v47 = vsel %vm4133_vm14, %v1708_v18, %v1712_v5  ;;  %v990_v40 = vld [vmem:[#allocation2 + $0x24] sm:$0xf] }
  0xa3   : > { %v1545_v39 = vld [vmem:[#allocation2 + $0x68] sm:$0x1]  ;;  %v1715_v0 = vshrl.u32 %v1543_v52, 16  ;;  %v1718_v1 = vshll.u32 %v1543_v52, 16  ;;  %v1530_v26 = vld [vmem:[#allocation2 + $0x2c] sm:$0x1]  ;;  %v1703_v35 = vsel %vm4133_vm14, %v1698_v12, %v4377_v33 }
  0xa4   : > { %v1734_v21 = vshll.u32 %v1545_v39, 16  ;;  %v4429_v29 = vrot.slane %v1604_v6, 5  ;;  %v1610_v4 = vrot.slane %v1608_v7, 4  ;;  %1006 = vst.msk [vmem:[#allocation3 + $0x18] sm:$0xf] %vm690_vm2, %v990_v40  ;;  %v1600_v41 = vrot.slane %v1598_v16, 5 }
  0xa5   : > { %1928 = vrot.lane.b32.xlu1 %v1891_v8, %s3812_s14  ;;  %1926 = vrot.lane.b32.xlu0 %v1888_v9, %s3812_s14  ;;  %v4397_v59 = vpop.permute.xlu0 %1423  ;;  %v1731_v8 = vor.u32 %v1730_v58, %v4395_v56  ;;  %v1717_v17 = vrot.slane %v1715_v0, 4  ;;  %v1720_v42 = vrot.slane %v1718_v1, 5  ;;  %v4410_v9 = vld [vmem:[#allocation2 + $0x58] sm:$0xf]  ;;  %v1532_v43 = vld [vmem:[#allocation2 + $0x34] sm:$0xf] }
  0xa6   : > { %v1894_v19 = vrot.slane %v4410_v9, 5  ;;  %v1736_v22 = vrot.slane %v1734_v21, 5  ;;  %v1531_v46 = vld [vmem:[#allocation2 + $0x30] sm:$0xf]  ;;  %v3443_v57 = vrot.slane %v1820_v10, 9  ;;  %v1614_v54 = vshll.u32 %v1530_v26, 16 }
  0xa7   : > { %v1721_v23 = vor.u32 %v1720_v42, %v1717_v17  ;;  %v1732_v24 = vrot.slane %v1731_v8, 4  ;;  %v1611_v33 = vor.u32 %v1610_v4, %v4429_v29  ;;  %v1628_v48 = vshll.u32 %v1532_v43, 16  ;;  %v1824_v58 = vld [vmem:[#allocation2 + $0x64] sm:$0xf]  ;;  %v1533_v39 = vld [vmem:[#allocation2 + $0x38] sm:$0x1] }
  0xa8   : > { %v1896_v49 = vrot.slane %v1894_v19, 4  ;;  %v1632_v31 = vshrl.u32 %v1532_v43, 16  ;;  %v1619_v60 = vshrl.u32 %v1531_v46, 16  ;;  %v1616_v36 = vrot.slane %v1614_v54, 5  ;;  %v1825_v6 = vld [vmem:[#allocation2 + $0x68] sm:$0x1] }
  0xa9   : > { %1744 = vrot.lane.b32.xlu1 %v1593_v28, %s3813_s17  ;;  %1742 = vrot.lane.b32.xlu0 %v1583_v45, %s3813_s17  ;;  %v4412_v11 = vpop.permute.xlu0 %1427  ;;  %v1722_v38 = vrot.slane %v1721_v23, 4  ;;  %v1597_v28 = vrot.slane %v1595_v14, 4  ;;  %v1897_v45 = vrot.slane %v1822_v63, 5  ;;  %v1737_v50 = vsel %vm4133_vm14, %v1732_v24, %v1736_v22  ;;  %v1823_v21 = vld [vmem:[#allocation2 + $0x60] sm:$0xe]  ;;  %s3384_s19 = sshll.u32 %s4467_s7, 3 }
  0xaa   : > { %v1612_v52 = vrot.slane %v1611_v33, 4  ;;  %v4457_v0 = vrot.slane %v1628_v48, 5  ;;  %v1634_v1 = vrot.slane %v1632_v31, 4  ;;  %v1895_v18 = vsel %vm4000_vm10, %v3443_v57, %v1894_v19  ;;  %v2363_v42 = vld [vmem:[#allocation2 + $0x1c] sm:$0xf]  ;;  %s442_s18 = scalar_lea.vmem %s5190_s2, %s3384_s19  ;;  %s3510_s20 = sshll.u32 %s3798_s25, 1 }
  0xab   : > { %v1727_v37 = vsel %vm4133_vm14, %v1722_v38, %v4395_v56  ;;  %v1898_v15 = vsel %vm4000_vm10, %v1896_v49, %v1897_v45  ;;  %v1621_v7 = vrot.slane %v1619_v60, 4  ;;  %v1638_v17 = vshll.u32 %v1533_v39, 16  ;;  %v2362_v16 = vld [vmem:[#allocation2 + $0x18] sm:$0xf]  ;;  %v2366_v23 = vld [vmem:[#allocation2 + $0x28] sm:$0xf]  ;;  %s3191_s29 = sadd.s32 %s3794_s24, %s3510_s20 }
  0xac   : > { %v1617_v9 = vsel %vm4133_vm14, %v1612_v52, %v1616_v36  ;;  %v1904_v12 = vrot.slane %v1825_v6, 5  ;;  %v1635_v14 = vor.u32 %v1634_v1, %v4457_v0  ;;  %v3444_v2 = vrot.slane %v1823_v21, 9  ;;  %v4476_v19 = vld [vmem:[#allocation2 + $0x28] sm:$0xf]  ;;  %v4482_v22 = vld [vmem:[#allocation2 + $0x34] sm:$0xf] }
  0xad   : > { %1908 = vrot.lane.b32.xlu1 %v1856_v30, %s3812_s14  ;;  %1906 = vrot.lane.b32.xlu0 %v1853_v62, %s3812_s14  ;;  %v4431_v32 = vpop.permute.xlu0 %1411  ;;  %v1601_v30 = vor.u32 %v1600_v41, %v1597_v28  ;;  %v1622_v62 = vshll.u32 %v1531_v46, 16  ;;  %v1640_v40 = vrot.slane %v1638_v17, 5  ;;  %v2396_v26 = vshll.u32 %v2363_v42, 16  ;;  %v2365_v41 = vld [vmem:[#allocation2 + $0x24] sm:$0xf]  ;;  %s3511_s9 = sshll.u32 %s3191_s29, 5 }
  0xae   : > { %v2400_v4 = vshrl.u32 %v2363_v42, 16  ;;  %v2390_v38 = vshll.u32 %v2362_v16, 16  ;;  %v2420_v28 = vshll.u32 %v2366_v23, 16  ;;  %v1636_v46 = vrot.slane %v1635_v14, 4  ;;  %v1808_v45 = vld [vmem:[#allocation2 + $0x24] sm:$0xe] }
  0xaf   : > { %v1602_v5 = vrot.slane %v1601_v30, 4  ;;  %v1624_v8 = vrot.slane %v1622_v62, 5  ;;  %v1866_v49 = vrot.slane %v4476_v19, 5  ;;  %v1813_v57 = vld [vmem:[#allocation2 + $0x38] sm:$0x1]  ;;  %v1873_v48 = vrot.slane %v4482_v22, 5 }
  0xb0   : > { %v1810_v33 = vld [vmem:[#allocation2 + $0x2c] sm:$0x1]  ;;  %v1811_v31 = vld [vmem:[#allocation2 + $0x30] sm:$0xe]  ;;  %v4493_v30 = vrot.slane %v2396_v26, 5  ;;  %v2411_v60 = vshrl.u32 %v2365_v41, 16 }
  0xb1   : > { %1912 = vrot.lane.b32.xlu1 %v1863_v44, %s3812_s14  ;;  %1910 = vrot.lane.b32.xlu0 %v1860_v61, %s3812_s14  ;;  %v1901_v44 = vrot.slane %v1824_v58, 5  ;;  %v1607_v63 = vsel %vm4133_vm14, %v1602_v5, %v4429_v29  ;;  %v2424_v29 = vshrl.u32 %v2366_v23, 16  ;;  %v2402_v58 = vrot.slane %v2400_v4, 4  ;;  %v2364_v36 = vld [vmem:[#allocation2 + $0x20] sm:$0x1]  ;;  %s3176_s25 = scalar_lea.sflag [#allocation5], %s394_s30 }
  0xb2   : > { %v4442_v53 = vpop.permute.xlu1 %1425  ;;  %v2414_v62 = vshll.u32 %v2365_v41, 16  ;;  %v2392_v52 = vrot.slane %v2390_v38, 5  ;;  %v1868_v5 = vrot.slane %v1866_v49, 4  ;;  %v1869_v6 = vrot.slane %v1810_v33, 5  ;;  %v4525_v38 = vld [vmem:[#allocation2 + $0x20] sm:$0x1] }
  0xb3   : > { %v4444_v55 = vpop.permute.xlu0 %1431  ;;  %v1903_v61 = vrot.slane %v1901_v44, 4  ;;  %v1902_v54 = vsel %vm4000_vm10, %v3444_v2, %v1901_v44  ;;  %v4502_v44 = vrot.slane %v2420_v28, 5  ;;  %v2426_v1 = vrot.slane %v2424_v29, 4  ;;  %v4544_v33 = vld [vmem:[#allocation2 + $0x28] sm:$0xf]  ;;  %s3814_s16 = smov [#allocation4]  }
  0xb4   : > { %v3439_v21 = vrot.slane %v1808_v45, 9  ;;  %v1875_v17 = vrot.slane %v1873_v48, 4  ;;  %v1876_v42 = vrot.slane %v1813_v57, 5  ;;  %v2406_v14 = vshll.u32 %v2364_v36, 16  ;;  %s3722_s8 = sshll.u32 %s3814_s16, 4  ;;  %s3723_s8 = int_to_ptr.vmem [resolvable:$false] %s3722_s8 }
  0xb5   : > { %1764 = vrot.lane.b32.xlu1 %v1713_v47, %s3813_s17  ;;  %1762 = vrot.lane.b32.xlu0 %v1703_v35, %s3813_s17  ;;  %v1625_v47 = vor.u32 %v1624_v8, %v1621_v7  ;;  %v2387_v35 = vshrl.u32 %v2362_v16, 16  ;;  %v1905_v43 = vsel %vm4000_vm10, %v1903_v61, %v1904_v12  ;;  %v2367_v7 = vld [vmem:[#allocation2 + $0x2c] sm:$0x1]  ;;  %v3440_v12 = vrot.slane %v1811_v31, 9 }
  0xb6   : > { %v788_v61 = vld [vmem:[%s442_s18 + $0x8] sm:$0xff]  ;;  %v2413_v16 = vrot.slane %v2411_v60, 4  ;;  %v2416_v23 = vrot.slane %v2414_v62, 5  ;;  %v2427_v19 = vor.u32 %v2426_v1, %v4502_v44  ;;  %v1867_v4 = vsel %vm4000_vm10, %v3439_v21, %v1866_v49  ;;  %v2369_v49 = vld [vmem:[#allocation2 + $0x34] sm:$0xf] }
  0xb7   : > { %v4459_v56 = vpop.permute.xlu1 %1429  ;;  %v2389_v39 = vrot.slane %v2387_v35, 4  ;;  %v3539_v26 = vpack.c.bf16 %v788_v61, %v788_v61  ;;  %v1877_v29 = vsel %vm4000_vm10, %v1875_v17, %v1876_v42  ;;  %v1874_v41 = vsel %vm4000_vm10, %v3440_v12, %v1873_v48  ;;  %v820_v42 = vld [vmem:[#allocation2 + $0x74] sm:$0x1]  ;;  %v3701_v61 = vld [vmem:[%s5191_s3 + $0x8] sm:$0x3f]  }
  0xb8   : > { %v4461_v3 = vpop.permute.xlu0 %1435  ;;  %v4540_v57 = vrot.slane %v2427_v19, 4  ;;  %v2695_v48 = vrot.slane %v4525_v38, 5  ;;  %v2444_v62 = vshll.u32 %v2369_v49, 16  ;;  %v2448_v36 = vshrl.u32 %v2369_v49, 16  ;;  %v4577_v12 = vld [vmem:[#allocation2 + $0x18] sm:$0xe]  ;;  %3624 = vmatprep.subr.msk.bf16.mxu1 %vm2059_vm1, %v3701_v61  ;;  %3623 = vmatprep.subr.msk.bf16.mxu0 %vm2059_vm1, %v3701_v61 }
  0xb9   : > { %1768 = vrot.lane.b32.xlu1 %v1737_v50, %s3813_s17  ;;  %1766 = vrot.lane.b32.xlu0 %v1727_v37, %s3813_s17  ;;  %v1626_v50 = vrot.slane %v1625_v47, 4  ;;  %v2393_v2 = vor.u32 %v2392_v52, %v2389_v39  ;;  %v4555_v39 = vld [vmem:[#allocation2 + $0x30] sm:$0xf]  ;;  %v2061_v20 = vsel %vm2059_vm1, %v3701_v61, 0  ;;  %v2373_v38 = vld [vmem:[#allocation2 + $0x44] sm:$0x1] }
  0xba   : > { %v4587_v19 = vrot.slane %v2448_v36, 4  ;;  %3622 = vmatpush3.bf16.msra.mxu1 %v2061_v20  ;;  %3568 = vmatpush3.bf16.msra.mxu0 %v2061_v20 }
  0xbb   : > { %v4478_v10 = vpop.permute.xlu1 %1413  ;;  %v1631_v8 = vsel %vm4133_vm14, %v1626_v50, %v4457_v0  ;;  %v2430_v0 = vshll.u32 %v2367_v7, 16  ;;  %v4536_v45 = vrot.slane %v2393_v2, 4 }
  0xbd   : > { %1932 = vrot.lane.b32.xlu1 %v1898_v15, %s3812_s14  ;;  %1930 = vrot.lane.b32.xlu0 %v1895_v18, %s3812_s14  ;;  %v1641_v18 = vsel %vm4133_vm14, %v1636_v46, %v1640_v40  ;;  %v1870_v40 = vsel %vm4000_vm10, %v1868_v5, %v1869_v6  ;;  %v2417_v46 = vor.u32 %v2416_v23, %v2413_v16  ;;  %v4561_v5 = vld [vmem:[#allocation2 + $0x40] sm:$0xf] }
  0xbe   : > { %v1499_v6 = vld [vmem:[#allocation2 + $0x40] sm:$0xf]  ;;  %v2399_v21 = vsel %vm4133_vm14, %v4536_v45, %v4493_v30  ;;  %v2468_v49 = vshll.u32 %v4561_v5, 16 }
  0xbf   : > { %v4480_v24 = vpop.permute.xlu0 %1407  ;;  %v4557_v1 = vrot.slane %v2417_v46, 4  ;;  %v2370_v46 = vld [vmem:[#allocation2 + $0x38] sm:$0x1] }
  0xc1   : > { %1748 = vrot.lane.b32.xlu1 %v1617_v9, %s3813_s17  ;;  %1746 = vrot.lane.b32.xlu0 %v1607_v63, %s3813_s17  ;;  %v787_v9 = vld [vmem:[%s442_s18] sm:$0xff]  ;;  %v4512_v63 = vld [vmem:[#allocation2 + $0x1c] sm:$0xf]  ;;  %s4967_s18 = scalar_lea.vmem %s5193_s5, %s3375_s12  ;;  %s3371_s12 = sshll.u32 %s394_s30, 1 }
  0xc2   : > { %v3538_v22 = vpack.c.bf16 %v787_v9, %v787_v9  ;;  %v2692_v28 = vrot.slane %v4512_v63, 5  ;;  %v816_v9 = vld [vmem:[#allocation2 + $0x6c] sm:$0xf]  ;;  %s396_s13 = scalar_lea.vmem [#allocation4], %s3371_s12 }
  0xc3   : > { %v1254_v37 = vpop.permute.xlu0 %1253  ;;  %s3195_s7 = sshll.u32 %s396_s13, 4  ;;  %s3196_s7 = int_to_ptr.vmem [resolvable:$true] %s3195_s7 }
  0xc4   : > { %v4499_v15 = vpop.permute.xlu1 %1433  ;;  %1293 = vst.msk [vmem:[#allocation3 + $0x24] sm:$0xf] %vm1283_vm15, %v1254_v37  ;;  %v796_v31 = vshrl.u32 %v3538_v22, 16  ;;  %v804_v37 = vshrl.u32 %v3539_v26, 16  ;;  %v4553_v60 = vrot.slane %v2692_v28, 4  ;;  %v799_v52 = vshll.u32 %v3538_v22, 16  ;;  %p3725_p6 = scmp.lt.s32.totalorder %s3196_s7, %s3723_s8 }
  0xc5   : > { %1936 = vrot.lane.b32.xlu1 %v1905_v43, %s3812_s14  ;;  %1934 = vrot.lane.b32.xlu0 %v1902_v54, %s3812_s14  ;;  %1465 = vst.msk [vmem:[#allocation3 + $0x24] sm:$0xf] %vm1455_vm0, %v4442_v53  ;;  %v2403_v53 = vor.u32 %v2402_v58, %v4493_v30  ;;  %v4532_v43 = vrot.slane %v2406_v14, 5  ;;  %v4542_v54 = vrot.slane %v2430_v0, 5  ;;  %v807_v58 = vshll.u32 %v3539_v26, 16  ;;  %s3718_s24 = scalar_lea.vmem %s3196_s7, 32 }
  0xc6   : > { %v806_v7 = vrot.slane %v804_v37, 7  ;;  %v1498_v14 = vld [vmem:[#allocation2 + $0x3c] sm:$0xf]  ;;  %v2435_v0 = vshrl.u32 %v4555_v39, 16  ;;  %v4592_v26 = vld [vmem:[#allocation2 + $0x2c] sm:$0x1]  ;;  %p3719_p2 = scmp.ne.s32.totalorder %s3196_s7, %s3718_s24 }
  0xc7   : > { %v2371_v22 = vld [vmem:[#allocation2 + $0x3c] sm:$0xf]  ;;  %v1492_v37 = vld [vmem:[#allocation2 + $0x18] sm:$0xf] }
  0xc8   : > { %v1258_v47 = vpop.permute.xlu1 %1257  ;;  %v809_v23 = vor.u32 %v807_v58, %v806_v7  ;;  %v811_v30 = vrot.slane %v806_v7, 4  ;;  %v2459_v45 = vshrl.u32 %v2371_v22, 16  ;;  %v2423_v58 = vsel %vm4133_vm14, %v4557_v1, %v4502_v44  ;;  %p3720_p4 = pnand %p3719_p2, %p3901_p3 }
  0xc9   : > { %1752 = vrot.lane.b32.xlu1 %v1641_v18, %s3813_s17  ;;  %1750 = vrot.lane.b32.xlu0 %v1631_v8, %s3813_s17  ;;  %1295 = vst.msk [vmem:[#allocation3 + $0x2c] sm:$0xf] %vm1283_vm15, %v1258_v47  ;;  %v2699_v18 = vrot.slane %v4544_v33, 5  ;;  %v4585_v47 = vrot.slane %v2444_v62, 5  ;;  %v2437_v36 = vrot.slane %v2435_v0, 4  ;;  %v2696_v44 = vsel %vm4000_vm10, %v4553_v60, %v2695_v48 }
  0xca   : > { %1467 = vst.msk [vmem:[#allocation3 + $0x2c] sm:$0xf] %vm1455_vm0, %v4459_v56  ;;  %v2404_v56 = vrot.slane %v2403_v53, 4  ;;  %v2461_v60 = vrot.slane %v2459_v45, 4  ;;  %v1504_v0 = vld [vmem:[#allocation2 + $0x60] sm:$0xf]  ;;  %p3721_p5 = pneg %p3720_p4 }
  0xcb   : > { %v1252_v35 = vpop.permute.xlu0 %1251  ;;  %v2701_v1 = vrot.slane %v2699_v18, 4 }
  0xcc   : > { %1292 = vst.msk [vmem:[#allocation3 + $0x20] sm:$0xf] %vm1283_vm15, %v1252_v35  ;;  %v1242_v50 = vpop.permute.xlu1 %1241  ;;  %v2409_v8 = vsel %vm4133_vm14, %v2404_v56, %v4532_v43  ;;  %v2472_v56 = vshrl.u32 %v4561_v5, 16 }
  0xcd   : > { %1916 = vrot.lane.b32.xlu1 %v1870_v40, %s3812_s14  ;;  %1464 = vst.msk [vmem:[#allocation3 + $0x20] sm:$0xf] %vm1455_vm0, %v4397_v59  ;;  %1914 = vrot.lane.b32.xlu0 %v1867_v4, %s3812_s14  ;;  %v2438_v40 = vshll.u32 %v4555_v39, 16  ;;  %v4594_v4 = vld [vmem:[#allocation2 + $0x24] sm:$0xe] }
  0xce   : > { %1287 = vst.msk [vmem:[#allocation3 + $0xc] sm:$0xf] %vm1283_vm15, %v1242_v50  ;;  %v2462_v50 = vshll.u32 %v2371_v22, 16  ;;  %v3482_v5 = vrot.slane %v4594_v4, 9  ;;  %v2474_v48 = vrot.slane %v2472_v56, 4 }
  0xcf   : > { %1459 = vst.msk [vmem:[#allocation3 + $0xc] sm:$0xf] %vm1455_vm0, %v4478_v10  ;;  %v1240_v59 = vpop.permute.xlu0 %1239  ;;  %v798_v10 = vrot.slane %v796_v31, 7  ;;  %v1493_v31 = vld [vmem:[#allocation2 + $0x1c] sm:$0xf]  ;;  %v2440_v39 = vrot.slane %v2438_v40, 5 }
  0xd0   : > { %1286 = vst.msk [vmem:[#allocation3 + $0x8] sm:$0xf] %vm1283_vm15, %v1240_v59  ;;  %v1262_v17 = vpop.permute.xlu1 %1261  ;;  %v3481_v59 = vrot.slane %v4577_v12, 9  ;;  %v2464_v7 = vrot.slane %v2462_v50, 5  ;;  %v2700_v22 = vsel %vm4000_vm10, %v3482_v5, %v2699_v18  ;;  %v2650_v56 = vld [vmem:[#allocation2 + $0x38] sm:$0x1] }
  0xd1   : > { %1920 = vrot.lane.b32.xlu1 %v1877_v29, %s3812_s14  ;;  %1458 = vst.msk [vmem:[#allocation3 + $0x8] sm:$0xf] %vm1455_vm0, %v4431_v32  ;;  %1918 = vrot.lane.b32.xlu0 %v1874_v41, %s3812_s14  ;;  %v802_v16 = vrot.slane %v798_v10, 4  ;;  %v801_v53 = vor.u32 %v799_v52, %v798_v10  ;;  %v3703_v32 = vld [vmem:[%s5191_s3] sm:$0x3f]   ;;  %v821_v29 = vsel %vm3965_vm9, %v811_v30, %v820_v42  ;;  %v4650_v10 = vrot.slane %v2468_v49, 5 }
  0xd2   : > { %1297 = vst.msk [vmem:[#allocation3 + $0x34] sm:$0xf] %vm1283_vm15, %v1262_v17  ;;  %822 = vst [vmem:[#allocation2 + $0x74] sm:$0x1] %v821_v29  ;;  %v4615_v25 = vsel %vm2059_vm1, %v3703_v32, 0  ;;  %3625 = vmatprep.subr.msk.bf16.mxu1 %vm2059_vm1, %v3703_v32  ;;  %v2465_v4 = vor.u32 %v2464_v7, %v2461_v60  ;;  %v2510_v5 = vshll.u32 %v2377_v34, 16 }
  0xd3   : > { %1469 = vst.msk [vmem:[#allocation3 + $0x34] sm:$0xf] %vm1455_vm0, %v4499_v15  ;;  %v1260_v2 = vpop.permute.xlu0 %1259  ;;  %v810_v15 = vsel %vm3950_vm5, %v802_v16, %v809_v23  ;;  %v817_v41 = vsel %vm3956_vm8, %v801_v53, %v816_v9  ;;  %v1503_v17 = vld [vmem:[#allocation2 + $0x58] sm:$0xf]  ;;  %v1502_v42 = vld [vmem:[#allocation2 + $0x54] sm:$0xf]  ;;  %v2475_v32 = vor.u32 %v2474_v48, %v4650_v10 }
  0xd4   : > { %1296 = vst.msk [vmem:[#allocation3 + $0x30] sm:$0xf] %vm1283_vm15, %v1260_v2  ;;  %v4596_v35 = vld [vmem:[#allocation3 + $0x20] sm:$0xff]   ;;  %v1266_v43 = vpop.permute.xlu1 %1265  ;;  %818 = vst [vmem:[#allocation2 + $0x6c] sm:$0xf] %v817_v41  ;;  %v2478_v23 = vshll.u32 %v2373_v38, 16 }
  0xd5   : > { %2580 = vrot.lane.b32.xlu1 %v2409_v8, %s3813_s17  ;;  %1468 = vst.msk [vmem:[#allocation3 + $0x30] sm:$0xf] %vm1455_vm0, %v4444_v55  ;;  %2578 = vrot.lane.b32.xlu0 %v2399_v21, %s3813_s17  ;;  %v2433_v55 = vsel %vm4133_vm14, %v4540_v57, %v4542_v54  ;;  %v2702_v57 = vrot.slane %v4592_v26, 5  ;;  %v2454_v54 = vshll.u32 %v2370_v46, 16  ;;  %v2441_v8 = vor.u32 %v2440_v39, %v2437_v36  ;;  %v4656_v21 = vld [vmem:[#allocation2 + $0x34] sm:$0xf] }
  0xd6   : > { %1515 = vst.msk [vmem:[#allocation3 + $0x24] sm:$0xf] %vm690_vm2, %v1499_v6  ;;  %1514 = vst.msk [vmem:[#allocation3 + $0x20] sm:$0xf] %vm690_vm2, %v1498_v14  ;;  %v2451_v6 = vor.u32 %v4587_v19, %v4585_v47  ;;  %v3704_v9 = vld [vmem:[%s5191_s3 + $0x10] sm:$0x3f]  }
  0xd7   : > { %819 = vst.msk [vmem:[#allocation2 + $0x70] sm:$0xf] %vm690_vm2, %v810_v15  ;;  %v1264_v62 = vpop.permute.xlu0 %1263  ;;  %v2456_v61 = vrot.slane %v2454_v54, 5  ;;  %3626 = vmatprep.subr.msk.bf16.mxu0 %vm2059_vm1, %v3704_v9  ;;  %v4672_v40 = vsel %vm2059_vm1, %v3704_v9, 0  ;;  %v2442_v26 = vrot.slane %v2441_v8, 4  ;;  %v2706_v41 = vrot.slane %v4656_v21, 5 }
  0xd8   : > { %1299 = vst.msk [vmem:[#allocation3 + $0x3c] sm:$0xf] %vm1283_vm15, %v1266_v43  ;;  %1298 = vst.msk [vmem:[#allocation3 + $0x38] sm:$0xf] %vm1283_vm15, %v1264_v62  ;;  %v4632_v52 = vld [vmem:[#allocation3 + $0x8] sm:$0xff]   ;;  %v2452_v16 = vrot.slane %v2451_v6, 4 }
  0xd9   : > { %2584 = vrot.lane.b32.xlu1 %v2433_v55, %s3813_s17  ;;  %1470 = vst.msk [vmem:[#allocation3 + $0x38] sm:$0xf] %vm1455_vm0, %v4461_v3  ;;  %2582 = vrot.lane.b32.xlu0 %v2423_v58, %s3813_s17  ;;  %v2693_v3 = vsel %vm4000_vm10, %v3481_v59, %v2692_v28  ;;  %v981_v14 = vld [vmem:[#allocation2 + $0x74] sm:$0x1]  ;;  %v2703_v28 = vsel %vm4000_vm10, %v2701_v1, %v2702_v57  ;;  %v2375_v15 = vld [vmem:[#allocation2 + $0x4c] sm:$0xf] }
  0xda   : > { %1509 = vst.msk [vmem:[#allocation3 + $0xc] sm:$0xf] %vm690_vm2, %v1493_v31  ;;  %1508 = vst.msk [vmem:[#allocation3 + $0x8] sm:$0xf] %vm690_vm2, %v1492_v37  ;;  %v2374_v43 = vld [vmem:[#allocation2 + $0x48] sm:$0xf]  ;;  %v2457_v27 = vsel %vm4133_vm14, %v2452_v16, %v2456_v61  ;;  %v2447_v50 = vsel %vm4133_vm14, %v2442_v26, %v4585_v47 }
  0xdb   : > { %v832_v30 = vld [vmem:[#allocation2 + $0x6c] sm:$0x2]  ;;  %v900_v19 = vld [vmem:[#allocation2 + $0x6c] sm:$0x1]  ;;  %v2480_v33 = vrot.slane %v2478_v23, 5  ;;  %v2476_v20 = vrot.slane %v2475_v32, 4 }
  0xdc   : > { %v4662_v53 = vld [vmem:[#allocation3 + $0x30] sm:$0xff]   ;;  %v3418_v2 = vrot.slane %v832_v30, 9  ;;  %v2378_v18 = vld [vmem:[#allocation2 + $0x58] sm:$0xf]  ;;  %v2492_v55 = vshll.u32 %v2375_v15, 16  ;;  %v2496_v45 = vshrl.u32 %v2375_v15, 16 }
  0xdd   : > { %2748 = vrot.lane.b32.xlu1 %v2696_v44, %s3812_s14  ;;  %2746 = vrot.lane.b32.xlu0 %v2693_v3, %s3812_s14  ;;  %1519 = vst.msk [vmem:[#allocation3 + $0x34] sm:$0xf] %vm690_vm2, %v1503_v17  ;;  %1518 = vst.msk [vmem:[#allocation3 + $0x30] sm:$0xf] %vm690_vm2, %v1502_v42  ;;  %v2466_v31 = vrot.slane %v2465_v4, 4  ;;  %v2483_v58 = vshrl.u32 %v2374_v43, 16  ;;  %v2481_v6 = vsel %vm4133_vm14, %v2476_v20, %v2480_v33 }
  0xde   : > { %v912_v12 = vld [vmem:[#allocation2 + $0x70] sm:$0x8]  ;;  %v901_v46 = vsel %vm3965_vm9, %v3418_v2, %v900_v19  ;;  %v2652_v37 = vld [vmem:[#allocation2 + $0x40] sm:$0xf]  ;;  %v2486_v59 = vshll.u32 %v2374_v43, 16  ;;  %v2708_v62 = vrot.slane %v2706_v41, 4 }
  0xdf   : > { %v3428_v63 = vrot.slane %v912_v12, 11  ;;  %902 = vst [vmem:[#allocation2 + $0x6c] sm:$0x1] %v901_v46  ;;  %v2709_v36 = vrot.slane %v2650_v56, 5  ;;  %v2648_v39 = vld [vmem:[#allocation2 + $0x30] sm:$0xe]  ;;  %v2471_v7 = vsel %vm4133_vm14, %v2466_v31, %v4650_v10 }
  0xe0   : > { %v4683_v49 = vld [vmem:[#allocation3 + $0x38] sm:$0xf]  ;;  %v2653_v57 = vld [vmem:[#allocation2 + $0x44] sm:$0x1]  ;;  %v2516_v54 = vshll.u32 %v2378_v18, 16  ;;  %v2520_v44 = vshrl.u32 %v2378_v18, 16 }
  0xe1   : > { %v982_v29 = vsel %vm4011_vm11, %v3428_v63, %v981_v14  ;;  %2752 = vrot.lane.b32.xlu1 %v2703_v28, %s3812_s14  ;;  %1520 = vst.msk [vmem:[#allocation3 + $0x38] sm:$0xf] %vm690_vm2, %v1504_v0  ;;  %2750 = vrot.lane.b32.xlu0 %v2700_v22, %s3812_s14  ;;  %v2507_v1 = vshrl.u32 %v2377_v34, 16  ;;  %v2713_v47 = vrot.slane %v2652_v37, 5  ;;  %v4697_v38 = vrot.slane %v2492_v55, 5 }
  0xe2   : > { %983 = vst [vmem:[#allocation2 + $0x74] sm:$0x1] %v982_v29  ;;  %v2498_v48 = vrot.slane %v2496_v45, 4  ;;  %v3483_v3 = vrot.slane %v2648_v39, 9  ;;  %v2376_v8 = vld [vmem:[#allocation2 + $0x50] sm:$0x1]  ;;  %v2710_v10 = vsel %vm4000_vm10, %v2708_v62, %v2709_v36 }
  0xe3   : > { %v2485_v21 = vrot.slane %v2483_v58, 4  ;;  %v2488_v17 = vrot.slane %v2486_v59, 5  ;;  %v2716_v42 = vrot.slane %v2653_v57, 5  ;;  %v2651_v9 = vld [vmem:[#allocation2 + $0x3c] sm:$0xe]  ;;  %v4704_v61 = vrot.slane %v2516_v54, 5 }
  0xe4   : > { %v2522_v12 = vrot.slane %v2520_v44, 4  ;;  %v2509_v14 = vrot.slane %v2507_v1, 4  ;;  %v2512_v16 = vrot.slane %v2510_v5, 5  ;;  %v2715_v23 = vrot.slane %v2713_v47, 4  ;;  %v2379_v28 = vld [vmem:[#allocation2 + $0x5c] sm:$0x1] }
  0xe5   : > { %2588 = vrot.lane.b32.xlu1 %v2457_v27, %s3813_s17  ;;  %2586 = vrot.lane.b32.xlu0 %v2447_v50, %s3813_s17  ;;  %v2499_v63 = vor.u32 %v2498_v48, %v4697_v38  ;;  %v2502_v30 = vshll.u32 %v2376_v8, 16  ;;  %v2707_v2 = vsel %vm4000_vm10, %v3483_v3, %v2706_v41  ;;  %v3484_v19 = vrot.slane %v2651_v9, 9  ;;  %v4715_v29 = vld [vmem:[#allocation2 + $0x4c] sm:$0xf]  ;;  %v2381_v27 = vld [vmem:[#allocation2 + $0x64] sm:$0xf] }
  0xe6   : > { %v2489_v0 = vor.u32 %v2488_v17, %v2485_v21  ;;  %v2523_v26 = vor.u32 %v2522_v12, %v4704_v61  ;;  %v2526_v4 = vshll.u32 %v2379_v28, 16  ;;  %v2513_v15 = vor.u32 %v2512_v16, %v2509_v14  ;;  %v2380_v45 = vld [vmem:[#allocation2 + $0x60] sm:$0xf]  ;;  %v2656_v37 = vld [vmem:[#allocation2 + $0x50] sm:$0x1] }
  0xe7   : > { %v1246_v60 = vpop.permute.xlu1 %1245  ;;  %v2717_v43 = vsel %vm4000_vm10, %v2715_v23, %v2716_v42  ;;  %v2500_v46 = vrot.slane %v2499_v63, 4  ;;  %v2504_v41 = vrot.slane %v2502_v30, 5  ;;  %v2714_v56 = vsel %vm4000_vm10, %v3484_v19, %v2713_v47  ;;  %v2654_v59 = vld [vmem:[#allocation2 + $0x48] sm:$0xe]  ;;  %v4733_v62 = vld [vmem:[#allocation2 + $0x58] sm:$0xf] }
  0xe8   : > { %1289 = vst.msk [vmem:[#allocation3 + $0x14] sm:$0xf] %vm1283_vm15, %v1246_v60  ;;  %v2490_v18 = vrot.slane %v2489_v0, 4  ;;  %v2720_v55 = vrot.slane %v4715_v29, 5  ;;  %v2524_v34 = vrot.slane %v2523_v26, 4  ;;  %v2528_v50 = vrot.slane %v2526_v4, 5 }
  0xe9   : > { %2592 = vrot.lane.b32.xlu1 %v2481_v6, %s3813_s17  ;;  %2590 = vrot.lane.b32.xlu0 %v2471_v7, %s3813_s17  ;;  %v2514_v31 = vrot.slane %v2513_v15, 4  ;;  %v2505_v58 = vsel %vm4133_vm14, %v2500_v46, %v2504_v41  ;;  %v2540_v36 = vshll.u32 %v2381_v27, 16  ;;  %v2544_v39 = vshrl.u32 %v2381_v27, 16  ;;  %v2384_v1 = vld [vmem:[#allocation2 + $0x70] sm:$0xf] }
  0xea   : > { %v2495_v57 = vsel %vm4133_vm14, %v2490_v18, %v4697_v38  ;;  %v2531_v54 = vshrl.u32 %v2380_v45, 16  ;;  %v2534_v44 = vshll.u32 %v2380_v45, 16  ;;  %v2722_v5 = vrot.slane %v2720_v55, 4  ;;  %v2383_v47 = vld [vmem:[#allocation2 + $0x6c] sm:$0xf] }
  0xeb   : > { %v1410_v32 = vpop.permute.xlu1 %1409  ;;  %v2723_v6 = vrot.slane %v2656_v37, 5  ;;  %v2529_v48 = vsel %vm4133_vm14, %v2524_v34, %v2528_v50  ;;  %v2519_v38 = vsel %vm4133_vm14, %v2514_v31, %v4704_v61  ;;  %v3485_v60 = vrot.slane %v2654_v59, 9  ;;  %v2659_v7 = vld [vmem:[#allocation2 + $0x5c] sm:$0x1]  ;;  %v1501_v8 = vld [vmem:[#allocation2 + $0x4c] sm:$0xf] }
  0xec   : > { %v1244_v22 = vpop.permute.xlu0 %1243  ;;  %v2727_v3 = vrot.slane %v4733_v62, 5  ;;  %v4749_v21 = vrot.slane %v2540_v36, 5  ;;  %v2546_v17 = vrot.slane %v2544_v39, 4  ;;  %v1500_v42 = vld [vmem:[#allocation2 + $0x48] sm:$0xf]  ;;  %v2564_v9 = vshll.u32 %v2384_v1, 16 }
  0xed   : > { %1288 = vst.msk [vmem:[#allocation3 + $0x10] sm:$0xf] %vm1283_vm15, %v1244_v22  ;;  %2756 = vrot.lane.b32.xlu1 %v2710_v10, %s3812_s14  ;;  %2754 = vrot.lane.b32.xlu0 %v2707_v2, %s3812_s14  ;;  %v2568_v12 = vshrl.u32 %v2384_v1, 16  ;;  %v2382_v16 = vld [vmem:[#allocation2 + $0x68] sm:$0x1]  ;;  %v2533_v10 = vrot.slane %v2531_v54, 4  ;;  %v2721_v2 = vsel %vm4000_vm10, %v3485_v60, %v2720_v55 }
  0xee   : > { %v2536_v23 = vrot.slane %v2534_v44, 5  ;;  %v2555_v61 = vshrl.u32 %v2383_v47, 16  ;;  %v2558_v63 = vshll.u32 %v2383_v47, 16  ;;  %v2657_v30 = vld [vmem:[#allocation2 + $0x54] sm:$0xe]  ;;  %v2729_v19 = vrot.slane %v2727_v3, 4 }
  0xef   : > { %v1256_v33 = vpop.permute.xlu1 %1255  ;;  %v2730_v0 = vrot.slane %v2659_v7, 5  ;;  %v1491_v22 = vld [vmem:[#allocation2 + $0x10] sm:$0xf]  ;;  %v2547_v26 = vor.u32 %v2546_v17, %v4749_v21  ;;  %v2550_v4 = vshll.u32 %v2382_v16, 16  ;;  %v4763_v15 = vrot.slane %v2564_v9, 5 }
  0xf0   : > { %v1236_v20 = vpop.permute.xlu0 %1235  ;;  %1294 = vst.msk [vmem:[#allocation3 + $0x28] sm:$0xf] %vm1283_vm15, %v1256_v33  ;;  %v2570_v29 = vrot.slane %v2568_v12, 4  ;;  %v3486_v41 = vrot.slane %v2657_v30, 9  ;;  %v2537_v33 = vor.u32 %v2536_v23, %v2533_v10  ;;  %v2557_v18 = vrot.slane %v2555_v61, 4 }
  0xf1   : > { %1284 = vst.msk [vmem:[#allocation3] sm:$0xf] %vm1283_vm15, %v1236_v20  ;;  %2760 = vrot.lane.b32.xlu1 %v2717_v43, %s3812_s14  ;;  %2758 = vrot.lane.b32.xlu0 %v2714_v56, %s3812_s14  ;;  %v1490_v43 = vld [vmem:[#allocation2 + $0xc] sm:$0xf]  ;;  %v2385_v56 = vld [vmem:[#allocation2 + $0x74] sm:$0x1]  ;;  %v2731_v45 = vsel %vm4000_vm10, %v2729_v19, %v2730_v0 }
  0xf2   : > { %1466 = vst.msk [vmem:[#allocation3 + $0x28] sm:$0xf] %vm1455_vm0, %v4412_v11  ;;  %1456 = vst.msk [vmem:[#allocation3] sm:$0xf] %vm1455_vm0, %v4480_v24  ;;  %v2560_v27 = vrot.slane %v2558_v63, 5  ;;  %v2548_v34 = vrot.slane %v2547_v26, 4  ;;  %v2571_v31 = vor.u32 %v2570_v29, %v4763_v15  ;;  %v2728_v62 = vsel %vm4000_vm10, %v3486_v41, %v2727_v3 }
  0xf3   : > { %v1238_v11 = vpop.permute.xlu1 %1237  ;;  %v1505_v55 = vld [vmem:[#allocation2 + $0x64] sm:$0xf]  ;;  %v2552_v50 = vrot.slane %v2550_v4, 5  ;;  %v2574_v37 = vshll.u32 %v2385_v56, 16  ;;  %v2538_v36 = vrot.slane %v2537_v33, 4  ;;  %vm3147_vm5 = vcmask 25600  }
  0xf4   : > { %1285 = vst.msk [vmem:[#allocation3 + $0x4] sm:$0xf] %vm1283_vm15, %v1238_v11  ;;  %v1755_v24 = vpop.permute.xlu0 %1754  ;;  %v2561_v39 = vor.u32 %v2560_v27, %v2557_v18  ;;  %v2661_v11 = vld [vmem:[#allocation2 + $0x64] sm:$0xf]  ;;  %v2572_v44 = vrot.slane %v2571_v31, 4 }
  0xf5   : > { %1457 = vst.msk [vmem:[#allocation3 + $0x4] sm:$0xf] %vm1455_vm0, %v1410_v32  ;;  %2596 = vrot.lane.b32.xlu1 %v2505_v58, %s3813_s17  ;;  %2594 = vrot.lane.b32.xlu0 %v2495_v57, %s3813_s17  ;;  %v2724_v32 = vsel %vm4000_vm10, %v2722_v5, %v2723_v6  ;;  %v2553_v54 = vsel %vm4133_vm14, %v2548_v34, %v2552_v50  ;;  %v2576_v1 = vrot.slane %v2574_v37, 5  ;;  %v2660_v7 = vld [vmem:[#allocation2 + $0x60] sm:$0xe] }
  0xf6   : > { %1794 = vst.msk [vmem:[#allocation3 + $0x20] sm:$0xf] %vm1283_vm15, %v1755_v24  ;;  %v2734_v24 = vrot.slane %v2661_v11, 5  ;;  %v2543_v6 = vsel %vm4133_vm14, %v2538_v36, %v4749_v21  ;;  %v2562_v47 = vrot.slane %v2561_v39, 4  ;;  %v3487_v12 = vrot.slane %v2660_v7, 9 }
  0xf7   : > { %v1438_v14 = vpop.permute.xlu1 %1437  ;;  %v2577_v3 = vsel %vm4133_vm14, %v2572_v44, %v2576_v1  ;;  %v2663_v10 = vld [vmem:[#allocation2 + $0x6c] sm:$0xe]  ;;  %v1495_v23 = vld [vmem:[#allocation2 + $0x28] sm:$0xf]  ;;  %v1494_v61 = vld [vmem:[#allocation2 + $0x24] sm:$0xf] }
  0xf8   : > { %1471 = vst.msk [vmem:[#allocation3 + $0x3c] sm:$0xf] %vm1455_vm0, %v1438_v14  ;;  %v2567_v9 = vsel %vm4133_vm14, %v2562_v47, %v4763_v15  ;;  %v2665_v14 = vld [vmem:[#allocation2 + $0x74] sm:$0x1]  ;;  %v2735_v19 = vsel %vm4000_vm10, %v3487_v12, %v2734_v24  ;;  %v3488_v0 = vrot.slane %v2663_v10, 9 }
  0xf9   : > { %v4752_v28 = vld [vmem:[#allocation3 + $0x28] sm:$0xff]   ;;  %2600 = vrot.lane.b32.xlu1 %v2529_v48, %s3813_s17  ;;  %2598 = vrot.lane.b32.xlu0 %v2519_v38, %s3813_s17  ;;  %v2662_v48 = vld [vmem:[#allocation2 + $0x68] sm:$0x1]  ;;  %v2664_v38 = vld [vmem:[#allocation2 + $0x70] sm:$0xf]  ;;  %v2744_v51 = vrot.slane %v2665_v14, 5 }
  0xfa   : > { %1517 = vst.msk [vmem:[#allocation3 + $0x2c] sm:$0xf] %vm690_vm2, %v1501_v8  ;;  %1516 = vst.msk [vmem:[#allocation3 + $0x28] sm:$0xf] %vm690_vm2, %v1500_v42  ;;  %v2736_v8 = vrot.slane %v2734_v24, 4  ;;  %v2737_v17 = vrot.slane %v2662_v48, 5 }
  0xfb   : > { %v1757_v46 = vpop.permute.xlu1 %1756  ;;  %v2741_v42 = vrot.slane %v2664_v38, 5  ;;  %v2339_v41 = vld [vmem:[#allocation2 + $0x4c] sm:$0xf]  ;;  %v1497_v27 = vld [vmem:[#allocation2 + $0x34] sm:$0xf] }
  0xfc   : > { %1795 = vst.msk [vmem:[#allocation3 + $0x24] sm:$0xf] %vm1283_vm15, %v1757_v46  ;;  %v4766_v20 = vld [vmem:[#allocation3] sm:$0xff]   ;;  %v2738_v63 = vsel %vm4000_vm10, %v2736_v8, %v2737_v17  ;;  %v2338_v46 = vld [vmem:[#allocation2 + $0x48] sm:$0xf] }
  0xfd   : > { %2764 = vrot.lane.b32.xlu1 %v2724_v32, %s3812_s14  ;;  %1507 = vst.msk [vmem:[#allocation3 + $0x4] sm:$0xf] %vm690_vm2, %v1491_v22  ;;  %1506 = vst.msk [vmem:[#allocation3] sm:$0xf] %vm690_vm2, %v1490_v43  ;;  %2762 = vrot.lane.b32.xlu0 %v2721_v2, %s3812_s14  ;;  %v2743_v30 = vrot.slane %v2741_v42, 4  ;;  %v2742_v29 = vsel %vm4000_vm10, %v3488_v0, %v2741_v42 }
  0xfe   : > { %v2330_v24 = vld [vmem:[#allocation2 + $0x18] sm:$0xf]  ;;  %v2333_v38 = vld [vmem:[#allocation2 + $0x28] sm:$0xf]  ;;  %v2343_v14 = vld [vmem:[#allocation2 + $0x64] sm:$0xf] }
  0xff   : > { %v4775_v58 = vld [vmem:[#allocation3 + $0x3c] sm:$0xf]  ;;  %v1250_v59 = vpop.permute.xlu1 %1249  ;;  %v1248_v57 = vpop.permute.xlu0 %1247  ;;  %v2745_v4 = vsel %vm4000_vm10, %v2743_v30, %v2744_v51 }
 0x100   : > { %1521 = vst.msk [vmem:[#allocation3 + $0x3c] sm:$0xf] %vm690_vm2, %v1505_v55 }
 0x101   : > { %1291 = vst.msk [vmem:[#allocation3 + $0x1c] sm:$0xf] %vm1283_vm15, %v1250_v59  ;;  %1290 = vst.msk [vmem:[#allocation3 + $0x18] sm:$0xf] %vm1283_vm15, %v1248_v57  ;;  %2768 = vrot.lane.b32.xlu1 %v2731_v45, %s3812_s14  ;;  %2766 = vrot.lane.b32.xlu0 %v2728_v62, %s3812_s14  ;;  %v2341_v59 = vld [vmem:[#allocation2 + $0x58] sm:$0xf] }
 0x102   : > { %v2340_v62 = vld [vmem:[#allocation2 + $0x54] sm:$0xf] }
 0x103   : > { %v1418_v5 = vpop.permute.xlu1 %1417  ;;  %v1416_v60 = vpop.permute.xlu0 %1415 }
 0x104   : > { %1461 = vst.msk [vmem:[#allocation3 + $0x14] sm:$0xf] %vm1455_vm0, %v1418_v5  ;;  %1460 = vst.msk [vmem:[#allocation3 + $0x10] sm:$0xf] %vm1455_vm0, %v1416_v60  ;;  %v2331_v5 = vld [vmem:[#allocation2 + $0x1c] sm:$0xf] }
 0x105   : > { %2604 = vrot.lane.b32.xlu1 %v2553_v54, %s3813_s17  ;;  %2602 = vrot.lane.b32.xlu0 %v2543_v6, %s3813_s17  ;;  %v2332_v60 = vld [vmem:[#allocation2 + $0x24] sm:$0xf] }
 0x107   : > { %v1761_v21 = vpop.permute.xlu1 %1760  ;;  %v1759_v16 = vpop.permute.xlu0 %1758 }
 0x108   : > { %1797 = vst.msk [vmem:[#allocation3 + $0x2c] sm:$0xf] %vm1283_vm15, %v1761_v21  ;;  %1796 = vst.msk [vmem:[#allocation3 + $0x28] sm:$0xf] %vm1283_vm15, %v1759_v16  ;;  %v2342_v16 = vld [vmem:[#allocation2 + $0x60] sm:$0xf] }
 0x109   : > { %2608 = vrot.lane.b32.xlu1 %v2577_v3, %s3813_s17  ;;  %2606 = vrot.lane.b32.xlu0 %v2567_v9, %s3813_s17  ;;  %s5141_s17 = scalar_lea.hbm %s5194_s6, %s3511_s9 }
 0x10b   : > { %v4804_v32 = vld [vmem:[#allocation3 + $0x14] sm:$0xf]  ;;  %v1925_v2 = vpop.permute.xlu1 %1924  ;;  %v4809_v22 = vld [vmem:[#allocation3 + $0x10] sm:$0xf]  ;;  %v1923_v26 = vpop.permute.xlu0 %1922 }
 0x10c   : > { %1511 = vst.msk [vmem:[#allocation3 + $0x14] sm:$0xf] %vm690_vm2, %v1495_v23  ;;  %1510 = vst.msk [vmem:[#allocation3 + $0x10] sm:$0xf] %vm690_vm2, %v1494_v61 }
 0x10d   : > { %1963 = vst.msk [vmem:[#allocation3 + $0x24] sm:$0xf] %vm1455_vm0, %v1925_v2  ;;  %1962 = vst.msk [vmem:[#allocation3 + $0x20] sm:$0xf] %vm1455_vm0, %v1923_v26  ;;  %2772 = vrot.lane.b32.xlu1 %v2738_v63, %s3812_s14  ;;  %2770 = vrot.lane.b32.xlu0 %v2735_v19, %s3812_s14  ;;  %v2345_v2 = vld [vmem:[#allocation2 + $0x70] sm:$0xf] }
 0x10e   : > { %v2344_v19 = vld [vmem:[#allocation2 + $0x6c] sm:$0xf] }
 0x10f   : > { %v1422_v15 = vpop.permute.xlu1 %1421  ;;  %v1420_v43 = vpop.permute.xlu0 %1419 }
 0x110   : > { %1463 = vst.msk [vmem:[#allocation3 + $0x1c] sm:$0xf] %vm1455_vm0, %v1422_v15  ;;  %1462 = vst.msk [vmem:[#allocation3 + $0x18] sm:$0xf] %vm1455_vm0, %v1420_v43 }
 0x111   : > { %2776 = vrot.lane.b32.xlu1 %v2745_v4, %s3812_s14  ;;  %2774 = vrot.lane.b32.xlu0 %v2742_v29, %s3812_s14 }
 0x113   : > { %v1741_v33 = vpop.permute.xlu1 %1740  ;;  %v1739_v56 = vpop.permute.xlu0 %1738 }
 0x114   : > { %1787 = vst.msk [vmem:[#allocation3 + $0x4] sm:$0xf] %vm1283_vm15, %v1741_v33  ;;  %v3700_v18 = vld [vmem:[#allocation3 + $0x20] sm:$0xff]   ;;  %1786 = vst.msk [vmem:[#allocation3] sm:$0xf] %vm1283_vm15, %v1739_v56 }
 0x115   : > { %2354 = vst.msk [vmem:[#allocation3 + $0x20] sm:$0xf] %vm690_vm2, %v2338_v46  ;;  %2355 = vst.msk [vmem:[#allocation3 + $0x24] sm:$0xf] %vm690_vm2, %v2339_v41  ;;  %3577 = vmatprep.mubr.msk.bf16.mxu1 %vm2034_vm3, %v3700_v18  ;;  %v2335_v41 = vld [vmem:[#allocation2 + $0x34] sm:$0xf] }
 0x116   : > { %v2334_v33 = vld [vmem:[#allocation2 + $0x30] sm:$0xf] }
 0x117   : > { %v4829_v55 = vld [vmem:[#allocation3 + $0x1c] sm:$0xf]  ;;  %v1929_v45 = vpop.permute.xlu1 %1928  ;;  %v4832_v34 = vld [vmem:[#allocation3 + $0x18] sm:$0xf]  ;;  %v1927_v50 = vpop.permute.xlu0 %1926 }
 0x118   : > { %1513 = vst.msk [vmem:[#allocation3 + $0x1c] sm:$0xf] %vm690_vm2, %v1497_v27  ;;  %1512 = vst.msk [vmem:[#allocation3 + $0x18] sm:$0xf] %vm690_vm2, %v1496_v13 }
 0x119   : > { %1965 = vst.msk [vmem:[#allocation3 + $0x2c] sm:$0xf] %vm1455_vm0, %v1929_v45  ;;  %1964 = vst.msk [vmem:[#allocation3 + $0x28] sm:$0xf] %vm1455_vm0, %v1927_v50  ;;  %v2337_v45 = vld [vmem:[#allocation2 + $0x40] sm:$0xf] }
 0x11b   : > { %v1745_v31 = vpop.permute.xlu1 %1744  ;;  %v1743_v37 = vpop.permute.xlu0 %1742 }
 0x11c   : > { %1789 = vst.msk [vmem:[#allocation3 + $0xc] sm:$0xf] %vm1283_vm15, %v1745_v31  ;;  %1788 = vst.msk [vmem:[#allocation3 + $0x8] sm:$0xf] %vm1283_vm15, %v1743_v37  ;;  %v3466_v31 = vcombine.low %v4809_v22, %v4804_v32 }
 0x11f   : > { %v1909_v39 = vpop.permute.xlu1 %1908  ;;  %v1907_v57 = vpop.permute.xlu0 %1906 }
 0x120   : > { %v1981_v36 = vld [vmem:[#allocation3 + $0x2c] sm:$0xf]  ;;  %v1980_v11 = vld [vmem:[#allocation3 + $0x28] sm:$0xf]  ;;  %1955 = vst.msk [vmem:[#allocation3 + $0x4] sm:$0xf] %vm1455_vm0, %v1909_v39  ;;  %v3467_v39 = vcombine.low %v4832_v34, %v4829_v55 }
 0x121   : > { %2357 = vst.msk [vmem:[#allocation3 + $0x2c] sm:$0xf] %vm690_vm2, %v2341_v59  ;;  %2356 = vst.msk [vmem:[#allocation3 + $0x28] sm:$0xf] %vm690_vm2, %v2340_v62  ;;  %v3452_v54 = vcombine.low %v1980_v11, %v1981_v36 }
 0x122   : > { %1954 = vst.msk [vmem:[#allocation3] sm:$0xf] %vm1455_vm0, %v1907_v57 }
 0x123   : > { %3578 = vmatmul.mubr.msk.bf16.vlgmr.msra.gmra.mxu1 %vm2034_vm3, %v3452_v54  ;;  %v1913_v44 = vpop.permute.xlu1 %1912  ;;  %v1911_v1 = vpop.permute.xlu0 %1910 }
 0x124   : > { %1957 = vst.msk [vmem:[#allocation3 + $0xc] sm:$0xf] %vm1455_vm0, %v1913_v44  ;;  %3586 = vmatpush3.bf16.msra.mxu1 %v4615_v25  ;;  %1956 = vst.msk [vmem:[#allocation3 + $0x8] sm:$0xf] %vm1455_vm0, %v1911_v1 }
 0x127   : > { %v1765_v6 = vpop.permute.xlu1 %1764  ;;  %v1763_v47 = vpop.permute.xlu0 %1762 }
 0x128   : > { %1799 = vst.msk [vmem:[#allocation3 + $0x34] sm:$0xf] %vm1283_vm15, %v1765_v6  ;;  %1798 = vst.msk [vmem:[#allocation3 + $0x30] sm:$0xf] %vm1283_vm15, %v1763_v47 }
 0x129   : > { %v3702_v48 = vld [vmem:[#allocation3] sm:$0xff]  }
 0x12a   : > { %2346 = vst.msk [vmem:[#allocation3] sm:$0xf] %vm690_vm2, %v2330_v24  ;;  %2347 = vst.msk [vmem:[#allocation3 + $0x4] sm:$0xf] %vm690_vm2, %v2331_v5  ;;  %3569 = vmatprep.mubr.msk.bf16.mxu0 %vm2034_vm3, %v3702_v48 }
 0x12b   : > { %v1973_v25 = vld [vmem:[#allocation3 + $0xc] sm:$0xf]  ;;  %v1769_v7 = vpop.permute.xlu1 %1768  ;;  %v1972_v3 = vld [vmem:[#allocation3 + $0x8] sm:$0xf]  ;;  %v1767_v8 = vpop.permute.xlu0 %1766 }
 0x12c   : > { %2349 = vst.msk [vmem:[#allocation3 + $0xc] sm:$0xf] %vm690_vm2, %v2333_v38  ;;  %2348 = vst.msk [vmem:[#allocation3 + $0x8] sm:$0xf] %vm690_vm2, %v2332_v60  ;;  %v3448_v17 = vcombine.low %v1972_v3, %v1973_v25 }
 0x12d   : > { %1801 = vst.msk [vmem:[#allocation3 + $0x3c] sm:$0xf] %vm1283_vm15, %v1769_v7  ;;  %1800 = vst.msk [vmem:[#allocation3 + $0x38] sm:$0xf] %vm1283_vm15, %v1767_v8 }
 0x12e   : > { %3570 = vmatmul.mubr.msk.bf16.vlgmr.msra.gmra.mxu0 %vm2034_vm3, %v3448_v17 }
 0x12f   : > { %v1933_v42 = vpop.permute.xlu1 %1932  ;;  %v1931_v21 = vpop.permute.xlu0 %1930  ;;  %3604 = vmatpush3.bf16.msra.mxu0 %v4672_v40 }
 0x130   : > { %1967 = vst.msk [vmem:[#allocation3 + $0x34] sm:$0xf] %vm1455_vm0, %v1933_v42  ;;  %1966 = vst.msk [vmem:[#allocation3 + $0x30] sm:$0xf] %vm1455_vm0, %v1931_v21 }
 0x133   : > { %v1749_v9 = vpop.permute.xlu1 %1748  ;;  %v1747_v12 = vpop.permute.xlu0 %1746 }
 0x134   : > { %1791 = vst.msk [vmem:[#allocation3 + $0x14] sm:$0xf] %vm1283_vm15, %v1749_v9  ;;  %1790 = vst.msk [vmem:[#allocation3 + $0x10] sm:$0xf] %vm1283_vm15, %v1747_v12 }
 0x137   : > { %v1983_v10 = vld [vmem:[#allocation3 + $0x34] sm:$0xf]  ;;  %v1937_v23 = vpop.permute.xlu1 %1936  ;;  %v1982_v61 = vld [vmem:[#allocation3 + $0x30] sm:$0xf]  ;;  %v1935_v63 = vpop.permute.xlu0 %1934 }
 0x138   : > { %2359 = vst.msk [vmem:[#allocation3 + $0x34] sm:$0xf] %vm690_vm2, %v2343_v14  ;;  %2358 = vst.msk [vmem:[#allocation3 + $0x30] sm:$0xf] %vm690_vm2, %v2342_v16  ;;  %v3453_v40 = vcombine.low %v1982_v61, %v1983_v10 }
 0x139   : > { %1969 = vst.msk [vmem:[#allocation3 + $0x3c] sm:$0xf] %vm1455_vm0, %v1937_v23  ;;  %1968 = vst.msk [vmem:[#allocation3 + $0x38] sm:$0xf] %vm1455_vm0, %v1935_v63 }
 0x13a   : > { %3581 = vmatprep.mubr.msk.bf16.mxu1 %vm2034_vm3, %v3453_v40 }
 0x13b   : > { %v1753_v30 = vpop.permute.xlu1 %1752  ;;  %v1751_v51 = vpop.permute.xlu0 %1750 }
 0x13c   : > { %1793 = vst.msk [vmem:[#allocation3 + $0x1c] sm:$0xf] %vm1283_vm15, %v1753_v30  ;;  %1792 = vst.msk [vmem:[#allocation3 + $0x18] sm:$0xf] %vm1283_vm15, %v1751_v51 }
 0x13f   : > { %v1917_v26 = vpop.permute.xlu1 %1916  ;;  %v1915_v15 = vpop.permute.xlu0 %1914 }
 0x140   : > { %v1985_v0 = vld [vmem:[#allocation3 + $0x3c] sm:$0xf]  ;;  %v1984_v4 = vld [vmem:[#allocation3 + $0x38] sm:$0xf]  ;;  %1959 = vst.msk [vmem:[#allocation3 + $0x14] sm:$0xf] %vm1455_vm0, %v1917_v26 }
 0x141   : > { %2361 = vst.msk [vmem:[#allocation3 + $0x3c] sm:$0xf] %vm690_vm2, %v2345_v2  ;;  %2360 = vst.msk [vmem:[#allocation3 + $0x38] sm:$0xf] %vm690_vm2, %v2344_v19  ;;  %v3454_v29 = vcombine.low %v1984_v4, %v1985_v0 }
 0x142   : > { %1958 = vst.msk [vmem:[#allocation3 + $0x10] sm:$0xf] %vm1455_vm0, %v1915_v15 }
 0x143   : > { %3582 = vmatmul.mubr.msk.bf16.gmra.mxu1 %vm2034_vm3, %v3454_v29  ;;  %v1921_v43 = vpop.permute.xlu1 %1920  ;;  %v1919_v46 = vpop.permute.xlu0 %1918 }
 0x144   : > { %1961 = vst.msk [vmem:[#allocation3 + $0x1c] sm:$0xf] %vm1455_vm0, %v1921_v43  ;;  %3587 = vmatprep.mubr.msk.bf16.mxu1 %vm2034_vm3, %v4766_v20  ;;  %1960 = vst.msk [vmem:[#allocation3 + $0x18] sm:$0xf] %vm1455_vm0, %v1919_v46  ;;  %v2336_v20 = vld [vmem:[#allocation2 + $0x3c] sm:$0xf] }
 0x147   : > { %v1975_v56 = vld [vmem:[#allocation3 + $0x14] sm:$0xf]  ;;  %v2581_v18 = vpop.permute.xlu1 %2580  ;;  %v2579_v13 = vpop.permute.xlu0 %2578 }
 0x148   : > { %2351 = vst.msk [vmem:[#allocation3 + $0x14] sm:$0xf] %vm690_vm2, %v2335_v41 }
 0x149   : > { %v1974_v27 = vld [vmem:[#allocation3 + $0x10] sm:$0xf]  ;;  %2627 = vst.msk [vmem:[#allocation3 + $0x4] sm:$0xf] %vm1283_vm15, %v2581_v18  ;;  %2626 = vst.msk [vmem:[#allocation3] sm:$0xf] %vm1283_vm15, %v2579_v13 }
 0x14a   : > { %2350 = vst.msk [vmem:[#allocation3 + $0x10] sm:$0xf] %vm690_vm2, %v2334_v33  ;;  %v3449_v50 = vcombine.low %v1974_v27, %v1975_v56 }
 0x14b   : > { %v1977_v37 = vld [vmem:[#allocation3 + $0x1c] sm:$0xf]  ;;  %3588 = vmatmul.mubr.msk.bf16.vlgmr.msra.gmra.mxu1 %vm2034_vm3, %v4632_v52  ;;  %v2585_v59 = vpop.permute.xlu1 %2584  ;;  %v1976_v62 = vld [vmem:[#allocation3 + $0x18] sm:$0xf]  ;;  %v2583_v36 = vpop.permute.xlu0 %2582 }
 0x14c   : > { %3573 = vmatprep.mubr.msk.bf16.mxu0 %vm2034_vm3, %v3449_v50  ;;  %2353 = vst.msk [vmem:[#allocation3 + $0x1c] sm:$0xf] %vm690_vm2, %v2337_v45  ;;  %3591 = vmatprep.mubr.msk.bf16.mxu1 %vm2034_vm3, %v3466_v31  ;;  %2352 = vst.msk [vmem:[#allocation3 + $0x18] sm:$0xf] %vm690_vm2, %v2336_v20  ;;  %v3450_v32 = vcombine.low %v1976_v62, %v1977_v37  ;;  %v4960_v37 = vld [vmem:[%s5192_s4] ss:$0 sm:$0xff] }
 0x14d   : > { %2629 = vst.msk [vmem:[#allocation3 + $0xc] sm:$0xf] %vm1283_vm15, %v2585_v59  ;;  %2628 = vst.msk [vmem:[#allocation3 + $0x8] sm:$0xf] %vm1283_vm15, %v2583_v36  ;;  %vm3037_vm2 = vcmask 31744  }
 0x14e   : > { %3574 = vmatmul.mubr.msk.bf16.gmra.mxu0 %vm2034_vm3, %v3450_v32 }
 0x14f   : > { %v2749_v22 = vpop.permute.xlu1 %2748  ;;  %v2747_v52 = vpop.permute.xlu0 %2746 }
 0x150   : > { %2795 = vst.msk [vmem:[#allocation3 + $0x4] sm:$0xf] %vm1455_vm0, %v2749_v22  ;;  %2794 = vst.msk [vmem:[#allocation3] sm:$0xf] %vm1455_vm0, %v2747_v52 }
 0x153   : > { %3592 = vmatmul.mubr.msk.bf16.gmra.mxu1 %vm2034_vm3, %v3467_v39  ;;  %v2753_v11 = vpop.permute.xlu1 %2752  ;;  %v2751_v57 = vpop.permute.xlu0 %2750 }
 0x154   : > { %2797 = vst.msk [vmem:[#allocation3 + $0xc] sm:$0xf] %vm1455_vm0, %v2753_v11  ;;  %3595 = vmatprep.mubr.msk.bf16.mxu1 %vm2034_vm3, %v4596_v35  ;;  %2796 = vst.msk [vmem:[#allocation3 + $0x8] sm:$0xf] %vm1455_vm0, %v2751_v57 }
 0x157   : > { %v2589_v54 = vpop.permute.xlu1 %2588  ;;  %v2587_v44 = vpop.permute.xlu0 %2586  ;;  %v3705_v1 = vld [vmem:[#allocation3] sm:$0xff]  }
 0x158   : > { %2631 = vst.msk [vmem:[#allocation3 + $0x14] sm:$0xf] %vm1283_vm15, %v2589_v54  ;;  %2630 = vst.msk [vmem:[#allocation3 + $0x10] sm:$0xf] %vm1283_vm15, %v2587_v44  ;;  %3605 = vmatprep.mubr.msk.bf16.mxu0 %vm2034_vm3, %v3705_v1 }
 0x15b   : > { %3596 = vmatmul.mubr.msk.bf16.gmra.mxu1 %vm2034_vm3, %v4752_v28  ;;  %v2593_v55 = vpop.permute.xlu1 %2592  ;;  %v2591_v34 = vpop.permute.xlu0 %2590  ;;  %v3706_v35 = vld [vmem:[#allocation3 + $0x8] sm:$0xff]   ;;  %v3471_v28 = vcombine.low %v4683_v49, %v4775_v58 }
 0x15c   : > { %2633 = vst.msk [vmem:[#allocation3 + $0x1c] sm:$0xf] %vm1283_vm15, %v2593_v55  ;;  %3599 = vmatprep.mubr.msk.bf16.mxu1 %vm2034_vm3, %v4662_v53  ;;  %2632 = vst.msk [vmem:[#allocation3 + $0x18] sm:$0xf] %vm1283_vm15, %v2591_v34  ;;  %3606 = vmatmul.mubr.msk.bf16.vlgmr.msra.gmra.mxu0 %vm2034_vm3, %v3706_v35 }
 0x15f   : > { %v2757_v24 = vpop.permute.xlu1 %2756  ;;  %v2755_v5 = vpop.permute.xlu0 %2754 }
 0x160   : > { %2799 = vst.msk [vmem:[#allocation3 + $0x14] sm:$0xf] %vm1455_vm0, %v2757_v24  ;;  %2798 = vst.msk [vmem:[#allocation3 + $0x10] sm:$0xf] %vm1455_vm0, %v2755_v5 }
 0x163   : > { %3600 = vmatmul.mubr.msk.bf16.gmra.mxu1 %vm2034_vm3, %v3471_v28  ;;  %v2761_v6 = vpop.permute.xlu1 %2760  ;;  %v2759_v53 = vpop.permute.xlu0 %2758 }
 0x164   : > { %2801 = vst.msk [vmem:[#allocation3 + $0x1c] sm:$0xf] %vm1455_vm0, %v2761_v6  ;;  %2800 = vst.msk [vmem:[#allocation3 + $0x18] sm:$0xf] %vm1455_vm0, %v2759_v53 }
 0x167   : > { %v2597_v47 = vpop.permute.xlu1 %2596  ;;  %v2595_v48 = vpop.permute.xlu0 %2594  ;;  %v3707_v38 = vld [vmem:[#allocation3 + $0x10] sm:$0xff]  }
 0x168   : > { %2635 = vst.msk [vmem:[#allocation3 + $0x24] sm:$0xf] %vm1283_vm15, %v2597_v47  ;;  %2634 = vst.msk [vmem:[#allocation3 + $0x20] sm:$0xf] %vm1283_vm15, %v2595_v48  ;;  %3609 = vmatprep.mubr.msk.bf16.mxu0 %vm2034_vm3, %v3707_v38 }
 0x16b   : > { %v2601_v60 = vpop.permute.xlu1 %2600  ;;  %v2599_v49 = vpop.permute.xlu0 %2598  ;;  %v3708_v58 = vld [vmem:[#allocation3 + $0x18] sm:$0xff]  }
 0x16c   : > { %2637 = vst.msk [vmem:[#allocation3 + $0x2c] sm:$0xf] %vm1283_vm15, %v2601_v60  ;;  %2636 = vst.msk [vmem:[#allocation3 + $0x28] sm:$0xf] %vm1283_vm15, %v2599_v49  ;;  %3610 = vmatmul.mubr.msk.bf16.gmra.mxu0 %vm2034_vm3, %v3708_v58 }
 0x16f   : > { %v2765_v25 = vpop.permute.xlu1 %2764  ;;  %v2763_v7 = vpop.permute.xlu0 %2762 }
 0x170   : > { %2803 = vst.msk [vmem:[#allocation3 + $0x24] sm:$0xf] %vm1455_vm0, %v2765_v25  ;;  %2802 = vst.msk [vmem:[#allocation3 + $0x20] sm:$0xf] %vm1455_vm0, %v2763_v7 }
 0x173   : > { %v2769_v3 = vpop.permute.xlu1 %2768  ;;  %v2767_v8 = vpop.permute.xlu0 %2766 }
 0x174   : > { %2805 = vst.msk [vmem:[#allocation3 + $0x2c] sm:$0xf] %vm1455_vm0, %v2769_v3  ;;  %2804 = vst.msk [vmem:[#allocation3 + $0x28] sm:$0xf] %vm1455_vm0, %v2767_v8 }
 0x177   : > { %v2605_v17 = vpop.permute.xlu1 %2604  ;;  %v2603_v42 = vpop.permute.xlu0 %2602  ;;  %v3709_v21 = vld [vmem:[#allocation3 + $0x20] sm:$0xff]  }
 0x178   : > { %2639 = vst.msk [vmem:[#allocation3 + $0x34] sm:$0xf] %vm1283_vm15, %v2605_v17  ;;  %2638 = vst.msk [vmem:[#allocation3 + $0x30] sm:$0xf] %vm1283_vm15, %v2603_v42  ;;  %3613 = vmatprep.mubr.msk.bf16.mxu0 %vm2034_vm3, %v3709_v21 }
 0x17b   : > { %v2609_v9 = vpop.permute.xlu1 %2608  ;;  %v2607_v12 = vpop.permute.xlu0 %2606  ;;  %v3710_v14 = vld [vmem:[#allocation3 + $0x28] sm:$0xff]  }
 0x17c   : > { %2641 = vst.msk [vmem:[#allocation3 + $0x3c] sm:$0xf] %vm1283_vm15, %v2609_v9  ;;  %2640 = vst.msk [vmem:[#allocation3 + $0x38] sm:$0xf] %vm1283_vm15, %v2607_v12  ;;  %3614 = vmatmul.mubr.msk.bf16.gmra.mxu0 %vm2034_vm3, %v3710_v14 }
 0x17f   : > { %v2773_v16 = vpop.permute.xlu1 %2772  ;;  %v2771_v10 = vpop.permute.xlu0 %2770 }
 0x180   : > { %2807 = vst.msk [vmem:[#allocation3 + $0x34] sm:$0xf] %vm1455_vm0, %v2773_v16  ;;  %2806 = vst.msk [vmem:[#allocation3 + $0x30] sm:$0xf] %vm1455_vm0, %v2771_v10 }
 0x183   : > { %v2777_v23 = vpop.permute.xlu1 %2776  ;;  %v2775_v61 = vpop.permute.xlu0 %2774 }
 0x184   : > { %2809 = vst.msk [vmem:[#allocation3 + $0x3c] sm:$0xf] %vm1455_vm0, %v2777_v23  ;;  %2808 = vst.msk [vmem:[#allocation3 + $0x38] sm:$0xf] %vm1455_vm0, %v2775_v61 }
 0x187   : > { %v3711_v63 = vld [vmem:[#allocation3 + $0x30] sm:$0xff]  }
 0x188   : > { %3617 = vmatprep.mubr.msk.bf16.mxu0 %vm2034_vm3, %v3711_v63 }
 0x18b   : > { %v3712_v40 = vld [vmem:[#allocation3 + $0x38] sm:$0xff]  }
 0x18c   : > { %3618 = vmatmul.mubr.msk.bf16.gmra.mxu0 %vm2034_vm3, %v3712_v40 }
 0x1e3   : > { %v4941_v30 = vpop.f32.mrf.mxu1 }
 0x1e5   : > { %v4943_v51 = vpop.f32.mrf.mxu1 }
 0x1e7   : > { %v4945_v2 = vpop.f32.mrf.mxu1 }
 0x1e9   : > { %v4947_v19 = vpop.f32.mrf.mxu1 }
 0x1ee   : > { %v3571_v0 = vpop.f32.mrf.mxu0 }
 0x1f0   : > { %v2097_v4 = vpop.f32.mrf.mxu0 }
 0x1f2   : > { %v3572_v29 = vpop.f32.mrf.mxu0 }
 0x1f4   : > { %v2100_v46 = vpop.f32.mrf.mxu0 }
 0x203   : > { %v4949_v26 = vpop.f32.mrf.mxu1 }
 0x205   : > { %v4951_v15 = vpop.f32.mrf.mxu1 }
 0x207   : > { %v4953_v43 = vpop.f32.mrf.mxu1 }
 0x209   : > { %v4955_v41 = vpop.f32.mrf.mxu1 }
 0x20b   : > { %v3589_v56 = vpop.f32.mrf.mxu1 }
 0x20c   : > { %v2275_v20 = vadd.f32 %v3589_v56, %v3571_v0 }
 0x20d   : > { %v2266_v27 = vpop.f32.mrf.mxu1 }
 0x20e   : > { %v3575_v33 = vpop.f32.mrf.mxu0  ;;  %v2267_v59 = vadd.f32 %v2266_v27, %v2097_v4 }
 0x20f   : > { %v3590_v45 = vpop.f32.mrf.mxu1 }
 0x210   : > { %v2113_v18 = vpop.f32.mrf.mxu0  ;;  %v2278_v22 = vadd.f32 %v3590_v45, %v3572_v29 }
 0x211   : > { %v2269_v36 = vpop.f32.mrf.mxu1 }
 0x212   : > { %v3576_v13 = vpop.f32.mrf.mxu0  ;;  %v2270_v57 = vadd.f32 %v2269_v36, %v2100_v46 }
 0x213   : > { %v3593_v1 = vpop.f32.mrf.mxu1 }
 0x214   : > { %v2116_v50 = vpop.f32.mrf.mxu0  ;;  %v2291_v6 = vadd.f32 %v3593_v1, %v3575_v33 }
 0x215   : > { %v2282_v5 = vpop.f32.mrf.mxu1 }
 0x216   : > { %v2283_v47 = vadd.f32 %v2282_v5, %v2113_v18 }
 0x217   : > { %v3594_v28 = vpop.f32.mrf.mxu1 }
 0x218   : > { %v2294_v49 = vadd.f32 %v3594_v28, %v3576_v13 }
 0x219   : > { %v2285_v38 = vpop.f32.mrf.mxu1 }
 0x21a   : > { %v2286_v3 = vadd.f32 %v2285_v38, %v2116_v50 }
 0x21b   : > { %v3597_v21 = vpop.f32.mrf.mxu1 }
 0x21c   : > { %v3607_v31 = vpop.f32.mrf.mxu0  ;;  %v2307_v4 = vadd.f32 %v3597_v21, %v4941_v30 }
 0x21d   : > { %v3000_v62 = vadd.f32 %v3607_v31, %v2275_v20  ;;  %v2298_v61 = vpop.f32.mrf.mxu1 }
 0x21e   : > { %v2935_v32 = vpop.f32.mrf.mxu0  ;;  %v2299_v18 = vadd.f32 %v2298_v61, %v4943_v51 }
 0x21f   : > { %v4970_v52 = vadd.f32 %v4960_v37, %v3000_v62  ;;  %v2998_v39 = vadd.f32 %v2935_v32, %v2267_v59  ;;  %v3598_v0 = vpop.f32.mrf.mxu1 }
 0x220   : > { %v3608_v11 = vpop.f32.mrf.mxu0  ;;  %v2310_v30 = vadd.f32 %v3598_v0, %v4945_v2 }
 0x221   : > { %3151 = vst.msk [vmem:[%s4967_s18 + $0x10] sm:$0xff] %vm3037_vm2, %v4970_v52  ;;  %v4976_v54 = vadd.f32 %v4960_v37, %v2998_v39  ;;  %v3001_v44 = vadd.f32 %v3608_v11, %v2278_v22  ;;  %v3041_v63 = vsel %vm3037_vm2, %v4970_v52, 0.0  ;;  %v2301_v45 = vpop.f32.mrf.mxu1 }
 0x222   : > { %v2938_v55 = vpop.f32.mrf.mxu0  ;;  %v2302_v32 = vadd.f32 %v2301_v45, %v4947_v19 }
 0x223   : > { %3149 = vst.msk [vmem:[%s4967_s18] sm:$0xff] %vm3037_vm2, %v4976_v54  ;;  %v4982_v34 = vadd.f32 %v4960_v37, %v3001_v44  ;;  %v2999_v35 = vadd.f32 %v2938_v55, %v2270_v57  ;;  %v3038_v12 = vsel %vm3037_vm2, %v4976_v54, 0.0  ;;  %v3601_v39 = vpop.f32.mrf.mxu1 }
 0x225   : > { %3152 = vst.msk [vmem:[%s4967_s18 + $0x18] sm:$0xff] %vm3037_vm2, %v4982_v34  ;;  %v4988_v24 = vadd.f32 %v4960_v37, %v2999_v35  ;;  %v3043_v29 = vsel %vm3037_vm2, %v4982_v34, 0.0  ;;  %v2314_v55 = vpop.f32.mrf.mxu1 }
 0x227   : > { %3150 = vst.msk [vmem:[%s4967_s18 + $0x8] sm:$0xff] %vm3037_vm2, %v4988_v24  ;;  %v3039_v8 = vsel %vm3037_vm2, %v4988_v24, 0.0 }
 0x228   : > { %v3040_v10 = vadd.f32 %v3039_v8, %v3038_v12 }
 0x22a   : > { %v3042_v40 = vadd.f32 %v3041_v63, %v3040_v10 }
 0x22c   : > { %v3611_v53 = vpop.f32.mrf.mxu0  ;;  %v3044_v33 = vadd.f32 %v3043_v29, %v3042_v40 }
 0x22d   : > { %v3004_v48 = vadd.f32 %v3611_v53, %v2291_v6  ;;  %v3602_v53 = vpop.f32.mrf.mxu1 }
 0x22e   : > { %v2951_v60 = vpop.f32.mrf.mxu0  ;;  %v2326_v8 = vadd.f32 %v3602_v53, %v4953_v43 }
 0x22f   : > { %v4994_v58 = vadd.f32 %v4960_v37, %v3004_v48  ;;  %v3002_v25 = vadd.f32 %v2951_v60, %v2283_v47  ;;  %v2323_v48 = vadd.f32 %v3601_v39, %v4949_v26 }
 0x230   : > { %v3612_v7 = vpop.f32.mrf.mxu0 }
 0x231   : > { %3155 = vst.msk [vmem:[%s4967_s18 + $0x30] sm:$0xff] %vm3037_vm2, %v4994_v58  ;;  %v5002_v17 = vadd.f32 %v4960_v37, %v3002_v25  ;;  %v3005_v42 = vadd.f32 %v3612_v7, %v2294_v49  ;;  %v3049_v2 = vsel %vm3037_vm2, %v4994_v58, 0.0  ;;  %v2315_v49 = vadd.f32 %v2314_v55, %v4951_v15  ;;  %v2317_v7 = vpop.f32.mrf.mxu1 }
 0x232   : > { %v2954_v9 = vpop.f32.mrf.mxu0 }
 0x233   : > { %3153 = vst.msk [vmem:[%s4967_s18 + $0x20] sm:$0xff] %vm3037_vm2, %v5002_v17  ;;  %v5010_v14 = vadd.f32 %v4960_v37, %v3005_v42  ;;  %v3003_v16 = vadd.f32 %v2954_v9, %v2286_v3  ;;  %v3045_v46 = vsel %vm3037_vm2, %v5002_v17, 0.0 }
 0x234   : > { %v3046_v50 = vadd.f32 %v3045_v46, %v3044_v33 }
 0x235   : > { %3156 = vst.msk [vmem:[%s4967_s18 + $0x38] sm:$0xff] %vm3037_vm2, %v5010_v14  ;;  %v5016_v23 = vadd.f32 %v4960_v37, %v3003_v16  ;;  %v3051_v35 = vsel %vm3037_vm2, %v5010_v14, 0.0  ;;  %v2318_v16 = vadd.f32 %v2317_v7, %v4955_v41 }
 0x237   : > { %3154 = vst.msk [vmem:[%s4967_s18 + $0x28] sm:$0xff] %vm3037_vm2, %v5016_v23  ;;  %v3047_v27 = vsel %vm3037_vm2, %v5016_v23, 0.0 }
 0x238   : > { %v3048_v62 = vadd.f32 %v3047_v27, %v3046_v50 }
 0x23a   : > { %v3050_v44 = vadd.f32 %v3049_v2, %v3048_v62 }
 0x23c   : > { %v3615_v56 = vpop.f32.mrf.mxu0  ;;  %v3052_v28 = vadd.f32 %v3051_v35, %v3050_v44 }
 0x23d   : > { %v3008_v13 = vadd.f32 %v3615_v56, %v2307_v4 }
 0x23e   : > { %v2967_v20 = vpop.f32.mrf.mxu0 }
 0x23f   : > { %v5033_v31 = vadd.f32 %v4960_v37, %v3008_v13  ;;  %v3006_v59 = vadd.f32 %v2967_v20, %v2299_v18 }
 0x240   : > { %v3616_v36 = vpop.f32.mrf.mxu0 }
 0x241   : > { %3159 = vst.msk [vmem:[%s4967_s18 + $0x50] sm:$0xff] %vm3037_vm2, %v5033_v31  ;;  %v5040_v51 = vadd.f32 %v4960_v37, %v3006_v59  ;;  %v3009_v22 = vadd.f32 %v3616_v36, %v2310_v30  ;;  %v3057_v42 = vsel %vm3037_vm2, %v5033_v31, 0.0 }
 0x242   : > { %v2970_v11 = vpop.f32.mrf.mxu0 }
 0x243   : > { %3157 = vst.msk [vmem:[%s4967_s18 + $0x40] sm:$0xff] %vm3037_vm2, %v5040_v51  ;;  %v5048_v57 = vadd.f32 %v4960_v37, %v3009_v22  ;;  %v3007_v19 = vadd.f32 %v2970_v11, %v2302_v32  ;;  %v3053_v5 = vsel %vm3037_vm2, %v5040_v51, 0.0 }
 0x244   : > { %v3054_v47 = vadd.f32 %v3053_v5, %v3052_v28 }
 0x245   : > { %3160 = vst.msk [vmem:[%s4967_s18 + $0x58] sm:$0xff] %vm3037_vm2, %v5048_v57  ;;  %v5054_v1 = vadd.f32 %v4960_v37, %v3007_v19  ;;  %v3059_v61 = vsel %vm3037_vm2, %v5048_v57, 0.0 }
 0x247   : > { %3158 = vst.msk [vmem:[%s4967_s18 + $0x48] sm:$0xff] %vm3037_vm2, %v5054_v1  ;;  %v3055_v6 = vsel %vm3037_vm2, %v5054_v1, 0.0 }
 0x248   : > { %v3056_v38 = vadd.f32 %v3055_v6, %v3054_v47 }
 0x24a   : > { %v3058_v12 = vadd.f32 %v3057_v42, %v3056_v38 }
 0x24c   : > { %v3619_v60 = vpop.f32.mrf.mxu0  ;;  %v3060_v0 = vadd.f32 %v3059_v61, %v3058_v12 }
 0x24d   : > { %v3012_v25 = vadd.f32 %v3619_v60, %v2323_v48 }
 0x24e   : > { %v2983_v3 = vpop.f32.mrf.mxu0 }
 0x24f   : > { %v5071_v21 = vadd.f32 %v4960_v37, %v3012_v25  ;;  %v3010_v9 = vadd.f32 %v2983_v3, %v2315_v49 }
 0x250   : > { %v3620_v26 = vpop.f32.mrf.mxu0 }
 0x251   : > { %3163 = vst.msk [vmem:[%s4967_s18 + $0x70] sm:$0xff] %vm3037_vm2, %v5071_v21  ;;  %v5078_v15 = vadd.f32 %v4960_v37, %v3010_v9  ;;  %v3013_v43 = vadd.f32 %v3620_v26, %v2326_v8  ;;  %v3065_v56 = vsel %vm3037_vm2, %v5071_v21, 0.0 }
 0x252   : > { %v2986_v10 = vpop.f32.mrf.mxu0 }
 0x253   : > { %v3061_v63 = vsel %vm3037_vm2, %v5078_v15, 0.0  ;;  %3161 = vst.msk [vmem:[%s4967_s18 + $0x60] sm:$0xff] %vm3037_vm2, %v5078_v15  ;;  %v5088_v40 = vadd.f32 %v4960_v37, %v3013_v43  ;;  %v3011_v41 = vadd.f32 %v2986_v10, %v2318_v16 }
 0x254   : > { %v3062_v29 = vadd.f32 %v3061_v63, %v3060_v0 }
 0x255   : > { %3164 = vst.msk [vmem:[%s4967_s18 + $0x78] sm:$0xff] %vm3037_vm2, %v5088_v40  ;;  %v3034_v4 = vadd.f32 %v4960_v37, %v3011_v41  ;;  %v3067_v27 = vsel %vm3037_vm2, %v5088_v40, 0.0 }
 0x257   : > { %v3063_v46 = vsel %vm3037_vm2, %v3034_v4, 0.0  ;;  %3162 = vst.msk [vmem:[%s4967_s18 + $0x68] sm:$0xff] %vm3037_vm2, %v3034_v4  ;;  %s3724_s18 = scalar_lea.vmem %s3723_s8, 64 }
 0x258   : > { %v3064_v33 = vadd.f32 %v3063_v46, %v3062_v29  ;;  %p3726_p7 = scmp.lt.s32.totalorder %s3724_s18, %s3718_s24 }
 0x25a   : > { %v3066_v18 = vadd.f32 %v3065_v56, %v3064_v33  ;;  %p3727_p9 = por %p3726_p7, %p3725_p6 }
 0x25c   : > { %v3068_v13 = vadd.f32 %v3067_v27, %v3066_v18  ;;  %p3728_p10 = pnand %p3727_p9, %p3721_p5 }
 0x25e   : > { %v3069_v45 = vrot.slane %v3068_v13, 4 }
 0x260   : > { %v3070_v50 = vadd.f32 %v3069_v45, %v3068_v13 }
 0x262   : > { %v3071_v20 = vrot.slane %v3070_v50, 2 }
 0x264   : > { %v3072_v30 = vadd.f32 %v3071_v20, %v3070_v50 }
 0x266   : > { %v3073_v59 = vrot.slane %v3072_v30, 1 }
 0x268   : > { %v5101_v37 = vadd.f32 %v3073_v59, %v3072_v30 }
 0x26a   : > { %v3075_v62 = vmul.f32 0.0078125, %v5101_v37 }
 0x26c   : > { %v3076_v36 = vsub.f32 %v4976_v54, %v3075_v62  ;;  %v3077_v32 = vsub.f32 %v4988_v24, %v3075_v62  ;;  %v3078_v22 = vsub.f32 %v4970_v52, %v3075_v62  ;;  %v3079_v39 = vsub.f32 %v4982_v34, %v3075_v62 }
 0x26d   : > { %v3080_v19 = vsub.f32 %v5002_v17, %v3075_v62  ;;  %v3081_v55 = vsub.f32 %v5016_v23, %v3075_v62  ;;  %v3082_v54 = vsub.f32 %v4994_v58, %v3075_v62  ;;  %v3083_v34 = vsub.f32 %v5010_v14, %v3075_v62 }
 0x26e   : > { %v3092_v11 = vmul.f32 %v3076_v36, %v3076_v36  ;;  %v3093_v2 = vmul.f32 %v3077_v32, %v3077_v32  ;;  %v3094_v44 = vmul.f32 %v3078_v22, %v3078_v22  ;;  %v3095_v35 = vmul.f32 %v3079_v39, %v3079_v39 }
 0x26f   : > { %v3096_v24 = vmul.f32 %v3080_v19, %v3080_v19  ;;  %v3097_v47 = vmul.f32 %v3081_v55, %v3081_v55  ;;  %v3084_v23 = vsub.f32 %v5040_v51, %v3075_v62  ;;  %v3098_v38 = vmul.f32 %v3082_v54, %v3082_v54 }
 0x270   : > { %v3108_v5 = vsel %vm3037_vm2, %v3092_v11, 0.0  ;;  %v3109_v28 = vsel %vm3037_vm2, %v3093_v2, 0.0  ;;  %v3111_v52 = vsel %vm3037_vm2, %v3094_v44, 0.0  ;;  %v3113_v17 = vsel %vm3037_vm2, %v3095_v35, 0.0 }
 0x271   : > { %v3110_v6 = vadd.f32 %v3109_v28, %v3108_v5  ;;  %v3115_v60 = vsel %vm3037_vm2, %v3096_v24, 0.0  ;;  %v3085_v25 = vsub.f32 %v5054_v1, %v3075_v62  ;;  %v3099_v7 = vmul.f32 %v3083_v34, %v3083_v34 }
 0x272   : > { %v3117_v58 = vsel %vm3037_vm2, %v3097_v47, 0.0  ;;  %v3086_v8 = vsub.f32 %v5033_v31, %v3075_v62  ;;  %v3100_v42 = vmul.f32 %v3084_v23, %v3084_v23  ;;  %v3119_v14 = vsel %vm3037_vm2, %v3098_v38, 0.0 }
 0x273   : > { %v3112_v53 = vadd.f32 %v3111_v52, %v3110_v6  ;;  %v3087_v12 = vsub.f32 %v5048_v57, %v3075_v62  ;;  %v3101_v26 = vmul.f32 %v3085_v25, %v3085_v25  ;;  %v3121_v51 = vsel %vm3037_vm2, %v3099_v7, 0.0 }
 0x274   : > { %v3088_v43 = vsub.f32 %v5078_v15, %v3075_v62  ;;  %v3102_v10 = vmul.f32 %v3086_v8, %v3086_v8  ;;  %v3123_v1 = vsel %vm3037_vm2, %v3100_v42, 0.0  ;;  %v3089_v63 = vsub.f32 %v3034_v4, %v3075_v62 }
 0x275   : > { %v3114_v48 = vadd.f32 %v3113_v17, %v3112_v53  ;;  %v3103_v41 = vmul.f32 %v3087_v12, %v3087_v12  ;;  %v3125_v31 = vsel %vm3037_vm2, %v3101_v26, 0.0  ;;  %v3090_v29 = vsub.f32 %v5071_v21, %v3075_v62 }
 0x276   : > { %v3104_v46 = vmul.f32 %v3088_v43, %v3088_v43  ;;  %v3127_v57 = vsel %vm3037_vm2, %v3102_v10, 0.0  ;;  %v3091_v56 = vsub.f32 %v5088_v40, %v3075_v62  ;;  %v3105_v18 = vmul.f32 %v3089_v63, %v3089_v63 }
 0x277   : > { %v3116_v49 = vadd.f32 %v3115_v60, %v3114_v48  ;;  %v3129_v15 = vsel %vm3037_vm2, %v3103_v41, 0.0  ;;  %v3106_v13 = vmul.f32 %v3090_v29, %v3090_v29 }
 0x278   : > { %v3131_v4 = vsel %vm3037_vm2, %v3104_v46, 0.0  ;;  %v3107_v50 = vmul.f32 %v3091_v56, %v3091_v56  ;;  %v3133_v21 = vsel %vm3037_vm2, %v3105_v18, 0.0 }
 0x279   : > { %v3118_v3 = vadd.f32 %v3117_v58, %v3116_v49  ;;  %v3135_v30 = vsel %vm3037_vm2, %v3106_v13, 0.0 }
 0x27a   : > { %v3137_v36 = vsel %vm3037_vm2, %v3107_v50, 0.0 }
 0x27b   : > { %v3120_v9 = vadd.f32 %v3119_v14, %v3118_v3 }
 0x27d   : > { %v3122_v16 = vadd.f32 %v3121_v51, %v3120_v9 }
 0x27f   : > { %v3124_v61 = vadd.f32 %v3123_v1, %v3122_v16 }
 0x281   : > { %v3126_v0 = vadd.f32 %v3125_v31, %v3124_v61 }
 0x283   : > { %v3128_v33 = vadd.f32 %v3127_v57, %v3126_v0 }
 0x285   : > { %v3130_v27 = vadd.f32 %v3129_v15, %v3128_v33 }
 0x287   : > { %v3132_v45 = vadd.f32 %v3131_v4, %v3130_v27 }
 0x289   : > { %v3134_v20 = vadd.f32 %v3133_v21, %v3132_v45 }
 0x28b   : > { %v3136_v59 = vadd.f32 %v3135_v30, %v3134_v20 }
 0x28d   : > { %v3138_v40 = vadd.f32 %v3137_v36, %v3136_v59 }
 0x28f   : > { %v3139_v62 = vrot.slane %v3138_v40, 4 }
 0x291   : > { %v3140_v32 = vadd.f32 %v3139_v62, %v3138_v40 }
 0x293   : > { %v3141_v22 = vrot.slane %v3140_v32, 2 }
 0x295   : > { %v3142_v39 = vadd.f32 %v3141_v22, %v3140_v32 }
 0x297   : > { %v3143_v11 = vrot.slane %v3142_v39, 1 }
 0x299   : > { %v3144_v2 = vadd.f32 %v3143_v11, %v3142_v39 }
 0x29b   : > { %v3146_v19 = vsel %vm3145_vm4, %v5101_v37, %v3144_v2 }
 0x29c   : > { %3148 = vst.msk [vmem:[%s396_s13] sm:$0x3] %vm3147_vm5, %v3146_v19 }
 0x29d   : > { %3731 = shalt.err (!%p3728_p10)
}
 0x29e   : > { %s3732_s12 = scalar_lea.hbm %s5141_s17, 32  ;;  %s3736_s29 = scalar_lea.hbm %s5194_s6, 128 }
 0x29f   : > { %p3733_p11 = scmp.ne.s32.totalorder %s5141_s17, %s3732_s12  ;;  %p3737_p0 = scmp.lt.s32.totalorder %s5141_s17, %s5194_s6 }
 0x2a0   : > { %p3738_p1 = scmp.lt.s32.totalorder %s3736_s29, %s3732_s12 }
 0x2a1   : > { %p3734_p12 = pnand %p3733_p11, %p3901_p3 }
 0x2a2   : > { %p3739_p2 = por %p3738_p1, %p3737_p0 }
 0x2a3   : > { %p3735_p13 = pneg %p3734_p12 }
 0x2a5   : > { %p3740_p4 = pnand %p3739_p2, %p3735_p13 }
 0x2a7   : > { %3743 = shalt.err (!%p3740_p4)
}
 0x2a8   : > { %3627 = dma.vmem_to_hbm [thread:$0]  (%p3901_p3), %s3196_s7, 32, %s5141_s17, %s3176_s25  }
 0x2a9 PF: > { %p3633_p5 = scmp.ge.s32.totalorder %s3810_s28, 2  ;;  %s3220_s19 = sand.u32 1, %s3782_s21  }
 0x2aa   : > { %s3221_s14 = scalar_lea.sflag [#allocation5], %s3220_s19 }
 0x2ab   : > { %p3630_p6 = pnand %p3633_p5, %p3910_p8 }
 0x2ad   : > { %p3631_p7 = pneg %p3630_p6 }
 0x2af   : > { %3777 = dma.done.wait (%p3631_p7), %s3221_s14, 32  }
 0x2b0   : > { %3779 = vsyncadd (%p3631_p7), %s3221_s14, 4294967264  ;;  %s20_s28 = sadd.s32 1, %s3810_s28   ;;  %s5214_s10 = sld [smem:[#allocation7_spill]] }
 0x2b1   : > { %p17_p9 = scmp.ge.s32.totalorder %s20_s28, 6   ;;  %s5215_s7 = sld [smem:[#allocation8_spill]] }
 0x2b2   : > { %s5216_s21 = smov %s3786_s22  ;;  %s5217_s22 = smov %s3790_s23 }
 0x2b3   : > { %s5218_s23 = smov %s3919_s15  ;;  %s5219_s24 = smov %s3802_s26 }
 0x2b4   : > { %s5220_s25 = smov %s3806_s27  ;;  %19 = sbr.rel (!%p17_p9) target bundleno = 5 (0x5), region = 98 }
 0x2b6   : > { %s5221_s26 = smov %s5214_s10 }
 0x2b7   : > { %s5222_s27 = smov %s5215_s7 }
 0x2b9   :  { %3226 = vsyncpa [#allocation5], 1 }
 0x2ba   :  { %3228 = vsyncpa [#allocation5 + $0x1], 1 }

</bundles_post_ra>
